<compile_context>
chip_gen: v5e
topology: v5e:2x2
jax: 0.10.0
libtpu: 0.0.40
codegen_flags: <defaults>
</compile_context>

<pallas_src>
import functools

import jax
import jax.numpy as jnp
from jax.experimental import pallas as pl
from jax.experimental.pallas import tpu as pltpu


# ----------------------------------------------------------------------------
# Pallas kernel: cross&compress unit + fused [user_mlp | gcn_unit] chain +
# fused [G_mlp | G_mlp2] chain, for one batch tile of TB rows.
#
#   v_ref, e_ref : (TB, Dp)        item / head embeddings (lane-padded)
#   ug_ref       : (TB, 2*Dp)      concat([user_emb, gcn_emb], axis=-1)
#   cc_w_ref     : (L*4, Dp)       cross&compress weights (w_vv,w_ev,w_ve,w_ee)
#   cc_b_ref     : (L*2, Dp)       cross&compress biases  (b_v, b_e)
#   ug_W_ref     : (L, 2Dp, 2Dp)   blockdiag(user_W[l], gcn_W[l])
#   ug_b_ref     : (L, 2Dp)        concat(user_b[l], gcn_b[l])
#   gg_W_ref     : (L, 2Dp, 2Dp)   blockdiag(g1_W[l], g2_W[l])
#   gg_b_ref     : (L, 2Dp)        concat(g1_b[l], g2_b[l])
# ----------------------------------------------------------------------------
def mkr_rs_kernel(v_ref, e_ref, ug_ref,
                  cc_w_ref, cc_b_ref,
                  ug_W_ref, ug_b_ref,
                  gg_W_ref, gg_b_ref,
                  out_user_ref, out_item_ref):
    Dp = v_ref.shape[-1]
    L = ug_W_ref.shape[0]

    v = v_ref[...].astype(jnp.float32)      # (TB, Dp) item embeddings
    e = e_ref[...].astype(jnp.float32)      # (TB, Dp) head (entity) embeddings
    ug = ug_ref[...].astype(jnp.float32)    # (TB, 2Dp) [user | gcn]

    # L layers of cc_unit (cross&compress) and the fused user/gcn dense chain.
    for l in range(L):
        # Ref-indexed weight loads (static offsets) -> no big value slab live
        # in vregs across the unrolled loop.
        w_vv = cc_w_ref[4 * l + 0][None, :]
        w_ev = cc_w_ref[4 * l + 1][None, :]
        w_ve = cc_w_ref[4 * l + 2][None, :]
        w_ee = cc_w_ref[4 * l + 3][None, :]
        b_v = cc_b_ref[2 * l + 0][None, :]
        b_e = cc_b_ref[2 * l + 1][None, :]

        # cross matrix C = v e^T ; <C, w> collapses to per-row dot products.
        d_e_vv = jnp.sum(e * w_vv, axis=-1, keepdims=True)   # (TB, 1)
        d_v_ev = jnp.sum(v * w_ev, axis=-1, keepdims=True)
        d_e_ve = jnp.sum(e * w_ve, axis=-1, keepdims=True)
        d_v_ee = jnp.sum(v * w_ee, axis=-1, keepdims=True)
        v, e = (v * d_e_vv + e * d_v_ev + b_v,
                v * d_e_ve + e * d_v_ee + b_e)

        # Fused user_mlp + gcn_unit: [u | g] @ blockdiag(user_W, gcn_W), relu.
        ug = jnp.maximum(
            jnp.dot(ug, ug_W_ref[l], preferred_element_type=jnp.float32)
            + ug_b_ref[l][None, :], 0.0)

    g = ug[:, Dp:]                                            # gcn-side item emb
    # item_embeddings_1 / _2, fused G_mlp | G_mlp2 (Dense2 = linear).
    cat = jnp.concatenate([v + g, v * g], axis=-1)            # (TB, 2Dp)
    for l in range(L):
        cat = (jnp.dot(cat, gg_W_ref[l], preferred_element_type=jnp.float32)
               + gg_b_ref[l][None, :])

    out_user_ref[...] = ug[:, :Dp]
    out_item_ref[...] = cat[:, :Dp] + cat[:, Dp:]


# ----------------------------------------------------------------------------
# Wrapper: embedding gathers + block-diagonal weight packing in JAX,
# hot path in the Pallas kernel, scores computed from lane-dense outputs.
# ----------------------------------------------------------------------------
def mkr_rs_forward(user_indices, item_indices, head_indices, params, *, tb=128):
    D = params["user_table"].shape[1]
    L = params["user_W"].shape[0]
    Dp = 128 * pl.cdiv(D, 128)                   # lane-align embedding dim

    # ----- data-dependent embedding gathers (plain JAX) -----
    u0 = jnp.take(params["user_table"], user_indices, axis=0)
    v0 = jnp.take(params["item_table"], item_indices, axis=0)
    e0 = jnp.take(params["entity_table"], head_indices, axis=0)
    g0 = jnp.take(params["gcn_table"], item_indices, axis=0)

    B = u0.shape[0]
    Bp = tb * pl.cdiv(B, tb)                     # pad batch to tile multiple

    def pad_rows(x):
        return jnp.pad(x, ((0, Bp - B), (0, Dp - D)))

    vp, ep = pad_rows(v0), pad_rows(e0)
    ug0 = jnp.concatenate([pad_rows(u0), pad_rows(g0)], axis=-1)   # (Bp, 2Dp)

    # ----- pack / pad weights (done once per jit; constant-folded) -----
    def pad_mats(W):   # (L, D, D) -> (L, Dp, Dp)
        return jnp.pad(W, ((0, 0), (0, Dp - D), (0, Dp - D)))

    def pad_vecs(b):   # (L, D) -> (L, Dp)
        return jnp.pad(b, ((0, 0), (0, Dp - D)))

    def block_diag(A, Bm):   # (L, Dp, Dp) x2 -> (L, 2Dp, 2Dp)
        Z = jnp.zeros_like(A)
        top = jnp.concatenate([A, Z], axis=2)
        bot = jnp.concatenate([Z, Bm], axis=2)
        return jnp.concatenate([top, bot], axis=1)

    ug_W = block_diag(pad_mats(params["user_W"]), pad_mats(params["gcn_W"]))
    ug_b = jnp.concatenate([pad_vecs(params["user_b"]),
                            pad_vecs(params["gcn_b"])], axis=-1)
    gg_W = block_diag(pad_mats(params["g1_W"]), pad_mats(params["g2_W"]))
    gg_b = jnp.concatenate([pad_vecs(params["g1_b"]),
                            pad_vecs(params["g2_b"])], axis=-1)

    cc_w = jnp.pad(params["cc_w"], ((0, 0), (0, 0), (0, Dp - D))).reshape(L * 4, Dp)
    cc_b = jnp.pad(params["cc_b"], ((0, 0), (0, 0), (0, Dp - D))).reshape(L * 2, Dp)

    # ----- Pallas call -----
    row_spec = pl.BlockSpec((tb, Dp), lambda i: (i, 0))
    row_spec2 = pl.BlockSpec((tb, 2 * Dp), lambda i: (i, 0))

    def rep_spec(arr):
        nd = arr.ndim
        return pl.BlockSpec(arr.shape, lambda i, nd=nd: (0,) * nd)
        # TODO(synk): at large L/D, add pipeline_mode=pl.Buffered(1) here (the
        # block index never changes) to halve resident weight VMEM on v7x.

    weights = (cc_w, cc_b, ug_W, ug_b, gg_W, gg_b)

    out_user_p, out_item_p = pl.pallas_call(
        mkr_rs_kernel,
        out_shape=(
            jax.ShapeDtypeStruct((Bp, Dp), jnp.float32),
            jax.ShapeDtypeStruct((Bp, Dp), jnp.float32),
        ),
        grid=(Bp // tb,),
        in_specs=[row_spec, row_spec, row_spec2]
                 + [rep_spec(w) for w in weights],
        out_specs=(row_spec, row_spec),
        compiler_params=pltpu.CompilerParams(
            dimension_semantics=("parallel",)),
    )(vp, ep, ug0, *weights)

    user_emb = out_user_p[:B, :D]
    item_emb = out_item_p[:B, :D]
    # Lane-dense outputs; the (B,) score reduction + sigmoid are cheap XLA ops.
    scores = jnp.sum(user_emb * item_emb, axis=-1)
    return user_emb, item_emb, scores, jax.nn.sigmoid(scores)


# ----------------------------------------------------------------------------
# Pure-JAX reference (same math, original dims) for verification.
# ----------------------------------------------------------------------------
def mkr_rs_reference(user_indices, item_indices, head_indices, params):
    u = jnp.take(params["user_table"], user_indices, axis=0)
    v = jnp.take(params["item_table"], item_indices, axis=0)
    e = jnp.take(params["entity_table"], head_indices, axis=0)
    g = jnp.take(params["gcn_table"], item_indices, axis=0)
    L = params["user_W"].shape[0]
    for l in range(L):
        w_vv, w_ev, w_ve, w_ee = [params["cc_w"][l, k][None, :] for k in range(4)]
        b_v, b_e = [params["cc_b"][l, k][None, :] for k in range(2)]
        v_new = v * jnp.sum(e * w_vv, -1, keepdims=True) \
              + e * jnp.sum(v * w_ev, -1, keepdims=True) + b_v
        e_new = v * jnp.sum(e * w_ve, -1, keepdims=True) \
              + e * jnp.sum(v * w_ee, -1, keepdims=True) + b_e
        v, e = v_new, e_new
        u = jax.nn.relu(u @ params["user_W"][l] + params["user_b"][l])
        g = jax.nn.relu(g @ params["gcn_W"][l] + params["gcn_b"][l])
    item_1, item_2 = v + g, v * g
    for l in range(L):
        item_1 = item_1 @ params["g1_W"][l] + params["g1_b"][l]
        item_2 = item_2 @ params["g2_W"][l] + params["g2_b"][l]
    item_emb = item_1 + item_2
    scores = jnp.sum(u * item_emb, axis=-1)
    return u, item_emb, scores, jax.nn.sigmoid(scores)


# ----------------------------------------------------------------------------
# Deterministic parameter construction (no checkpoint loading).
# ----------------------------------------------------------------------------
def make_params(key, *, n_user, n_item, n_entity, dim, L):
    keys = jax.random.split(key, 16)
    s = 0.1
    return {
        "user_table":   s * jax.random.normal(keys[0], (n_user, dim), jnp.float32),
        "item_table":   s * jax.random.normal(keys[1], (n_item, dim), jnp.float32),
        "entity_table": s * jax.random.normal(keys[2], (n_entity, dim), jnp.float32),
        "gcn_table":    s * jax.random.normal(keys[3], (n_item, dim), jnp.float32),
        "user_W": s * jax.random.normal(keys[4], (L, dim, dim), jnp.float32),
        "user_b": s * jax.random.normal(keys[5], (L, dim), jnp.float32),
        "cc_w":   s * jax.random.normal(keys[6], (L, 4, dim), jnp.float32),
        "cc_b":   s * jax.random.normal(keys[7], (L, 2, dim), jnp.float32),
        "gcn_W":  s * jax.random.normal(keys[8], (L, dim, dim), jnp.float32),
        "gcn_b":  s * jax.random.normal(keys[9], (L, dim), jnp.float32),
        "g1_W":   s * jax.random.normal(keys[10], (L, dim, dim), jnp.float32),
        "g1_b":   s * jax.random.normal(keys[11], (L, dim), jnp.float32),
        "g2_W":   s * jax.random.normal(keys[12], (L, dim, dim), jnp.float32),
        "g2_b":   s * jax.random.normal(keys[13], (L, dim), jnp.float32),
    }


if __name__ == "__main__":
    # small config consistent with the module: args.dim, args.L, args.batch_size
    dim, L, batch = 32, 2, 256          # batch tiled as 2 x 128 rows
    n_user, n_item, n_entity = 500, 600, 700

    key = jax.random.PRNGKey(0)
    kp, ku, ki, kh = jax.random.split(key, 4)
    params = make_params(kp, n_user=n_user, n_item=n_item,
                         n_entity=n_entity, dim=dim, L=L)

    user_indices = jax.random.randint(ku, (batch,), 0, n_user)
    item_indices = jax.random.randint(ki, (batch,), 0, n_item)
    head_indices = jax.random.randint(kh, (batch,), 0, n_entity)

    fwd = jax.jit(functools.partial(mkr_rs_forward, tb=128))
    out_user, out_item, scores, scores_norm = fwd(
        user_indices, item_indices, head_indices, params)
    jax.block_until_ready((out_user, out_item, scores, scores_norm))

    # verify against pure-JAX reference
    ru, ri, rs, rn = mkr_rs_reference(user_indices, item_indices, head_indices, params)
    assert jnp.allclose(out_user, ru, atol=1e-4, rtol=1e-4)
    assert jnp.allclose(out_item, ri, atol=1e-4, rtol=1e-4)
    assert jnp.allclose(scores, rs, atol=1e-4, rtol=1e-4)
    assert jnp.allclose(scores_norm, rn, atol=1e-4, rtol=1e-4)

    print("KERNEL_OK")
</pallas_src>

<mosaic_0001>
module attributes {stable_mosaic.version = 11 : i64} {
  func.func @mkr_rs_kernel(%arg0: i32, %arg1: memref<128x128xf32, #tpu.memory_space<vmem>>, %arg2: memref<128x128xf32, #tpu.memory_space<vmem>>, %arg3: memref<128x256xf32, #tpu.memory_space<vmem>>, %arg4: memref<8x128xf32, #tpu.memory_space<vmem>>, %arg5: memref<4x128xf32, #tpu.memory_space<vmem>>, %arg6: memref<2x256x256xf32, #tpu.memory_space<vmem>>, %arg7: memref<2x256xf32, #tpu.memory_space<vmem>>, %arg8: memref<2x256x256xf32, #tpu.memory_space<vmem>>, %arg9: memref<2x256xf32, #tpu.memory_space<vmem>>, %arg10: memref<128x128xf32, #tpu.memory_space<vmem>>, %arg11: memref<128x128xf32, #tpu.memory_space<vmem>>) attributes {dimension_semantics = [#tpu.dimension_semantics<parallel>], iteration_bounds = array<i64: 2>, scalar_prefetch = 0 : i64, scratch_operands = 0 : i64, tpu.core_type = #tpu.core_type<tc>, window_params = [{transform_indices = @transform_0, window_bounds = array<i64: 128, 128>}, {transform_indices = @transform_1, window_bounds = array<i64: 128, 128>}, {transform_indices = @transform_2, window_bounds = array<i64: 128, 256>}, {pipeline_mode = #tpu.pipeline_mode<synchronous>, transform_indices = @transform_3, window_bounds = array<i64: 8, 128>}, {pipeline_mode = #tpu.pipeline_mode<synchronous>, transform_indices = @transform_4, window_bounds = array<i64: 4, 128>}, {pipeline_mode = #tpu.pipeline_mode<synchronous>, transform_indices = @transform_5, window_bounds = array<i64: 2, 256, 256>}, {pipeline_mode = #tpu.pipeline_mode<synchronous>, transform_indices = @transform_6, window_bounds = array<i64: 2, 256>}, {pipeline_mode = #tpu.pipeline_mode<synchronous>, transform_indices = @transform_7, window_bounds = array<i64: 2, 256, 256>}, {pipeline_mode = #tpu.pipeline_mode<synchronous>, transform_indices = @transform_8, window_bounds = array<i64: 2, 256>}, {transform_indices = @transform_9, window_bounds = array<i64: 128, 128>}, {transform_indices = @transform_10, window_bounds = array<i64: 128, 128>}]} {
    %c0 = arith.constant 0 : index
    %c0_0 = arith.constant 0 : index
    %0 = vector.load %arg1[%c0, %c0_0] : memref<128x128xf32, #tpu.memory_space<vmem>>, vector<128x128xf32>
    %c0_1 = arith.constant 0 : index
    %c0_2 = arith.constant 0 : index
    %1 = vector.load %arg2[%c0_1, %c0_2] : memref<128x128xf32, #tpu.memory_space<vmem>>, vector<128x128xf32>
    %c0_3 = arith.constant 0 : index
    %c0_4 = arith.constant 0 : index
    %2 = vector.load %arg3[%c0_3, %c0_4] : memref<128x256xf32, #tpu.memory_space<vmem>>, vector<128x256xf32>
    %c0_5 = arith.constant 0 : index
    %c0_6 = arith.constant 0 : index
    %3 = vector.load %arg4[%c0_5, %c0_6] : memref<8x128xf32, #tpu.memory_space<vmem>>, vector<1x128xf32>
    %4 = vector.shape_cast %3 : vector<1x128xf32> to vector<128xf32>
    %5 = vector.shape_cast %4 : vector<128xf32> to vector<1x128xf32>
    %c1 = arith.constant 1 : index
    %c0_7 = arith.constant 0 : index
    %6 = vector.load %arg4[%c1, %c0_7] : memref<8x128xf32, #tpu.memory_space<vmem>>, vector<1x128xf32>
    %7 = vector.shape_cast %6 : vector<1x128xf32> to vector<128xf32>
    %8 = vector.shape_cast %7 : vector<128xf32> to vector<1x128xf32>
    %c2 = arith.constant 2 : index
    %c0_8 = arith.constant 0 : index
    %9 = vector.load %arg4[%c2, %c0_8] : memref<8x128xf32, #tpu.memory_space<vmem>>, vector<1x128xf32>
    %10 = vector.shape_cast %9 : vector<1x128xf32> to vector<128xf32>
    %11 = vector.shape_cast %10 : vector<128xf32> to vector<1x128xf32>
    %c3 = arith.constant 3 : index
    %c0_9 = arith.constant 0 : index
    %12 = vector.load %arg4[%c3, %c0_9] : memref<8x128xf32, #tpu.memory_space<vmem>>, vector<1x128xf32>
    %13 = vector.shape_cast %12 : vector<1x128xf32> to vector<128xf32>
    %14 = vector.shape_cast %13 : vector<128xf32> to vector<1x128xf32>
    %c0_10 = arith.constant 0 : index
    %c0_11 = arith.constant 0 : index
    %15 = vector.load %arg5[%c0_10, %c0_11] : memref<4x128xf32, #tpu.memory_space<vmem>>, vector<1x128xf32>
    %16 = vector.shape_cast %15 : vector<1x128xf32> to vector<128xf32>
    %17 = vector.shape_cast %16 : vector<128xf32> to vector<1x128xf32>
    %c1_12 = arith.constant 1 : index
    %c0_13 = arith.constant 0 : index
    %18 = vector.load %arg5[%c1_12, %c0_13] : memref<4x128xf32, #tpu.memory_space<vmem>>, vector<1x128xf32>
    %19 = vector.shape_cast %18 : vector<1x128xf32> to vector<128xf32>
    %20 = vector.shape_cast %19 : vector<128xf32> to vector<1x128xf32>
    %21 = vector.broadcast %5 : vector<1x128xf32> to vector<128x128xf32>
    %22 = arith.mulf %1, %21 : vector<128x128xf32>
    %cst = arith.constant dense<0.000000e+00> : vector<128xf32>
    %23 = vector.multi_reduction <add>, %22, %cst [1] : vector<128x128xf32> to vector<128xf32>
    %24 = vector.shape_cast %23 : vector<128xf32> to vector<128x1xf32>
    %25 = vector.broadcast %8 : vector<1x128xf32> to vector<128x128xf32>
    %26 = arith.mulf %0, %25 : vector<128x128xf32>
    %cst_14 = arith.constant dense<0.000000e+00> : vector<128xf32>
    %27 = vector.multi_reduction <add>, %26, %cst_14 [1] : vector<128x128xf32> to vector<128xf32>
    %28 = vector.shape_cast %27 : vector<128xf32> to vector<128x1xf32>
    %29 = vector.broadcast %11 : vector<1x128xf32> to vector<128x128xf32>
    %30 = arith.mulf %1, %29 : vector<128x128xf32>
    %cst_15 = arith.constant dense<0.000000e+00> : vector<128xf32>
    %31 = vector.multi_reduction <add>, %30, %cst_15 [1] : vector<128x128xf32> to vector<128xf32>
    %32 = vector.shape_cast %31 : vector<128xf32> to vector<128x1xf32>
    %33 = vector.broadcast %14 : vector<1x128xf32> to vector<128x128xf32>
    %34 = arith.mulf %0, %33 : vector<128x128xf32>
    %cst_16 = arith.constant dense<0.000000e+00> : vector<128xf32>
    %35 = vector.multi_reduction <add>, %34, %cst_16 [1] : vector<128x128xf32> to vector<128xf32>
    %36 = vector.shape_cast %35 : vector<128xf32> to vector<128x1xf32>
    %37 = vector.broadcast %24 : vector<128x1xf32> to vector<128x128xf32>
    %38 = arith.mulf %0, %37 : vector<128x128xf32>
    %39 = vector.broadcast %28 : vector<128x1xf32> to vector<128x128xf32>
    %40 = arith.mulf %1, %39 : vector<128x128xf32>
    %41 = arith.addf %38, %40 : vector<128x128xf32>
    %42 = vector.broadcast %17 : vector<1x128xf32> to vector<128x128xf32>
    %43 = arith.addf %41, %42 : vector<128x128xf32>
    %44 = vector.broadcast %32 : vector<128x1xf32> to vector<128x128xf32>
    %45 = arith.mulf %0, %44 : vector<128x128xf32>
    %46 = vector.broadcast %36 : vector<128x1xf32> to vector<128x128xf32>
    %47 = arith.mulf %1, %46 : vector<128x128xf32>
    %48 = arith.addf %45, %47 : vector<128x128xf32>
    %49 = vector.broadcast %20 : vector<1x128xf32> to vector<128x128xf32>
    %50 = arith.addf %48, %49 : vector<128x128xf32>
    %c0_17 = arith.constant 0 : index
    %c0_18 = arith.constant 0 : index
    %c0_19 = arith.constant 0 : index
    %51 = vector.load %arg6[%c0_17, %c0_18, %c0_19] : memref<2x256x256xf32, #tpu.memory_space<vmem>>, vector<1x256x256xf32>
    %52 = vector.shape_cast %51 : vector<1x256x256xf32> to vector<256x256xf32>
    %cst_20 = arith.constant dense<0.000000e+00> : vector<128x256xf32>
    %53 = tpu.matmul %2, %52, %cst_20 {dimension_numbers = #tpu.dot_dimension_numbers<[1], [0], [0], [1], [0, 0, 1, 1], [], []>} : vector<128x256xf32>, vector<256x256xf32>, vector<128x256xf32> -> vector<128x256xf32>
    %c0_21 = arith.constant 0 : index
    %c0_22 = arith.constant 0 : index
    %54 = vector.load %arg7[%c0_21, %c0_22] : memref<2x256xf32, #tpu.memory_space<vmem>>, vector<1x256xf32>
    %55 = vector.shape_cast %54 : vector<1x256xf32> to vector<256xf32>
    %56 = vector.shape_cast %55 : vector<256xf32> to vector<1x256xf32>
    %57 = vector.broadcast %56 : vector<1x256xf32> to vector<128x256xf32>
    %58 = arith.addf %53, %57 : vector<128x256xf32>
    %cst_23 = arith.constant 0.000000e+00 : f32
    %59 = vector.broadcast %cst_23 : f32 to vector<128x256xf32>
    %60 = arith.maximumf %58, %59 : vector<128x256xf32>
    %c4 = arith.constant 4 : index
    %c0_24 = arith.constant 0 : index
    %61 = vector.load %arg4[%c4, %c0_24] : memref<8x128xf32, #tpu.memory_space<vmem>>, vector<1x128xf32>
    %62 = vector.shape_cast %61 : vector<1x128xf32> to vector<128xf32>
    %63 = vector.shape_cast %62 : vector<128xf32> to vector<1x128xf32>
    %c5 = arith.constant 5 : index
    %c0_25 = arith.constant 0 : index
    %64 = vector.load %arg4[%c5, %c0_25] : memref<8x128xf32, #tpu.memory_space<vmem>>, vector<1x128xf32>
    %65 = vector.shape_cast %64 : vector<1x128xf32> to vector<128xf32>
    %66 = vector.shape_cast %65 : vector<128xf32> to vector<1x128xf32>
    %c2_26 = arith.constant 2 : index
    %c0_27 = arith.constant 0 : index
    %67 = vector.load %arg5[%c2_26, %c0_27] : memref<4x128xf32, #tpu.memory_space<vmem>>, vector<1x128xf32>
    %68 = vector.shape_cast %67 : vector<1x128xf32> to vector<128xf32>
    %69 = vector.shape_cast %68 : vector<128xf32> to vector<1x128xf32>
    %70 = vector.broadcast %63 : vector<1x128xf32> to vector<128x128xf32>
    %71 = arith.mulf %50, %70 : vector<128x128xf32>
    %cst_28 = arith.constant dense<0.000000e+00> : vector<128xf32>
    %72 = vector.multi_reduction <add>, %71, %cst_28 [1] : vector<128x128xf32> to vector<128xf32>
    %73 = vector.shape_cast %72 : vector<128xf32> to vector<128x1xf32>
    %74 = vector.broadcast %66 : vector<1x128xf32> to vector<128x128xf32>
    %75 = arith.mulf %43, %74 : vector<128x128xf32>
    %cst_29 = arith.constant dense<0.000000e+00> : vector<128xf32>
    %76 = vector.multi_reduction <add>, %75, %cst_29 [1] : vector<128x128xf32> to vector<128xf32>
    %77 = vector.shape_cast %76 : vector<128xf32> to vector<128x1xf32>
    %78 = vector.broadcast %73 : vector<128x1xf32> to vector<128x128xf32>
    %79 = arith.mulf %43, %78 : vector<128x128xf32>
    %80 = vector.broadcast %77 : vector<128x1xf32> to vector<128x128xf32>
    %81 = arith.mulf %50, %80 : vector<128x128xf32>
    %82 = arith.addf %79, %81 : vector<128x128xf32>
    %83 = vector.broadcast %69 : vector<1x128xf32> to vector<128x128xf32>
    %84 = arith.addf %82, %83 : vector<128x128xf32>
    %c1_30 = arith.constant 1 : index
    %c0_31 = arith.constant 0 : index
    %c0_32 = arith.constant 0 : index
    %85 = vector.load %arg6[%c1_30, %c0_31, %c0_32] : memref<2x256x256xf32, #tpu.memory_space<vmem>>, vector<1x256x256xf32>
    %86 = vector.shape_cast %85 : vector<1x256x256xf32> to vector<256x256xf32>
    %cst_33 = arith.constant dense<0.000000e+00> : vector<128x256xf32>
    %87 = tpu.matmul %60, %86, %cst_33 {dimension_numbers = #tpu.dot_dimension_numbers<[1], [0], [0], [1], [0, 0, 1, 1], [], []>} : vector<128x256xf32>, vector<256x256xf32>, vector<128x256xf32> -> vector<128x256xf32>
    %c1_34 = arith.constant 1 : index
    %c0_35 = arith.constant 0 : index
    %88 = vector.load %arg7[%c1_34, %c0_35] : memref<2x256xf32, #tpu.memory_space<vmem>>, vector<1x256xf32>
    %89 = vector.shape_cast %88 : vector<1x256xf32> to vector<256xf32>
    %90 = vector.shape_cast %89 : vector<256xf32> to vector<1x256xf32>
    %91 = vector.broadcast %90 : vector<1x256xf32> to vector<128x256xf32>
    %92 = arith.addf %87, %91 : vector<128x256xf32>
    %cst_36 = arith.constant 0.000000e+00 : f32
    %93 = vector.broadcast %cst_36 : f32 to vector<128x256xf32>
    %94 = arith.maximumf %92, %93 : vector<128x256xf32>
    %95 = vector.extract_strided_slice %94 {offsets = [0, 128], sizes = [128, 128], strides = [1, 1]} : vector<128x256xf32> to vector<128x128xf32>
    %96 = arith.addf %84, %95 : vector<128x128xf32>
    %97 = arith.mulf %84, %95 : vector<128x128xf32>
    %98 = tpu.concatenate %96, %97 in 1 : vector<128x128xf32>, vector<128x128xf32> -> vector<128x256xf32>
    %c0_37 = arith.constant 0 : index
    %c0_38 = arith.constant 0 : index
    %c0_39 = arith.constant 0 : index
    %99 = vector.load %arg8[%c0_37, %c0_38, %c0_39] : memref<2x256x256xf32, #tpu.memory_space<vmem>>, vector<1x256x256xf32>
    %100 = vector.shape_cast %99 : vector<1x256x256xf32> to vector<256x256xf32>
    %cst_40 = arith.constant dense<0.000000e+00> : vector<128x256xf32>
    %101 = tpu.matmul %98, %100, %cst_40 {dimension_numbers = #tpu.dot_dimension_numbers<[1], [0], [0], [1], [0, 0, 1, 1], [], []>} : vector<128x256xf32>, vector<256x256xf32>, vector<128x256xf32> -> vector<128x256xf32>
    %c0_41 = arith.constant 0 : index
    %c0_42 = arith.constant 0 : index
    %102 = vector.load %arg9[%c0_41, %c0_42] : memref<2x256xf32, #tpu.memory_space<vmem>>, vector<1x256xf32>
    %103 = vector.shape_cast %102 : vector<1x256xf32> to vector<256xf32>
    %104 = vector.shape_cast %103 : vector<256xf32> to vector<1x256xf32>
    %105 = vector.broadcast %104 : vector<1x256xf32> to vector<128x256xf32>
    %106 = arith.addf %101, %105 : vector<128x256xf32>
    %c1_43 = arith.constant 1 : index
    %c0_44 = arith.constant 0 : index
    %c0_45 = arith.constant 0 : index
    %107 = vector.load %arg8[%c1_43, %c0_44, %c0_45] : memref<2x256x256xf32, #tpu.memory_space<vmem>>, vector<1x256x256xf32>
    %108 = vector.shape_cast %107 : vector<1x256x256xf32> to vector<256x256xf32>
    %cst_46 = arith.constant dense<0.000000e+00> : vector<128x256xf32>
    %109 = tpu.matmul %106, %108, %cst_46 {dimension_numbers = #tpu.dot_dimension_numbers<[1], [0], [0], [1], [0, 0, 1, 1], [], []>} : vector<128x256xf32>, vector<256x256xf32>, vector<128x256xf32> -> vector<128x256xf32>
    %c1_47 = arith.constant 1 : index
    %c0_48 = arith.constant 0 : index
    %110 = vector.load %arg9[%c1_47, %c0_48] : memref<2x256xf32, #tpu.memory_space<vmem>>, vector<1x256xf32>
    %111 = vector.shape_cast %110 : vector<1x256xf32> to vector<256xf32>
    %112 = vector.shape_cast %111 : vector<256xf32> to vector<1x256xf32>
    %113 = vector.broadcast %112 : vector<1x256xf32> to vector<128x256xf32>
    %114 = arith.addf %109, %113 : vector<128x256xf32>
    %115 = vector.extract_strided_slice %94 {offsets = [0, 0], sizes = [128, 128], strides = [1, 1]} : vector<128x256xf32> to vector<128x128xf32>
    %c0_49 = arith.constant 0 : index
    %c0_50 = arith.constant 0 : index
    %116 = vector.load %arg10[%c0_49, %c0_50] : memref<128x128xf32, #tpu.memory_space<vmem>>, vector<128x128xf32>
    tpu.vector_store %arg10[%c0_49, %c0_50], %115 {strides = array<i32>} : memref<128x128xf32, #tpu.memory_space<vmem>>, vector<128x128xf32>,
    %117 = vector.extract_strided_slice %114 {offsets = [0, 0], sizes = [128, 128], strides = [1, 1]} : vector<128x256xf32> to vector<128x128xf32>
    %118 = vector.extract_strided_slice %114 {offsets = [0, 128], sizes = [128, 128], strides = [1, 1]} : vector<128x256xf32> to vector<128x128xf32>
    %119 = arith.addf %117, %118 : vector<128x128xf32>
    %c0_51 = arith.constant 0 : index
    %c0_52 = arith.constant 0 : index
    %120 = vector.load %arg11[%c0_51, %c0_52] : memref<128x128xf32, #tpu.memory_space<vmem>>, vector<128x128xf32>
    tpu.vector_store %arg11[%c0_51, %c0_52], %119 {strides = array<i32>} : memref<128x128xf32, #tpu.memory_space<vmem>>, vector<128x128xf32>,
    return
  }
  func.func @transform_0(%arg0: i32) -> (i32, i32) {
    %c0_i32 = arith.constant 0 : i32
    %c0_i32_0 = arith.constant 0 : i32
    return %arg0, %c0_i32 : i32, i32
  }
  func.func @transform_1(%arg0: i32) -> (i32, i32) {
    %c0_i32 = arith.constant 0 : i32
    %c0_i32_0 = arith.constant 0 : i32
    return %arg0, %c0_i32 : i32, i32
  }
  func.func @transform_2(%arg0: i32) -> (i32, i32) {
    %c0_i32 = arith.constant 0 : i32
    %c0_i32_0 = arith.constant 0 : i32
    return %arg0, %c0_i32 : i32, i32
  }
  func.func @transform_3(%arg0: i32) -> (i32, i32) {
    %c0_i32 = arith.constant 0 : i32
    %c0_i32_0 = arith.constant 0 : i32
    %c0_i32_1 = arith.constant 0 : i32
    return %c0_i32, %c0_i32_0 : i32, i32
  }
  func.func @transform_4(%arg0: i32) -> (i32, i32) {
    %c0_i32 = arith.constant 0 : i32
    %c0_i32_0 = arith.constant 0 : i32
    %c0_i32_1 = arith.constant 0 : i32
    return %c0_i32, %c0_i32_0 : i32, i32
  }
  func.func @transform_5(%arg0: i32) -> (i32, i32, i32) {
    %c0_i32 = arith.constant 0 : i32
    %c0_i32_0 = arith.constant 0 : i32
    %c0_i32_1 = arith.constant 0 : i32
    %c0_i32_2 = arith.constant 0 : i32
    return %c0_i32, %c0_i32_0, %c0_i32_1 : i32, i32, i32
  }
  func.func @transform_6(%arg0: i32) -> (i32, i32) {
    %c0_i32 = arith.constant 0 : i32
    %c0_i32_0 = arith.constant 0 : i32
    %c0_i32_1 = arith.constant 0 : i32
    return %c0_i32, %c0_i32_0 : i32, i32
  }
  func.func @transform_7(%arg0: i32) -> (i32, i32, i32) {
    %c0_i32 = arith.constant 0 : i32
    %c0_i32_0 = arith.constant 0 : i32
    %c0_i32_1 = arith.constant 0 : i32
    %c0_i32_2 = arith.constant 0 : i32
    return %c0_i32, %c0_i32_0, %c0_i32_1 : i32, i32, i32
  }
  func.func @transform_8(%arg0: i32) -> (i32, i32) {
    %c0_i32 = arith.constant 0 : i32
    %c0_i32_0 = arith.constant 0 : i32
    %c0_i32_1 = arith.constant 0 : i32
    return %c0_i32, %c0_i32_0 : i32, i32
  }
  func.func @transform_9(%arg0: i32) -> (i32, i32) {
    %c0_i32 = arith.constant 0 : i32
    %c0_i32_0 = arith.constant 0 : i32
    return %arg0, %c0_i32 : i32, i32
  }
  func.func @transform_10(%arg0: i32) -> (i32, i32) {
    %c0_i32 = arith.constant 0 : i32
    %c0_i32_0 = arith.constant 0 : i32
    return %arg0, %c0_i32 : i32, i32
  }
}

</mosaic_0001>

<bundles_post_ra>
// kernel: mkr_rs_forward.1
= control target key start
LH: loop header
LB: loop body
LE: loop exit
PB: predicated region body
PF: predicated region fallthrough
CT: control target
= control target key end

     0   :  { %s2822_s13 = smov 0   ;;  %s4481_s0 = inlined_call_operand.vmem [shape: f32[256,128], index: 0, kind: input, shape index: {}]   ;;  %s4482_s1 = inlined_call_operand.vmem [shape: f32[256,128], index: 1, kind: input, shape index: {}]   ;;  %s4483_s2 = inlined_call_operand.vmem [shape: f32[256,256], index: 2, kind: input, shape index: {}]   ;;  %s4484_s3 = inlined_call_operand.vmem [shape: f32[8,128], index: 3, kind: input, shape index: {}]   ;;  %s4485_s4 = inlined_call_operand.vmem [shape: f32[4,128], index: 4, kind: input, shape index: {}]   ;;  %s4486_s5 = inlined_call_operand.vmem [shape: f32[2,256,256], index: 5, kind: input, shape index: {}]   ;;  %s4487_s6 = inlined_call_operand.vmem [shape: f32[2,256], index: 6, kind: input, shape index: {}]   ;;  %s4488_s7 = inlined_call_operand.vmem [shape: f32[2,256,256], index: 7, kind: input, shape index: {}]   ;;  %s4489_s8 = inlined_call_operand.vmem [shape: f32[2,256], index: 8, kind: input, shape index: {}]   ;;  %s4490_s9 = inlined_call_operand.vmem [shape: f32[256,128], index: 9, kind: output, shape index: {0}]   ;;  %s4491_s10 = inlined_call_operand.vmem [shape: f32[256,128], index: 10, kind: output, shape index: {1}]  }
   0x1 LB: > { %s2568_s14 = sadd.s32 4294967295, %s2765_s13   ;;  %p2572_p0 = scmp.ge.s32.totalorder %s2765_s13, 1  ;;  %s2765_s13 = sphi %s2822_s13, %s21_s13  }
   0x2   : > { %p339_p1 = scmp.lt.s32.totalorder %s2765_s13, 3 }
   0x4   : > { %p340_p2 = pnand %p2572_p0, %p339_p1 }
   0x5   : > { %s2573_s21 = sshll.u32 (!%p340_p2), %s2568_s14, 4 }
   0x6   : > { %343 = sbr.rel (%p340_p2) target bundleno = 791 (0x317), region = 56  ;;  %p394_p3 = scmp.lt.s32.totalorder (!%p340_p2), %s2573_s21, 31 }
   0xb   : > { %v851_v0 = vld [vmem:[%s4486_s5 + $0xf8] sm:$0xff]  ;;  %v849_v1 = vld [vmem:[%s4486_s5 + $0xe8] sm:$0xff]  ;;  %v850_v3 = vld [vmem:[%s4486_s5 + $0xf0] sm:$0xff]  ;;  %s4493_s21 = smov (!%p394_p3, %s2573_s21), 31 }
   0xc   : > { %v883_v2 = vld [vmem:[%s4486_s5 + $0x1f8] sm:$0xff]  ;;  %1020 = vmatpush.msra.mxu2 %v851_v0  ;;  %v881_v4 = vld [vmem:[%s4486_s5 + $0x1e8] sm:$0xff]  ;;  %890 = vmatpush.msra.mxu0 %v850_v3  ;;  %v848_v6 = vld [vmem:[%s4486_s5 + $0xe0] sm:$0xff]  ;;  %s2875_s26 = sshll.u32 %s4493_s21, 3  ;;  %s2716_s27 = sshll.u32 %s4493_s21, 4 }
   0xd   : > { %1085 = vmatpush.msra.mxu3 %v883_v2  ;;  %v847_v5 = vld [vmem:[%s4486_s5 + $0xd8] sm:$0xff]  ;;  %v882_v7 = vld [vmem:[%s4486_s5 + $0x1f0] sm:$0xff]  ;;  %v880_v10 = vld [vmem:[%s4486_s5 + $0x1e0] sm:$0xff]  ;;  %s2886_s11 = scalar_lea.vmem %s4482_s1, %s2875_s26  ;;  %s2930_s15 = scalar_lea.vmem %s4481_s0, %s2875_s26 }
   0xe   : > { %1021 = vmatpush.msra.mxu2 %v849_v1  ;;  %v879_v8 = vld [vmem:[%s4486_s5 + $0x1d8] sm:$0xff]  ;;  %v846_v9 = vld [vmem:[%s4486_s5 + $0xd0] sm:$0xff]  ;;  %891 = vmatpush.msra.mxu0 %v848_v6  ;;  %v845_v11 = vld [vmem:[%s4486_s5 + $0xc8] sm:$0xff]  ;;  %s3069_s16 = scalar_lea.vmem %s4483_s2, %s2716_s27  ;;  %s3998_s25 = scalar_lea.vmem %s4490_s9, %s2875_s26 }
   0xf   : > { %1086 = vmatpush.msra.mxu3 %v881_v4  ;;  %955 = vmatpush.msra.mxu1 %v882_v7  ;;  %v877_v12 = vld [vmem:[%s4486_s5 + $0x1c8] sm:$0xff]  ;;  %v843_v13 = vld [vmem:[%s4486_s5 + $0xb8] sm:$0xff]  ;;  %v2880_v14 = vld [vmem:[%s4484_s3] ss:$0 sm:$0xff]  ;;  %s4430_s23 = scalar_lea.vmem %s4491_s10, %s2875_s26 }
  0x10   : > { %1022 = vmatpush.msra.mxu2 %v847_v5  ;;  %892 = vmatpush.msra.mxu0 %v846_v9  ;;  %v2891_v15 = vld [vmem:[%s4484_s3 + $0x2] ss:$0 sm:$0xff]  ;;  %v878_v17 = vld [vmem:[%s4486_s5 + $0x1d0] sm:$0xff]  ;;  %v2900_v18 = vld [vmem:[%s2886_s11 + $0x8] sm:$0xff] }
  0x11   : > { %1087 = vmatpush.msra.mxu3 %v879_v8  ;;  %956 = vmatpush.msra.mxu1 %v880_v10  ;;  %v844_v16 = vld [vmem:[%s4486_s5 + $0xc0] sm:$0xff]  ;;  %v496_v20 = vmul.f32 %v2880_v14, %v2900_v18  ;;  %v841_v23 = vld [vmem:[%s4486_s5 + $0xa8] sm:$0xff]  ;;  %v875_v24 = vld [vmem:[%s4486_s5 + $0x1b8] sm:$0xff]  ;;  %v594_v63 = vmul.f32 %v2891_v15, %v2900_v18 }
  0x12   : > { %1023 = vmatpush.msra.mxu2 %v845_v11  ;;  %v2903_v19 = vld [vmem:[%s2886_s11] sm:$0xff]  ;;  %893 = vmatpush.msra.mxu0 %v844_v16  ;;  %v842_v25 = vld [vmem:[%s4486_s5 + $0xb0] sm:$0xff]  ;;  %v839_v27 = vld [vmem:[%s4486_s5 + $0x98] sm:$0xff] }
  0x13   : > { %1088 = vmatpush.msra.mxu3 %v877_v12  ;;  %v593_v21 = vmul.f32 %v2891_v15, %v2903_v19  ;;  %v495_v22 = vmul.f32 %v2880_v14, %v2903_v19  ;;  %957 = vmatpush.msra.mxu1 %v878_v17  ;;  %v876_v26 = vld [vmem:[%s4486_s5 + $0x1c0] sm:$0xff]  ;;  %v873_v28 = vld [vmem:[%s4486_s5 + $0x1a8] sm:$0xff]  ;;  %v874_v30 = vld [vmem:[%s4486_s5 + $0x1b0] sm:$0xff] }
  0x14   : > { %1024 = vmatpush.msra.mxu2 %v843_v13  ;;  %513 = vadd.xlane.f32.xlu2 %v496_v20  ;;  %v840_v29 = vld [vmem:[%s4486_s5 + $0xa0] sm:$0xff]  ;;  %v837_v31 = vld [vmem:[%s4486_s5 + $0x88] sm:$0xff]  ;;  %v871_v32 = vld [vmem:[%s4486_s5 + $0x198] sm:$0xff] }
  0x15   : > { %1089 = vmatpush.msra.mxu3 %v875_v24  ;;  %609 = vadd.xlane.f32.xlu1 %v593_v21  ;;  %v838_v33 = vld [vmem:[%s4486_s5 + $0x90] sm:$0xff]  ;;  %v872_v34 = vld [vmem:[%s4486_s5 + $0x1a0] sm:$0xff]  ;;  %v2954_v35 = vld [vmem:[%s2930_s15 + $0x8] sm:$0xff] }
  0x16   : > { %511 = vadd.xlane.f32.xlu0 %v495_v22  ;;  %1025 = vmatpush.msra.mxu2 %v841_v23  ;;  %v2959_v36 = vld [vmem:[%s4484_s3 + $0x1] ss:$0 sm:$0xff]  ;;  %v835_v38 = vld [vmem:[%s4486_s5 + $0x78] sm:$0xff]  ;;  %v869_v39 = vld [vmem:[%s4486_s5 + $0x188] sm:$0xff] }
  0x17   : > { %894 = vmatpush.msra.mxu0 %v842_v25  ;;  %958 = vmatpush.msra.mxu1 %v876_v26  ;;  %v2962_v37 = vld [vmem:[%s2930_s15] sm:$0xff]  ;;  %v545_v41 = vmul.f32 %v2959_v36, %v2954_v35  ;;  %v870_v45 = vld [vmem:[%s4486_s5 + $0x190] sm:$0xff]  ;;  %v833_v46 = vld [vmem:[%s4486_s5 + $0x68] sm:$0xff] }
  0x18   : > { %1026 = vmatpush.msra.mxu2 %v839_v27  ;;  %1090 = vmatpush.msra.mxu3 %v873_v28  ;;  %v2973_v40 = vld [vmem:[%s4484_s3 + $0x3] ss:$0 sm:$0xff]  ;;  %v544_v42 = vmul.f32 %v2959_v36, %v2962_v37  ;;  %v867_v47 = vld [vmem:[%s4486_s5 + $0x178] sm:$0xff]  ;;  %v834_v48 = vld [vmem:[%s4486_s5 + $0x70] sm:$0xff] }
  0x19   : > { %895 = vmatpush.msra.mxu0 %v840_v29  ;;  %959 = vmatpush.msra.mxu1 %v874_v30  ;;  %v642_v43 = vmul.f32 %v2973_v40, %v2962_v37  ;;  %v836_v44 = vld [vmem:[%s4486_s5 + $0x80] sm:$0xff]  ;;  %v831_v50 = vld [vmem:[%s4486_s5 + $0x58] sm:$0xff]  ;;  %v865_v51 = vld [vmem:[%s4486_s5 + $0x168] sm:$0xff]  ;;  %v643_v62 = vmul.f32 %v2973_v40, %v2954_v35 }
  0x1a   : > { %1027 = vmatpush.msra.mxu2 %v837_v31  ;;  %1091 = vmatpush.msra.mxu3 %v871_v32  ;;  %v868_v49 = vld [vmem:[%s4486_s5 + $0x180] sm:$0xff]  ;;  %v3009_v53 = vld [vmem:[%s2886_s11 + $0x10] sm:$0xff]  ;;  %v829_v55 = vld [vmem:[%s4486_s5 + $0x48] sm:$0xff] }
  0x1b   : > { %896 = vmatpush.msra.mxu0 %v838_v33  ;;  %960 = vmatpush.msra.mxu1 %v872_v34  ;;  %v832_v52 = vld [vmem:[%s4486_s5 + $0x60] sm:$0xff]  ;;  %v866_v54 = vld [vmem:[%s4486_s5 + $0x170] sm:$0xff]  ;;  %v863_v56 = vld [vmem:[%s4486_s5 + $0x158] sm:$0xff]  ;;  %v497_v60 = vmul.f32 %v2880_v14, %v3009_v53  ;;  %v595_v23 = vmul.f32 %v2891_v15, %v3009_v53 }
  0x1c   : > { %1028 = vmatpush.msra.mxu2 %v835_v38  ;;  %1092 = vmatpush.msra.mxu3 %v869_v39  ;;  %v830_v57 = vld [vmem:[%s4486_s5 + $0x50] sm:$0xff]  ;;  %v864_v58 = vld [vmem:[%s4486_s5 + $0x160] sm:$0xff]  ;;  %v827_v59 = vld [vmem:[%s4486_s5 + $0x38] sm:$0xff] }
  0x1d   : > { %562 = vadd.xlane.f32.xlu2 %v545_v41  ;;  %658 = vadd.xlane.f32.xlu1 %v642_v43  ;;  %v861_v61 = vld [vmem:[%s4486_s5 + $0x148] sm:$0xff]  ;;  %v828_v0 = vld [vmem:[%s4486_s5 + $0x40] sm:$0xff]  ;;  %v862_v1 = vld [vmem:[%s4486_s5 + $0x150] sm:$0xff] }
  0x1e   : > { %560 = vadd.xlane.f32.xlu0 %v544_v42  ;;  %897 = vmatpush.msra.mxu0 %v836_v44  ;;  %v825_v2 = vld [vmem:[%s4486_s5 + $0x28] sm:$0xff]  ;;  %v859_v3 = vld [vmem:[%s4486_s5 + $0x138] sm:$0xff]  ;;  %v826_v4 = vld [vmem:[%s4486_s5 + $0x30] sm:$0xff] }
  0x1f   : > { %961 = vmatpush.msra.mxu1 %v870_v45  ;;  %1029 = vmatpush.msra.mxu2 %v833_v46  ;;  %v860_v5 = vld [vmem:[%s4486_s5 + $0x140] sm:$0xff]  ;;  %v823_v6 = vld [vmem:[%s4486_s5 + $0x18] sm:$0xff]  ;;  %v857_v7 = vld [vmem:[%s4486_s5 + $0x128] sm:$0xff] }
  0x20   : > { %1093 = vmatpush.msra.mxu3 %v867_v47  ;;  %898 = vmatpush.msra.mxu0 %v834_v48  ;;  %v824_v8 = vld [vmem:[%s4486_s5 + $0x20] sm:$0xff]  ;;  %v858_v9 = vld [vmem:[%s4486_s5 + $0x130] sm:$0xff]  ;;  %v821_v10 = vld [vmem:[%s4486_s5 + $0x8] sm:$0xff] }
  0x21   : > { %962 = vmatpush.msra.mxu1 %v868_v49  ;;  %1030 = vmatpush.msra.mxu2 %v831_v50  ;;  %v855_v11 = vld [vmem:[%s4486_s5 + $0x118] sm:$0xff]  ;;  %v3081_v12 = vld [vmem:[%s2930_s15 + $0x10] sm:$0xff]  ;;  %v456_v13 = vld [vmem:[%s3069_s16] sm:$0xff] }
  0x22   : > { %1094 = vmatpush.msra.mxu3 %v865_v51  ;;  %899 = vmatpush.msra.mxu0 %v832_v52  ;;  %v822_v16 = vld [vmem:[%s4486_s5 + $0x10] sm:$0xff]  ;;  %v856_v17 = vld [vmem:[%s4486_s5 + $0x120] sm:$0xff]  ;;  %v853_v20 = vld [vmem:[%s4486_s5 + $0x108] sm:$0xff]  ;;  %v644_v21 = vmul.f32 %v2973_v40, %v3081_v12  ;;  %v546_v24 = vmul.f32 %v2959_v36, %v3081_v12 }
  0x23   : > { %963 = vmatpush.msra.mxu1 %v866_v54  ;;  %1031 = vmatpush.msra.mxu2 %v829_v55  ;;  %v457_v22 = vld [vmem:[%s3069_s16 + $0x8] sm:$0xff]  ;;  %v820_v25 = vld [vmem:[%s4486_s5] sm:$0xff]  ;;  %v854_v26 = vld [vmem:[%s4486_s5 + $0x110] sm:$0xff] }
  0x24   : > { %1095 = vmatpush.msra.mxu3 %v863_v56  ;;  %900 = vmatpush.msra.mxu0 %v830_v57  ;;  %v852_v27 = vld [vmem:[%s4486_s5 + $0x100] sm:$0xff]  ;;  %v3110_v28 = vld [vmem:[%s2886_s11 + $0x18] sm:$0xff]  ;;  %v458_v30 = vld [vmem:[%s3069_s16 + $0x10] sm:$0xff] }
  0x25   : > { %964 = vmatpush.msra.mxu1 %v864_v58  ;;  %1032 = vmatpush.msra.mxu2 %v827_v59  ;;  %v3113_v29 = vld [vmem:[%s2930_s15 + $0x18] sm:$0xff]  ;;  %v596_v31 = vmul.f32 %v2891_v15, %v3110_v28  ;;  %v498_v34 = vmul.f32 %v2880_v14, %v3110_v28  ;;  %v3124_v38 = vld [vmem:[%s2930_s15 + $0x20] sm:$0xff]  ;;  %v461_v43 = vld [vmem:[%s3069_s16 + $0x28] sm:$0xff] }
  0x26   : > { %1096 = vmatpush.msra.mxu3 %v861_v61  ;;  %515 = vadd.xlane.f32.xlu2 %v497_v60  ;;  %v459_v32 = vld [vmem:[%s3069_s16 + $0x18] sm:$0xff]  ;;  %v547_v33 = vmul.f32 %v2959_v36, %v3113_v29  ;;  %v3127_v39 = vld [vmem:[%s2886_s11 + $0x20] sm:$0xff]  ;;  %v548_v42 = vmul.f32 %v2959_v36, %v3124_v38  ;;  %v645_v45 = vmul.f32 %v2973_v40, %v3113_v29  ;;  %v3138_v46 = vld [vmem:[%s2886_s11 + $0x28] sm:$0xff] }
  0x27   : > { %660 = vadd.xlane.f32.xlu1 %v643_v62  ;;  %611 = vadd.xlane.f32.xlu0 %v594_v63  ;;  %v460_v41 = vld [vmem:[%s3069_s16 + $0x20] sm:$0xff]  ;;  %v499_v44 = vmul.f32 %v2880_v14, %v3127_v39  ;;  %v462_v47 = vld [vmem:[%s3069_s16 + $0x30] sm:$0xff]  ;;  %v500_v48 = vmul.f32 %v2880_v14, %v3138_v46  ;;  %v463_v49 = vld [vmem:[%s3069_s16 + $0x38] sm:$0xff]  ;;  %v646_v50 = vmul.f32 %v2973_v40, %v3124_v38 }
  0x28   : > { %901 = vmatpush.msra.mxu0 %v828_v0  ;;  %965 = vmatpush.msra.mxu1 %v862_v1  ;;  %v597_v51 = vmul.f32 %v2891_v15, %v3127_v39  ;;  %v3149_v52 = vld [vmem:[%s2930_s15 + $0x28] sm:$0xff]  ;;  %v464_v54 = vld [vmem:[%s3069_s16 + $0x40] sm:$0xff]  ;;  %v598_v58 = vmul.f32 %v2891_v15, %v3138_v46  ;;  %v3160_v59 = vld [vmem:[%s2886_s11 + $0x30] sm:$0xff] }
  0x29   : > { %1033 = vmatpush.msra.mxu2 %v825_v2  ;;  %1097 = vmatpush.msra.mxu3 %v859_v3  ;;  %v647_v55 = vmul.f32 %v2973_v40, %v3149_v52  ;;  %v465_v56 = vld [vmem:[%s3069_s16 + $0x48] sm:$0xff]  ;;  %v549_v57 = vmul.f32 %v2959_v36, %v3149_v52  ;;  %v3163_v60 = vld [vmem:[%s2930_s15 + $0x30] sm:$0xff]  ;;  %v599_v62 = vmul.f32 %v2891_v15, %v3160_v59  ;;  %v467_v63 = vld [vmem:[%s3069_s16 + $0x58] sm:$0xff] }
  0x2a   : > { %902 = vmatpush.msra.mxu0 %v826_v4  ;;  %966 = vmatpush.msra.mxu1 %v860_v5  ;;  %v466_v61 = vld [vmem:[%s3069_s16 + $0x50] sm:$0xff]  ;;  %v501_v0 = vmul.f32 %v2880_v14, %v3160_v59  ;;  %v550_v1 = vmul.f32 %v2959_v36, %v3163_v60  ;;  %v3174_v2 = vld [vmem:[%s2930_s15 + $0x38] sm:$0xff]  ;;  %v468_v3 = vld [vmem:[%s3069_s16 + $0x60] sm:$0xff] }
  0x2b   : > { %1034 = vmatpush.msra.mxu2 %v823_v6  ;;  %1098 = vmatpush.msra.mxu3 %v857_v7  ;;  %v3178_v4 = vld [vmem:[%s2886_s11 + $0x38] sm:$0xff]  ;;  %v469_v7 = vld [vmem:[%s3069_s16 + $0x68] sm:$0xff] }
  0x2c   : > { %903 = vmatpush.msra.mxu0 %v824_v8  ;;  %967 = vmatpush.msra.mxu1 %v858_v9  ;;  %v2615_v5 = vld [vmem:[%s4486_s5 + $0x2f8] sm:$0xff]  ;;  %v600_v6 = vmul.f32 %v2891_v15, %v3178_v4  ;;  %v648_v8 = vmul.f32 %v2973_v40, %v3163_v60  ;;  %v551_v9 = vmul.f32 %v2959_v36, %v3174_v2 }
  0x2d   : > { %1035 = vmatpush.msra.mxu2 %v821_v10  ;;  %1099 = vmatpush.msra.mxu3 %v855_v11  ;;  %v2647_v10 = vld [vmem:[%s4486_s5 + $0x3f8] sm:$0xff]  ;;  %v3194_v11 = vld [vmem:[%s2930_s15 + $0x40] sm:$0xff] }
  0x2e   : > { %1036 = vmatmul.f32.vlgmr.msra.gmra.mxu2 %v456_v13  ;;  %904 = vmatpush.msra.mxu0 %v822_v16  ;;  %v3198_v16 = vld [vmem:[%s2886_s11 + $0x40] sm:$0xff] }
  0x2f   : > { %968 = vmatpush.msra.mxu1 %v856_v17  ;;  %1100 = vmatpush.msra.mxu3 %v853_v20  ;;  %v2613_v17 = vld [vmem:[%s4486_s5 + $0x2e8] sm:$0xff]  ;;  %v601_v20 = vmul.f32 %v2891_v15, %v3198_v16 }
  0x30   : > { %1101 = vmatmul.f32.vlgmr.msra.gmra.mxu3 %v457_v22  ;;  %662 = vadd.xlane.f32.xlu2 %v644_v21  ;;  %v471_v21 = vld [vmem:[%s3069_s16 + $0x78] sm:$0xff] }
  0x31   : > { %613 = vadd.xlane.f32.xlu1 %v595_v23  ;;  %564 = vadd.xlane.f32.xlu0 %v546_v24  ;;  %v552_v23 = vmul.f32 %v2959_v36, %v3194_v11  ;;  %v2645_v24 = vld [vmem:[%s4486_s5 + $0x3e8] sm:$0xff] }
  0x32   : > { %905 = vmatpush.msra.mxu0 %v820_v25  ;;  %969 = vmatpush.msra.mxu1 %v854_v26  ;;  %v472_v25 = vld [vmem:[%s3069_s16 + $0x80] sm:$0xff]  ;;  %v3215_v26 = vld [vmem:[%s2930_s15 + $0x48] sm:$0xff] }
  0x33   : > { %906 = vmatmul.f32.vlgmr.msra.gmra.mxu0 %v456_v13  ;;  %1550 = vmatpush.msrb.mxu2 %v2615_v5  ;;  %v470_v13 = vld [vmem:[%s3069_s16 + $0x70] sm:$0xff]  ;;  %v2637_v5 = vld [vmem:[%s4486_s5 + $0x3a8] sm:$0xff] }
  0x34   : > { %970 = vmatpush.msra.mxu1 %v852_v27  ;;  %1615 = vmatpush.msrb.mxu3 %v2647_v10  ;;  %v3218_v27 = vld [vmem:[%s2886_s11 + $0x48] sm:$0xff]  ;;  %v2635_v10 = vld [vmem:[%s4486_s5 + $0x398] sm:$0xff] }
  0x35   : > { %971 = vmatmul.f32.vlgmr.msra.gmra.mxu1 %v457_v22  ;;  %1551 = vmatpush.msrb.mxu2 %v2613_v17  ;;  %v502_v22 = vmul.f32 %v2880_v14, %v3178_v4  ;;  %v2633_v17 = vld [vmem:[%s4486_s5 + $0x388] sm:$0xff] }
  0x36   : > { %1039 = vmatmul.f32.gmra.mxu2 %v458_v30  ;;  %1616 = vmatpush.msrb.mxu3 %v2645_v24 }
  0x38   : > { %1104 = vmatmul.f32.gmra.mxu3 %v459_v32  ;;  %615 = vadd.xlane.f32.xlu2 %v596_v31  ;;  %v2611_v31 = vld [vmem:[%s4486_s5 + $0x2d8] sm:$0xff] }
  0x39   : > { %566 = vadd.xlane.f32.xlu1 %v547_v33  ;;  %517 = vadd.xlane.f32.xlu0 %v498_v34  ;;  %v473_v33 = vld [vmem:[%s3069_s16 + $0x88] sm:$0xff]  ;;  %v649_v34 = vmul.f32 %v2973_v40, %v3174_v2 }
  0x3a   : > { %1552 = vmatpush.msrb.mxu2 %v2611_v31  ;;  %v480_v31 = vld [vmem:[%s3069_s16 + $0xc0] sm:$0xff] }
  0x3b   : > { %909 = vmatmul.f32.gmra.mxu0 %v458_v30  ;;  %v2614_v30 = vld [vmem:[%s4486_s5 + $0x2f0] sm:$0xff] }
  0x3c   : > { %1420 = vmatpush.msrb.mxu0 %v2614_v30  ;;  %v2606_v30 = vld [vmem:[%s4486_s5 + $0x2b0] sm:$0xff] }
  0x3d   : > { %974 = vmatmul.f32.gmra.mxu1 %v459_v32  ;;  %v602_v32 = vmul.f32 %v2891_v15, %v3218_v27 }
  0x3e   : > { %1042 = vmatmul.f32.gmra.mxu2 %v460_v41 }
  0x40   : > { %1107 = vmatmul.f32.gmra.mxu3 %v461_v43  ;;  %568 = vadd.xlane.f32.xlu2 %v548_v42  ;;  %v2646_v42 = vld [vmem:[%s4486_s5 + $0x3f0] sm:$0xff] }
  0x41   : > { %519 = vadd.xlane.f32.xlu1 %v499_v44  ;;  %664 = vadd.xlane.f32.xlu0 %v645_v45  ;;  %v3240_v44 = vld [vmem:[%s2886_s11 + $0x50] sm:$0xff] }
  0x42   : > { %1485 = vmatpush.msrb.mxu1 %v2646_v42  ;;  %v3243_v45 = vld [vmem:[%s2930_s15 + $0x50] sm:$0xff]  ;;  %v481_v42 = vld [vmem:[%s3069_s16 + $0xc8] sm:$0xff] }
  0x43   : > { %912 = vmatmul.f32.gmra.mxu0 %v460_v41  ;;  %v553_v41 = vmul.f32 %v2959_v36, %v3215_v26 }
  0x45   : > { %977 = vmatmul.f32.gmra.mxu1 %v461_v43  ;;  %v2643_v43 = vld [vmem:[%s4486_s5 + $0x3d8] sm:$0xff] }
  0x46   : > { %1045 = vmatmul.f32.gmra.mxu2 %v462_v47  ;;  %1617 = vmatpush.msrb.mxu3 %v2643_v43  ;;  %v2604_v43 = vld [vmem:[%s4486_s5 + $0x2a0] sm:$0xff] }
  0x48   : > { %1110 = vmatmul.f32.gmra.mxu3 %v463_v49  ;;  %521 = vadd.xlane.f32.xlu2 %v500_v48  ;;  %v603_v48 = vmul.f32 %v2891_v15, %v3240_v44  ;;  %v2644_v15 = vld [vmem:[%s4486_s5 + $0x3e0] sm:$0xff] }
  0x49   : > { %666 = vadd.xlane.f32.xlu1 %v646_v50  ;;  %617 = vadd.xlane.f32.xlu0 %v597_v51  ;;  %v503_v50 = vmul.f32 %v2880_v14, %v3198_v16  ;;  %v475_v51 = vld [vmem:[%s3069_s16 + $0x98] sm:$0xff] }
  0x4a   : > { %1486 = vmatpush.msrb.mxu1 %v2644_v15 }
  0x4b   : > { %915 = vmatmul.f32.gmra.mxu0 %v462_v47  ;;  %v474_v47 = vld [vmem:[%s3069_s16 + $0x90] sm:$0xff] }
  0x4d   : > { %980 = vmatmul.f32.gmra.mxu1 %v463_v49  ;;  %v2612_v49 = vld [vmem:[%s4486_s5 + $0x2e0] sm:$0xff] }
  0x4e   : > { %1048 = vmatmul.f32.gmra.mxu2 %v464_v54  ;;  %1421 = vmatpush.msrb.mxu0 %v2612_v49 }
  0x50   : > { %1113 = vmatmul.f32.gmra.mxu3 %v465_v56  ;;  %668 = vadd.xlane.f32.xlu2 %v647_v55  ;;  %v2609_v55 = vld [vmem:[%s4486_s5 + $0x2c8] sm:$0xff] }
  0x51   : > { %570 = vadd.xlane.f32.xlu0 %v549_v57  ;;  %619 = vadd.xlane.f32.xlu1 %v598_v58  ;;  %v650_v57 = vmul.f32 %v2973_v40, %v3194_v11  ;;  %v477_v58 = vld [vmem:[%s3069_s16 + $0xa8] sm:$0xff] }
  0x52   : > { %1553 = vmatpush.msrb.mxu2 %v2609_v55 }
  0x53   : > { %918 = vmatmul.f32.gmra.mxu0 %v464_v54  ;;  %v554_v54 = vmul.f32 %v2959_v36, %v3243_v45  ;;  %v2641_v36 = vld [vmem:[%s4486_s5 + $0x3c8] sm:$0xff] }
  0x54   : > { %1618 = vmatpush.msrb.mxu3 %v2641_v36  ;;  %v3354_v36 = vld [vmem:[%s4485_s4 + $0x1] ss:$0 sm:$0xff] }
  0x55   : > { %983 = vmatmul.f32.gmra.mxu1 %v465_v56  ;;  %v476_v56 = vld [vmem:[%s3069_s16 + $0xa0] sm:$0xff] }
  0x56   : > { %1051 = vmatmul.f32.gmra.mxu2 %v466_v61 }
  0x58   : > { %1116 = vmatmul.f32.gmra.mxu3 %v467_v63  ;;  %621 = vadd.xlane.f32.xlu2 %v599_v62  ;;  %v2610_v62 = vld [vmem:[%s4486_s5 + $0x2d0] sm:$0xff] }
  0x59   : > { %523 = vadd.xlane.f32.xlu0 %v501_v0  ;;  %572 = vadd.xlane.f32.xlu1 %v550_v1  ;;  %v2639_v0 = vld [vmem:[%s4486_s5 + $0x3b8] sm:$0xff]  ;;  %v2642_v1 = vld [vmem:[%s4486_s5 + $0x3d0] sm:$0xff] }
  0x5a   : > { %1422 = vmatpush.msrb.mxu0 %v2610_v62  ;;  %1619 = vmatpush.msrb.mxu3 %v2639_v0  ;;  %v3367_v62 = vld [vmem:[%s4485_s4] ss:$0 sm:$0xff] }
  0x5b   : > { %921 = vmatmul.f32.gmra.mxu0 %v466_v61  ;;  %v2607_v61 = vld [vmem:[%s4486_s5 + $0x2b8] sm:$0xff]  ;;  %1487 = vmatpush.msrb.mxu1 %v2642_v1  ;;  %v3375_v1 = vld [vmem:[%s4484_s3 + $0x4] ss:$0 sm:$0xff] }
  0x5c   : > { %1554 = vmatpush.msrb.mxu2 %v2607_v61  ;;  %1620 = vmatpush.msrb.mxu3 %v2637_v5 }
  0x5d   : > { %986 = vmatmul.f32.gmra.mxu1 %v467_v63  ;;  %v2605_v63 = vld [vmem:[%s4486_s5 + $0x2a8] sm:$0xff] }
  0x5e   : > { %1054 = vmatmul.f32.gmra.mxu2 %v468_v3  ;;  %1621 = vmatpush.msrb.mxu3 %v2635_v10  ;;  %v505_v10 = vmul.f32 %v2880_v14, %v3240_v44  ;;  %v2623_v44 = vld [vmem:[%s4486_s5 + $0x338] sm:$0xff] }
  0x5f   : > { %1555 = vmatpush.msrb.mxu2 %v2605_v63  ;;  %v2625_v63 = vld [vmem:[%s4486_s5 + $0x348] sm:$0xff] }
  0x60   : > { %1119 = vmatmul.f32.gmra.mxu3 %v469_v7  ;;  %623 = vadd.xlane.f32.xlu2 %v600_v6  ;;  %v478_v6 = vld [vmem:[%s3069_s16 + $0xb0] sm:$0xff] }
  0x61   : > { %670 = vadd.xlane.f32.xlu0 %v648_v8  ;;  %574 = vadd.xlane.f32.xlu1 %v551_v9  ;;  %v479_v8 = vld [vmem:[%s3069_s16 + $0xb8] sm:$0xff]  ;;  %v2601_v9 = vld [vmem:[%s4486_s5 + $0x288] sm:$0xff] }
  0x62   : > { %1622 = vmatpush.msrb.mxu3 %v2633_v17  ;;  %v483_v17 = vld [vmem:[%s3069_s16 + $0xd8] sm:$0xff] }
  0x63   : > { %924 = vmatmul.f32.gmra.mxu0 %v468_v3  ;;  %v2603_v3 = vld [vmem:[%s4486_s5 + $0x298] sm:$0xff] }
  0x64   : > { %1556 = vmatpush.msrb.mxu2 %v2603_v3 }
  0x65   : > { %989 = vmatmul.f32.gmra.mxu1 %v469_v7  ;;  %v504_v7 = vmul.f32 %v2880_v14, %v3218_v27  ;;  %v2631_v27 = vld [vmem:[%s4486_s5 + $0x378] sm:$0xff] }
  0x66   : > { %1057 = vmatmul.f32.gmra.mxu2 %v470_v13  ;;  %1623 = vmatpush.msrb.mxu3 %v2631_v27 }
  0x67   : > { %1557 = vmatpush.msrb.mxu2 %v2601_v9  ;;  %v2589_v9 = vld [vmem:[%s4486_s5 + $0x228] sm:$0xff] }
  0x68   : > { %1122 = vmatmul.f32.gmra.mxu3 %v471_v21  ;;  %625 = vadd.xlane.f32.xlu2 %v601_v20 }
  0x69   : > { %525 = vadd.xlane.f32.xlu0 %v502_v22  ;;  %576 = vadd.xlane.f32.xlu1 %v552_v23  ;;  %v2608_v22 = vld [vmem:[%s4486_s5 + $0x2c0] sm:$0xff] }
  0x6a   : > { %v2640_v23 = vld [vmem:[%s4486_s5 + $0x3c0] sm:$0xff]  ;;  %1423 = vmatpush.msrb.mxu0 %v2608_v22 }
  0x6b   : > { %927 = vmatmul.f32.gmra.mxu0 %v470_v13  ;;  %v2599_v13 = vld [vmem:[%s4486_s5 + $0x278] sm:$0xff]  ;;  %1488 = vmatpush.msrb.mxu1 %v2640_v23 }
  0x6c   : > { %1558 = vmatpush.msrb.mxu2 %v2599_v13  ;;  %1424 = vmatpush.msrb.mxu0 %v2606_v30  ;;  %v2587_v30 = vld [vmem:[%s4486_s5 + $0x218] sm:$0xff] }
  0x6d   : > { %992 = vmatmul.f32.gmra.mxu1 %v471_v21 }
  0x6e   : > { %1060 = vmatmul.f32.gmra.mxu2 %v472_v25  ;;  %1425 = vmatpush.msrb.mxu0 %v2604_v43  ;;  %v484_v43 = vld [vmem:[%s3069_s16 + $0xe0] sm:$0xff] }
  0x70   : > { %1125 = vmatmul.f32.gmra.mxu3 %v473_v33  ;;  %627 = vadd.xlane.f32.xlu2 %v602_v32  ;;  %v2638_v32 = vld [vmem:[%s4486_s5 + $0x3b0] sm:$0xff] }
  0x71   : > { %672 = vadd.xlane.f32.xlu0 %v649_v34  ;;  %578 = vadd.xlane.f32.xlu1 %v553_v41  ;;  %v2629_v34 = vld [vmem:[%s4486_s5 + $0x368] sm:$0xff]  ;;  %v651_v41 = vmul.f32 %v2973_v40, %v3215_v26  ;;  %v2627_v26 = vld [vmem:[%s4486_s5 + $0x358] sm:$0xff] }
  0x72   : > { %1489 = vmatpush.msrb.mxu1 %v2638_v32  ;;  %1624 = vmatpush.msrb.mxu3 %v2629_v34  ;;  %v2596_v34 = vld [vmem:[%s4486_s5 + $0x260] sm:$0xff] }
  0x73   : > { %930 = vmatmul.f32.gmra.mxu0 %v472_v25  ;;  %v2597_v25 = vld [vmem:[%s4486_s5 + $0x268] sm:$0xff] }
  0x74   : > { %1559 = vmatpush.msrb.mxu2 %v2597_v25  ;;  %1625 = vmatpush.msrb.mxu3 %v2627_v26  ;;  %v2630_v25 = vld [vmem:[%s4486_s5 + $0x370] sm:$0xff]  ;;  %v2585_v26 = vld [vmem:[%s4486_s5 + $0x208] sm:$0xff] }
  0x75   : > { %995 = vmatmul.f32.gmra.mxu1 %v473_v33  ;;  %v2595_v33 = vld [vmem:[%s4486_s5 + $0x258] sm:$0xff] }
  0x76   : > { %1063 = vmatmul.f32.gmra.mxu2 %v474_v47  ;;  %1626 = vmatpush.msrb.mxu3 %v2625_v63 }
  0x77   : > { %1560 = vmatpush.msrb.mxu2 %v2595_v33 }
  0x78   : > { %1128 = vmatmul.f32.gmra.mxu3 %v475_v51  ;;  %629 = vadd.xlane.f32.xlu2 %v603_v48  ;;  %v2593_v48 = vld [vmem:[%s4486_s5 + $0x248] sm:$0xff] }
  0x79   : > { %527 = vadd.xlane.f32.xlu0 %v503_v50  ;;  %580 = vadd.xlane.f32.xlu1 %v554_v54 }
  0x7a   : > { %1561 = vmatpush.msrb.mxu2 %v2593_v48  ;;  %1627 = vmatpush.msrb.mxu3 %v2623_v44  ;;  %v2620_v44 = vld [vmem:[%s4486_s5 + $0x320] sm:$0xff] }
  0x7b   : > { %933 = vmatmul.f32.gmra.mxu0 %v474_v47  ;;  %v2636_v47 = vld [vmem:[%s4486_s5 + $0x3a0] sm:$0xff] }
  0x7c   : > { %1490 = vmatpush.msrb.mxu1 %v2636_v47  ;;  %v2628_v47 = vld [vmem:[%s4486_s5 + $0x360] sm:$0xff] }
  0x7d   : > { %998 = vmatmul.f32.gmra.mxu1 %v475_v51  ;;  %v2634_v51 = vld [vmem:[%s4486_s5 + $0x390] sm:$0xff] }
  0x7e   : > { %1066 = vmatmul.f32.gmra.mxu2 %v476_v56  ;;  %1491 = vmatpush.msrb.mxu1 %v2634_v51  ;;  %v2594_v51 = vld [vmem:[%s4486_s5 + $0x250] sm:$0xff] }
  0x80   : > { %1131 = vmatmul.f32.gmra.mxu3 %v477_v58 }
  0x81   : > { %674 = vadd.xlane.f32.xlu0 %v650_v57  ;;  %v2591_v57 = vld [vmem:[%s4486_s5 + $0x238] sm:$0xff] }
  0x82   : > { %1562 = vmatpush.msrb.mxu2 %v2591_v57  ;;  %v2592_v57 = vld [vmem:[%s4486_s5 + $0x240] sm:$0xff] }
  0x83   : > { %936 = vmatmul.f32.gmra.mxu0 %v476_v56  ;;  %v2602_v56 = vld [vmem:[%s4486_s5 + $0x290] sm:$0xff] }
  0x84   : > { %1426 = vmatpush.msrb.mxu0 %v2602_v56  ;;  %1563 = vmatpush.msrb.mxu2 %v2589_v9 }
  0x85   : > { %1001 = vmatmul.f32.gmra.mxu1 %v477_v58 }
  0x86   : > { %1069 = vmatmul.f32.gmra.mxu2 %v478_v6 }
  0x87   : > { %v514_v20 = vpop.xlane.xlu2 %513  ;;  %1564 = vmatpush.msrb.mxu2 %v2587_v30  ;;  %v884_v30 = vld [vmem:[%s4487_s6] ss:$2 sm:$0x3] }
  0x88   : > { %v610_v21 = vpop.xlane.xlu1 %609  ;;  %1134 = vmatmul.f32.gmra.mxu3 %v479_v8  ;;  %v691_v3 = vmul.f32 %v514_v20, %v2954_v35  ;;  %v2598_v20 = vld [vmem:[%s4486_s5 + $0x270] sm:$0xff] }
  0x89   : > { %529 = vadd.xlane.f32.xlu0 %v504_v7  ;;  %v512_v24 = vpop.xlane.xlu0 %511  ;;  %v755_v54 = vmul.f32 %v610_v21, %v2962_v37  ;;  %v3386_v7 = vld [vmem:[%s4484_s3 + $0x5] ss:$0 sm:$0xff]  ;;  %1565 = vmatpush.msrb.mxu2 %v2585_v26 }
  0x8a   : > { %v690_v58 = vmul.f32 %v512_v24, %v2962_v37  ;;  %v2600_v37 = vld [vmem:[%s4486_s5 + $0x280] sm:$0xff] }
  0x8b   : > { %939 = vmatmul.f32.gmra.mxu0 %v478_v6 }
  0x8c   : > { %1427 = vmatpush.msrb.mxu0 %v2600_v37  ;;  %v2590_v37 = vld [vmem:[%s4486_s5 + $0x230] sm:$0xff] }
  0x8d   : > { %1004 = vmatmul.f32.gmra.mxu1 %v479_v8  ;;  %v2632_v8 = vld [vmem:[%s4486_s5 + $0x380] sm:$0xff] }
  0x8e   : > { %1072 = vmatmul.f32.gmra.mxu2 %v480_v31  ;;  %1492 = vmatpush.msrb.mxu1 %v2632_v8  ;;  %v2622_v8 = vld [vmem:[%s4486_s5 + $0x330] sm:$0xff] }
  0x8f   : > { %1428 = vmatpush.msrb.mxu0 %v2598_v20 }
  0x90   : > { %v563_v49 = vpop.xlane.xlu2 %562  ;;  %v659_v50 = vpop.xlane.xlu1 %658  ;;  %1137 = vmatmul.f32.gmra.mxu3 %v481_v42  ;;  %1493 = vmatpush.msrb.mxu1 %v2630_v25 }
  0x91   : > { %676 = vadd.xlane.f32.xlu0 %v651_v41  ;;  %v771_v55 = vmul.f32 %v659_v50, %v2903_v19  ;;  %v561_v15 = vpop.xlane.xlu0 %560  ;;  %v707_v5 = vmul.f32 %v563_v49, %v2900_v18  ;;  %v652_v49 = vmul.f32 %v2973_v40, %v3243_v45  ;;  %v485_v50 = vld [vmem:[%s3069_s16 + $0xe8] sm:$0xff]  ;;  %1429 = vmatpush.msrb.mxu0 %v2596_v34 }
  0x92   : > { %v706_v61 = vmul.f32 %v561_v15, %v2903_v19  ;;  %v482_v19 = vld [vmem:[%s3069_s16 + $0xd0] sm:$0xff]  ;;  %1494 = vmatpush.msrb.mxu1 %v2628_v47  ;;  %v2617_v45 = vld [vmem:[%s4486_s5 + $0x308] sm:$0xff] }
  0x93   : > { %v787_v0 = vadd.f32 %v771_v55, %v755_v54  ;;  %942 = vmatmul.f32.gmra.mxu0 %v480_v31  ;;  %v723_v23 = vadd.f32 %v707_v5, %v691_v3  ;;  %v2621_v31 = vld [vmem:[%s4486_s5 + $0x328] sm:$0xff]  ;;  %v2626_v54 = vld [vmem:[%s4486_s5 + $0x350] sm:$0xff] }
  0x94   : > { %v722_v6 = vadd.f32 %v706_v61, %v690_v58  ;;  %1628 = vmatpush.msrb.mxu3 %v2621_v31  ;;  %1430 = vmatpush.msrb.mxu0 %v2594_v51  ;;  %v2624_v58 = vld [vmem:[%s4486_s5 + $0x340] sm:$0xff]  ;;  %v3466_v61 = vld [vmem:[%s2886_s11 + $0x58] sm:$0xff] }
  0x95   : > { %v3397_v13 = vadd.f32 %v3354_v36, %v787_v0  ;;  %1007 = vmatmul.f32.gmra.mxu1 %v481_v42  ;;  %v3432_v48 = vadd.f32 %v3367_v62, %v723_v23  ;;  %v506_v20 = vmul.f32 %v2880_v14, %v3466_v61  ;;  %v2618_v14 = vld [vmem:[%s4486_s5 + $0x310] sm:$0xff]  ;;  %v3507_v31 = vld [vmem:[%s2930_s15 + $0x58] sm:$0xff] }
  0x96   : > { %v3404_v21 = vadd.f32 %v3367_v62, %v722_v6  ;;  %1075 = vmatmul.f32.gmra.mxu2 %v482_v19  ;;  %1495 = vmatpush.msrb.mxu1 %v2626_v54 }
  0x97   : > { %v1186_v22 = vmul.f32 %v3375_v1, %v3397_v13  ;;  %v1236_v15 = vmul.f32 %v3386_v7, %v3432_v48  ;;  %1431 = vmatpush.msrb.mxu0 %v2592_v57 }
  0x98   : > { %v1235_v24 = vmul.f32 %v3386_v7, %v3404_v21  ;;  %1140 = vmatmul.f32.gmra.mxu3 %v483_v17  ;;  %1496 = vmatpush.msrb.mxu1 %v2624_v58  ;;  %v3530_v58 = vld [vmem:[%s2886_s11 + $0x60] sm:$0xff] }
  0x99   : > { %531 = vadd.xlane.f32.xlu0 %v505_v10  ;;  %v516_v27 = vpop.xlane.xlu2 %515  ;;  %1202 = vadd.xlane.f32.xlu1 %v1186_v22  ;;  %v2588_v22 = vld [vmem:[%s4486_s5 + $0x220] sm:$0xff] }
  0x9a   : > { %v661_v32 = vpop.xlane.xlu1 %660  ;;  %v612_v33 = vpop.xlane.xlu0 %611  ;;  %1251 = vadd.xlane.f32.xlu2 %v1235_v24  ;;  %v692_v63 = vmul.f32 %v516_v27, %v3081_v12  ;;  %1432 = vmatpush.msrb.mxu0 %v2590_v37  ;;  %v2584_v27 = vld [vmem:[%s4486_s5 + $0x200] sm:$0xff] }
  0x9b   : > { %v772_v41 = vmul.f32 %v661_v32, %v2900_v18  ;;  %v756_v42 = vmul.f32 %v612_v33, %v2954_v35  ;;  %945 = vmatmul.f32.gmra.mxu0 %v482_v19  ;;  %v2619_v18 = vld [vmem:[%s4486_s5 + $0x318] sm:$0xff]  ;;  %v486_v19 = vld [vmem:[%s3069_s16 + $0xf0] sm:$0xff]  ;;  %1497 = vmatpush.msrb.mxu1 %v2622_v8 }
  0x9c   : > { %1629 = vmatpush.msrb.mxu3 %v2619_v18  ;;  %1433 = vmatpush.msrb.mxu0 %v2588_v22  ;;  %v3518_v18 = vperm.slane %v884_v30, 0 }
  0x9d   : > { %v788_v35 = vadd.f32 %v772_v41, %v756_v42  ;;  %1010 = vmatmul.f32.gmra.mxu1 %v483_v17  ;;  %v487_v17 = vld [vmem:[%s3069_s16 + $0xf8] sm:$0xff] }
  0x9e   : > { %1078 = vmatmul.f32.gmra.mxu2 %v484_v43  ;;  %1630 = vmatpush.msrb.mxu3 %v2617_v45 }
  0x9f   : > { %v3450_v55 = vadd.f32 %v3354_v36, %v788_v35  ;;  %1498 = vmatpush.msrb.mxu1 %v2620_v44  ;;  %v653_v35 = vmul.f32 %v2973_v40, %v3507_v31 }
  0xa0   : > { %1143 = vmatmul.f32.gmra.mxu3 %v485_v50 }
  0xa1   : > { %678 = vadd.xlane.f32.xlu0 %v652_v49  ;;  %v1187_v56 = vmul.f32 %v3375_v1, %v3450_v55  ;;  %1499 = vmatpush.msrb.mxu1 %v2618_v14  ;;  %v3522_v49 = vperm.slane %v884_v30, 1 }
  0xa2   : > { %1253 = vadd.xlane.f32.xlu2 %v1236_v15 }
  0xa3   : > { %v663_v0 = vpop.xlane.xlu2 %662  ;;  %1204 = vadd.xlane.f32.xlu1 %v1187_v56  ;;  %948 = vmatmul.f32.gmra.mxu0 %v484_v43  ;;  %v2616_v43 = vld [vmem:[%s4486_s5 + $0x300] sm:$0xff] }
  0xa4   : > { %v773_v3 = vmul.f32 %v663_v0, %v3009_v53  ;;  %v614_v5 = vpop.xlane.xlu1 %613  ;;  %v565_v6 = vpop.xlane.xlu0 %564  ;;  %1500 = vmatpush.msrb.mxu1 %v2616_v43 }
  0xa5   : > { %v757_v9 = vmul.f32 %v614_v5, %v3081_v12  ;;  %v708_v10 = vmul.f32 %v565_v6, %v3009_v53  ;;  %1013 = vmatmul.f32.gmra.mxu1 %v485_v50  ;;  %v2586_v53 = vld [vmem:[%s4486_s5 + $0x210] sm:$0xff] }
  0xa6   : > { %1081 = vmatmul.f32.gmra.mxu2 %v486_v19  ;;  %1434 = vmatpush.msrb.mxu0 %v2586_v53 }
  0xa7   : > { %v789_v23 = vadd.f32 %v773_v3, %v757_v9  ;;  %v724_v12 = vadd.f32 %v708_v10, %v692_v63 }
  0xa8   : > { %1146 = vmatmul.f32.gmra.mxu3 %v487_v17  ;;  %1435 = vmatpush.msrb.mxu0 %v2584_v27 }
  0xa9   : > { %v3495_v24 = vadd.f32 %v3354_v36, %v789_v23  ;;  %v3498_v25 = vadd.f32 %v3367_v62, %v724_v12  ;;  %533 = vadd.xlane.f32.xlu0 %v506_v20 }
  0xab   : > { %v616_v32 = vpop.xlane.xlu2 %615  ;;  %v1188_v33 = vmul.f32 %v3375_v1, %v3495_v24  ;;  %v1237_v34 = vmul.f32 %v3386_v7, %v3498_v25  ;;  %951 = vmatmul.f32.gmra.mxu0 %v486_v19 }
  0xac   : > { %v567_v41 = vpop.xlane.xlu1 %566  ;;  %v518_v42 = vpop.xlane.xlu0 %517  ;;  %v758_v40 = vmul.f32 %v616_v32, %v3113_v29 }
  0xad   : > { %v709_v47 = vmul.f32 %v567_v41, %v3110_v28  ;;  %v693_v26 = vmul.f32 %v518_v42, %v3113_v29  ;;  %1206 = vadd.xlane.f32.xlu1 %v1188_v33  ;;  %1255 = vadd.xlane.f32.xlu2 %v1237_v34  ;;  %v3541_v29 = vld [vmem:[%s4484_s3] ss:$0 sm:$0xff] }
  0xae   : > { %1016 = vmatmul.f32.gmra.mxu1 %v487_v17  ;;  %v507_v20 = vmul.f32 %v3541_v29, %v3530_v58  ;;  %v3554_v33 = vld [vmem:[%s2930_s15 + $0x60] sm:$0xff] }
  0xaf   : > { %v725_v50 = vadd.f32 %v709_v47, %v693_v26 }
  0xb0   : > { %v907_v51 = vpop.f32.mrf.mxu0 }
  0xb1   : > { %v908_v54 = vadd.f32 %v907_v51, %v3518_v18  ;;  %v1037_v45 = vpop.f32.mrf.mxu2  ;;  %v3526_v15 = vadd.f32 %v3367_v62, %v725_v50  ;;  %680 = vadd.xlane.f32.xlu0 %v653_v35 }
  0xb2   : > { %v972_v56 = vpop.f32.mrf.mxu1  ;;  %v1038_v57 = vadd.f32 %v1037_v45, %v3522_v49 }
  0xb3   : > { %v973_v63 = vadd.f32 %v972_v56, %v908_v54  ;;  %v1102_v0 = vpop.f32.mrf.mxu3  ;;  %v569_v19 = vpop.xlane.xlu2 %568  ;;  %v1238_v37 = vmul.f32 %v3386_v7, %v3526_v15  ;;  %v3565_v56 = vld [vmem:[%s4484_s3 + $0x3] ss:$0 sm:$0xff] }
  0xb4   : > { %v1103_v3 = vadd.f32 %v1102_v0, %v1038_v57  ;;  %v710_v5 = vmul.f32 %v569_v19, %v3127_v39  ;;  %v520_v6 = vpop.xlane.xlu1 %519  ;;  %v665_v8 = vpop.xlane.xlu0 %664  ;;  %v654_v57 = vmul.f32 %v3565_v56, %v3554_v33  ;;  %v3573_v19 = vld [vmem:[%s4484_s3 + $0x2] ss:$0 sm:$0xff] }
  0xb5   : > { %v1150_v9 = vmax.f32 %v973_v63, 0.0  ;;  %v694_v10 = vmul.f32 %v520_v6, %v3124_v38  ;;  %v774_v17 = vmul.f32 %v665_v8, %v3110_v28  ;;  %1257 = vadd.xlane.f32.xlu2 %v1238_v37  ;;  %v604_v37 = vmul.f32 %v3573_v19, %v3466_v61 }
  0xb6   : > { %v1151_v22 = vmax.f32 %v1103_v3, 0.0 }
  0xb7   : > { %v726_v44 = vadd.f32 %v710_v5, %v694_v10  ;;  %v790_v23 = vadd.f32 %v774_v17, %v758_v40  ;;  %1566 = vmatmul.f32.vlgmr.msrb.gmra.mxu2 %v1150_v9  ;;  %1436 = vmatmul.f32.vlgmr.msrb.gmra.mxu0 %v1150_v9  ;;  %v3581_v5 = vld [vmem:[%s2886_s11 + $0x68] sm:$0xff] }
  0xb8   : > { %v910_v12 = vpop.f32.mrf.mxu0  ;;  %1631 = vmatmul.f32.vlgmr.msrb.gmra.mxu3 %v1151_v22  ;;  %1501 = vmatmul.f32.vlgmr.msrb.gmra.mxu1 %v1151_v22 }
  0xb9   : > { %v911_v28 = vadd.f32 %v910_v12, %v3518_v18  ;;  %v1040_v53 = vpop.f32.mrf.mxu2  ;;  %v3547_v14 = vadd.f32 %v3367_v62, %v726_v44  ;;  %v3550_v27 = vadd.f32 %v3354_v36, %v790_v23  ;;  %535 = vadd.xlane.f32.xlu0 %v507_v20  ;;  %v508_v12 = vmul.f32 %v3541_v29, %v3581_v5 }
  0xba   : > { %v975_v30 = vpop.f32.mrf.mxu1  ;;  %v1041_v32 = vadd.f32 %v1040_v53, %v3522_v49 }
  0xbb   : > { %v976_v34 = vadd.f32 %v975_v30, %v911_v28  ;;  %v1105_v41 = vpop.f32.mrf.mxu3  ;;  %v1239_v42 = vmul.f32 %v3386_v7, %v3547_v14  ;;  %v1189_v43 = vmul.f32 %v3375_v1, %v3550_v27  ;;  %v522_v47 = vpop.xlane.xlu2 %521 }
  0xbc   : > { %v1106_v26 = vadd.f32 %v1105_v41, %v1041_v32  ;;  %v667_v35 = vpop.xlane.xlu1 %666  ;;  %v618_v50 = vpop.xlane.xlu0 %617  ;;  %v695_v17 = vmul.f32 %v522_v47, %v3149_v52 }
  0xbd   : > { %v775_v51 = vmul.f32 %v667_v35, %v3127_v39  ;;  %v759_v54 = vmul.f32 %v618_v50, %v3124_v38  ;;  %1259 = vadd.xlane.f32.xlu2 %v1239_v42  ;;  %1208 = vadd.xlane.f32.xlu1 %v1189_v43  ;;  %v1152_v45 = vmax.f32 %v976_v34, 0.0  ;;  %v3596_v35 = vld [vmem:[%s4484_s3 + $0x1] ss:$0 sm:$0xff]  ;;  %v3604_v50 = vld [vmem:[%s2930_s15 + $0x68] sm:$0xff] }
  0xbe   : > { %v1153_v40 = vmax.f32 %v1106_v26, 0.0 }
  0xbf   : > { %v791_v63 = vadd.f32 %v775_v51, %v759_v54  ;;  %1569 = vmatmul.f32.gmra.mxu2 %v1152_v45  ;;  %1439 = vmatmul.f32.gmra.mxu0 %v1152_v45 }
  0xc0   : > { %v913_v0 = vpop.f32.mrf.mxu0  ;;  %1634 = vmatmul.f32.gmra.mxu3 %v1153_v40  ;;  %1504 = vmatmul.f32.gmra.mxu1 %v1153_v40 }
  0xc1   : > { %v914_v38 = vadd.f32 %v913_v0, %v3518_v18  ;;  %v1043_v39 = vpop.f32.mrf.mxu2  ;;  %v3578_v3 = vadd.f32 %v3354_v36, %v791_v63  ;;  %682 = vadd.xlane.f32.xlu0 %v654_v57 }
  0xc2   : > { %v978_v6 = vpop.f32.mrf.mxu1  ;;  %v1044_v8 = vadd.f32 %v1043_v39, %v3522_v49 }
  0xc3   : > { %v979_v9 = vadd.f32 %v978_v6, %v914_v38  ;;  %v1108_v10 = vpop.f32.mrf.mxu3  ;;  %v1190_v20 = vmul.f32 %v3375_v1, %v3578_v3  ;;  %v669_v22 = vpop.xlane.xlu2 %668 }
  0xc4   : > { %v1109_v44 = vadd.f32 %v1108_v10, %v1044_v8  ;;  %v571_v23 = vpop.xlane.xlu0 %570  ;;  %v620_v61 = vpop.xlane.xlu1 %619  ;;  %v776_v30 = vmul.f32 %v669_v22, %v3138_v46 }
  0xc5   : > { %v711_v28 = vmul.f32 %v571_v23, %v3138_v46  ;;  %631 = vadd.xlane.f32.xlu2 %v604_v37  ;;  %1210 = vadd.xlane.f32.xlu1 %v1190_v20  ;;  %v1154_v53 = vmax.f32 %v979_v9, 0.0  ;;  %v760_v32 = vmul.f32 %v620_v61, %v3149_v52  ;;  %v555_v46 = vmul.f32 %v3596_v35, %v3507_v31  ;;  %v3622_v61 = vld [vmem:[%s2886_s11 + $0x70] sm:$0xff] }
  0xc6   : > { %v1155_v34 = vmax.f32 %v1109_v44, 0.0  ;;  %v655_v31 = vmul.f32 %v3565_v56, %v3604_v50  ;;  %v605_v23 = vmul.f32 %v3573_v19, %v3530_v58 }
  0xc7   : > { %v727_v41 = vadd.f32 %v711_v28, %v695_v17  ;;  %1572 = vmatmul.f32.gmra.mxu2 %v1154_v53  ;;  %1442 = vmatmul.f32.gmra.mxu0 %v1154_v53  ;;  %v792_v26 = vadd.f32 %v776_v30, %v760_v32 }
  0xc8   : > { %v916_v42 = vpop.f32.mrf.mxu0  ;;  %1637 = vmatmul.f32.gmra.mxu3 %v1155_v34  ;;  %1507 = vmatmul.f32.gmra.mxu1 %v1155_v34 }
  0xc9   : > { %v917_v43 = vadd.f32 %v916_v42, %v3518_v18  ;;  %v1046_v47 = vpop.f32.mrf.mxu2  ;;  %v3601_v52 = vadd.f32 %v3367_v62, %v727_v41  ;;  %537 = vadd.xlane.f32.xlu0 %v508_v12  ;;  %v3614_v8 = vadd.f32 %v3354_v36, %v792_v26  ;;  %v509_v42 = vmul.f32 %v3541_v29, %v3622_v61 }
  0xca   : > { %v981_v51 = vpop.f32.mrf.mxu1  ;;  %v1047_v54 = vadd.f32 %v1046_v47, %v3522_v49 }
  0xcb   : > { %v982_v45 = vadd.f32 %v981_v51, %v917_v43  ;;  %v1111_v57 = vpop.f32.mrf.mxu3  ;;  %v1240_v40 = vmul.f32 %v3386_v7, %v3601_v52  ;;  %v1191_v44 = vmul.f32 %v3375_v1, %v3614_v8  ;;  %v622_v53 = vpop.xlane.xlu2 %621 }
  0xcc   : > { %v1112_v63 = vadd.f32 %v1111_v57, %v1047_v54  ;;  %v524_v0 = vpop.xlane.xlu0 %523  ;;  %v573_v38 = vpop.xlane.xlu1 %572  ;;  %v761_v47 = vmul.f32 %v622_v53, %v3163_v60  ;;  %v606_v53 = vmul.f32 %v3573_v19, %v3581_v5 }
  0xcd   : > { %v696_v39 = vmul.f32 %v524_v0, %v3163_v60  ;;  %582 = vadd.xlane.f32.xlu1 %v555_v46  ;;  %1261 = vadd.xlane.f32.xlu2 %v1240_v40  ;;  %v1156_v37 = vmax.f32 %v982_v45, 0.0  ;;  %v712_v6 = vmul.f32 %v573_v38, %v3160_v59  ;;  %v3638_v60 = vld [vmem:[%s2930_s15 + $0x70] sm:$0xff] }
  0xce   : > { %v1157_v9 = vmax.f32 %v1112_v63, 0.0 }
  0xcf   : > { %1575 = vmatmul.f32.gmra.mxu2 %v1156_v37  ;;  %1445 = vmatmul.f32.gmra.mxu0 %v1156_v37  ;;  %v728_v22 = vadd.f32 %v712_v6, %v696_v39 }
  0xd0   : > { %v919_v10 = vpop.f32.mrf.mxu0  ;;  %1640 = vmatmul.f32.gmra.mxu3 %v1157_v9  ;;  %1510 = vmatmul.f32.gmra.mxu1 %v1157_v9  ;;  %v656_v9 = vmul.f32 %v3565_v56, %v3638_v60 }
  0xd1   : > { %v920_v17 = vadd.f32 %v919_v10, %v3518_v18  ;;  %v1049_v20 = vpop.f32.mrf.mxu2  ;;  %684 = vadd.xlane.f32.xlu0 %v655_v31  ;;  %v3630_v26 = vadd.f32 %v3367_v62, %v728_v22 }
  0xd2   : > { %v984_v12 = vpop.f32.mrf.mxu1  ;;  %v1050_v28 = vadd.f32 %v1049_v20, %v3522_v49 }
  0xd3   : > { %v985_v30 = vadd.f32 %v984_v12, %v920_v17  ;;  %v1114_v32 = vpop.f32.mrf.mxu3  ;;  %v1241_v40 = vmul.f32 %v3386_v7, %v3630_v26 }
  0xd4   : > { %v1115_v34 = vadd.f32 %v1114_v32, %v1050_v28  ;;  %v671_v41 = vpop.xlane.xlu0 %670  ;;  %v575_v38 = vpop.xlane.xlu1 %574 }
  0xd5   : > { %v777_v43 = vmul.f32 %v671_v41, %v3160_v59  ;;  %1212 = vadd.xlane.f32.xlu1 %v1191_v44  ;;  %633 = vadd.xlane.f32.xlu2 %v605_v23  ;;  %v1158_v58 = vmax.f32 %v985_v30, 0.0  ;;  %v556_v59 = vmul.f32 %v3596_v35, %v3554_v33  ;;  %v713_v17 = vmul.f32 %v575_v38, %v3178_v4  ;;  %v624_v32 = vpop.xlane.xlu2 %623 }
  0xd6   : > { %v1159_v46 = vmax.f32 %v1115_v34, 0.0 }
  0xd7   : > { %1578 = vmatmul.f32.gmra.mxu2 %v1158_v58  ;;  %1448 = vmatmul.f32.gmra.mxu0 %v1158_v58  ;;  %v793_v57 = vadd.f32 %v777_v43, %v761_v47 }
  0xd8   : > { %v922_v51 = vpop.f32.mrf.mxu0  ;;  %1643 = vmatmul.f32.gmra.mxu3 %v1159_v46  ;;  %1513 = vmatmul.f32.gmra.mxu1 %v1159_v46 }
  0xd9   : > { %v923_v54 = vadd.f32 %v922_v51, %v3518_v18  ;;  %v1052_v45 = vpop.f32.mrf.mxu2  ;;  %539 = vadd.xlane.f32.xlu0 %v509_v42  ;;  %v3646_v20 = vadd.f32 %v3354_v36, %v793_v57  ;;  %v3655_v42 = vld [vmem:[%s2886_s11 + $0x78] sm:$0xff]  ;;  %v762_v51 = vmul.f32 %v624_v32, %v3174_v2 }
  0xda   : > { %v987_v63 = vpop.f32.mrf.mxu1  ;;  %v1053_v0 = vadd.f32 %v1052_v45, %v3522_v49  ;;  %v510_v57 = vmul.f32 %v3541_v29, %v3655_v42 }
  0xdb   : > { %v988_v31 = vadd.f32 %v987_v63, %v923_v54  ;;  %v1117_v39 = vpop.f32.mrf.mxu3  ;;  %v1192_v30 = vmul.f32 %v3375_v1, %v3646_v20 }
  0xdc   : > { %v1118_v37 = vadd.f32 %v1117_v39, %v1053_v0  ;;  %v526_v6 = vpop.xlane.xlu0 %525  ;;  %v557_v0 = vmul.f32 %v3596_v35, %v3604_v50 }
  0xdd   : > { %v697_v10 = vmul.f32 %v526_v6, %v3174_v2  ;;  %584 = vadd.xlane.f32.xlu1 %v556_v59  ;;  %1263 = vadd.xlane.f32.xlu2 %v1241_v40  ;;  %v1160_v33 = vmax.f32 %v988_v31, 0.0  ;;  %v577_v31 = vpop.xlane.xlu1 %576 }
  0xde   : > { %v1161_v22 = vmax.f32 %v1118_v37, 0.0  ;;  %v3671_v37 = vld [vmem:[%s2930_s15 + $0x78] sm:$0xff] }
  0xdf   : > { %1581 = vmatmul.f32.gmra.mxu2 %v1160_v33  ;;  %1451 = vmatmul.f32.gmra.mxu0 %v1160_v33  ;;  %v729_v28 = vadd.f32 %v713_v17, %v697_v10  ;;  %v714_v17 = vmul.f32 %v577_v31, %v3198_v16  ;;  %v1805_v31 = vld [vmem:[%s4488_s7 + $0x1e8] sm:$0xff] }
  0xe0   : > { %v925_v44 = vpop.f32.mrf.mxu0  ;;  %1646 = vmatmul.f32.gmra.mxu3 %v1161_v22  ;;  %1516 = vmatmul.f32.gmra.mxu1 %v1161_v22 }
  0xe1   : > { %v926_v23 = vadd.f32 %v925_v44, %v3518_v18  ;;  %v1055_v12 = vpop.f32.mrf.mxu2  ;;  %686 = vadd.xlane.f32.xlu0 %v656_v9  ;;  %v3660_v45 = vadd.f32 %v3367_v62, %v729_v28  ;;  %v626_v28 = vpop.xlane.xlu2 %625 }
  0xe2   : > { %v990_v34 = vpop.f32.mrf.mxu1  ;;  %v1056_v41 = vadd.f32 %v1055_v12, %v3522_v49 }
  0xe3   : > { %v991_v43 = vadd.f32 %v990_v34, %v926_v23  ;;  %v1120_v58 = vpop.f32.mrf.mxu3  ;;  %v1242_v38 = vmul.f32 %v3386_v7, %v3660_v45  ;;  %v657_v23 = vmul.f32 %v3565_v56, %v3671_v37 }
  0xe4   : > { %v1121_v47 = vadd.f32 %v1120_v58, %v1056_v41  ;;  %v673_v46 = vpop.xlane.xlu0 %672 }
  0xe5   : > { %v778_v54 = vmul.f32 %v673_v46, %v3178_v4  ;;  %635 = vadd.xlane.f32.xlu2 %v606_v53  ;;  %1214 = vadd.xlane.f32.xlu1 %v1192_v30  ;;  %v1162_v5 = vmax.f32 %v991_v43, 0.0  ;;  %v1775_v53 = vld [vmem:[%s4488_s7 + $0xf8] sm:$0xff]  ;;  %v607_v30 = vmul.f32 %v3573_v19, %v3622_v61  ;;  %v1774_v61 = vld [vmem:[%s4488_s7 + $0xf0] sm:$0xff] }
  0xe6   : > { %v1163_v59 = vmax.f32 %v1121_v47, 0.0  ;;  %1944 = vmatpush.msra.mxu2 %v1775_v53  ;;  %v1806_v47 = vld [vmem:[%s4488_s7 + $0x1f0] sm:$0xff]  ;;  %1814 = vmatpush.msra.mxu0 %v1774_v61  ;;  %v1771_v53 = vld [vmem:[%s4488_s7 + $0xd8] sm:$0xff] }
  0xe7   : > { %1584 = vmatmul.f32.gmra.mxu2 %v1162_v5  ;;  %1454 = vmatmul.f32.gmra.mxu0 %v1162_v5  ;;  %v794_v4 = vadd.f32 %v778_v54, %v762_v51  ;;  %v1803_v61 = vld [vmem:[%s4488_s7 + $0x1d8] sm:$0xff] }
  0xe8   : > { %v928_v40 = vpop.f32.mrf.mxu0  ;;  %1649 = vmatmul.f32.gmra.mxu3 %v1163_v59  ;;  %1519 = vmatmul.f32.gmra.mxu1 %v1163_v59  ;;  %v2738_v59 = vld [vmem:[%s2886_s11 + $0x40] sm:$0xff] }
  0xe9   : > { %v929_v2 = vadd.f32 %v928_v40, %v3518_v18  ;;  %v1058_v63 = vpop.f32.mrf.mxu2  ;;  %541 = vadd.xlane.f32.xlu0 %v510_v57  ;;  %v3676_v44 = vadd.f32 %v3354_v36, %v794_v4  ;;  %1879 = vmatpush.msra.mxu1 %v1806_v47 }
  0xea   : > { %v993_v29 = vpop.f32.mrf.mxu1  ;;  %v1059_v39 = vadd.f32 %v1058_v63, %v3522_v49 }
  0xeb   : > { %v994_v6 = vadd.f32 %v993_v29, %v929_v2  ;;  %v1123_v9 = vpop.f32.mrf.mxu3  ;;  %v1193_v41 = vmul.f32 %v3375_v1, %v3676_v44  ;;  %v2739_v2 = vld [vmem:[%s2930_s15 + $0x40] sm:$0xff]  ;;  %v558_v29 = vmul.f32 %v3596_v35, %v3638_v60 }
  0xec   : > { %v1124_v10 = vadd.f32 %v1123_v9, %v1059_v39  ;;  %v528_v33 = vpop.xlane.xlu0 %527  ;;  %v763_v63 = vmul.f32 %v2739_v2, %v626_v28  ;;  %v1772_v60 = vld [vmem:[%s4488_s7 + $0xe0] sm:$0xff] }
  0xed   : > { %v698_v22 = vmul.f32 %v528_v33, %v3194_v11  ;;  %586 = vadd.xlane.f32.xlu1 %v557_v0  ;;  %1265 = vadd.xlane.f32.xlu2 %v1242_v38  ;;  %v1164_v50 = vmax.f32 %v994_v6, 0.0  ;;  %v1807_v11 = vld [vmem:[%s4488_s7 + $0x1f8] sm:$0xff]  ;;  %v1773_v38 = vld [vmem:[%s4488_s7 + $0xe8] sm:$0xff]  ;;  %v1804_v28 = vld [vmem:[%s4488_s7 + $0x1e0] sm:$0xff] }
  0xee   : > { %v1165_v12 = vmax.f32 %v1124_v10, 0.0  ;;  %2009 = vmatpush.msra.mxu3 %v1807_v11  ;;  %1945 = vmatpush.msra.mxu2 %v1773_v38 }
  0xef   : > { %1587 = vmatmul.f32.gmra.mxu2 %v1164_v50  ;;  %1457 = vmatmul.f32.gmra.mxu0 %v1164_v50  ;;  %v730_v34 = vadd.f32 %v714_v17, %v698_v22  ;;  %v628_v17 = vpop.xlane.xlu2 %627 }
  0xf0   : > { %v931_v16 = vpop.f32.mrf.mxu0  ;;  %1652 = vmatmul.f32.gmra.mxu3 %v1165_v12  ;;  %1522 = vmatmul.f32.gmra.mxu1 %v1165_v12 }
  0xf1   : > { %v932_v56 = vadd.f32 %v931_v16, %v3518_v18  ;;  %v1061_v32 = vpop.f32.mrf.mxu2  ;;  %688 = vadd.xlane.f32.xlu0 %v657_v23  ;;  %v3701_v4 = vadd.f32 %v3367_v62, %v730_v34  ;;  %2010 = vmatpush.msra.mxu3 %v1805_v31  ;;  %v579_v16 = vpop.xlane.xlu1 %578 }
  0xf2   : > { %v996_v43 = vpop.f32.mrf.mxu1  ;;  %v1062_v58 = vadd.f32 %v1061_v32, %v3522_v49  ;;  %1815 = vmatpush.msra.mxu0 %v1772_v60  ;;  %1880 = vmatpush.msra.mxu1 %v1804_v28  ;;  %v1800_v28 = vld [vmem:[%s4488_s7 + $0x1c0] sm:$0xff] }
  0xf3   : > { %v997_v46 = vadd.f32 %v996_v43, %v932_v56  ;;  %v1126_v51 = vpop.f32.mrf.mxu3  ;;  %v1243_v9 = vmul.f32 %v3386_v7, %v3701_v4  ;;  %v2740_v56 = vld [vmem:[%s2930_s15 + $0x48] sm:$0xff]  ;;  %1946 = vmatpush.msra.mxu2 %v1771_v53  ;;  %2011 = vmatpush.msra.mxu3 %v1803_v61 }
  0xf4   : > { %v1127_v54 = vadd.f32 %v1126_v51, %v1062_v58  ;;  %v675_v5 = vpop.xlane.xlu0 %674 }
  0xf5   : > { %v1166_v57 = vmax.f32 %v997_v46, 0.0  ;;  %v779_v40 = vmul.f32 %v2738_v59, %v675_v5  ;;  %637 = vadd.xlane.f32.xlu2 %v607_v30  ;;  %1216 = vadd.xlane.f32.xlu1 %v1193_v41  ;;  %v2741_v41 = vld [vmem:[%s2886_s11 + $0x48] sm:$0xff] }
  0xf6   : > { %v1167_v0 = vmax.f32 %v1127_v54, 0.0  ;;  %v715_v43 = vmul.f32 %v2741_v41, %v579_v16  ;;  %v608_v54 = vmul.f32 %v3573_v19, %v3655_v42  ;;  %v1802_v42 = vld [vmem:[%s4488_s7 + $0x1d0] sm:$0xff]  ;;  %v1767_v16 = vld [vmem:[%s4488_s7 + $0xb8] sm:$0xff] }
  0xf7   : > { %1590 = vmatmul.f32.gmra.mxu2 %v1166_v57  ;;  %1460 = vmatmul.f32.gmra.mxu0 %v1166_v57  ;;  %v795_v6 = vadd.f32 %v779_v40, %v763_v63 }
  0xf8   : > { %1655 = vmatmul.f32.gmra.mxu3 %v1167_v0  ;;  %v934_v39 = vpop.f32.mrf.mxu0  ;;  %1525 = vmatmul.f32.gmra.mxu1 %v1167_v0  ;;  %v3738_v0 = vpop.xlane.xlu2 %629 }
  0xf9   : > { %v935_v10 = vadd.f32 %v934_v39, %v3518_v18  ;;  %v1064_v33 = vpop.f32.mrf.mxu2  ;;  %v3727_v58 = vadd.f32 %v3354_v36, %v795_v6  ;;  %1881 = vmatpush.msra.mxu1 %v1802_v42 }
  0xfa   : > { %v999_v22 = vpop.f32.mrf.mxu1  ;;  %v1065_v50 = vadd.f32 %v1064_v33, %v3522_v49 }
  0xfb   : > { %v1000_v23 = vadd.f32 %v999_v22, %v935_v10  ;;  %v1129_v12 = vpop.f32.mrf.mxu3  ;;  %v1194_v5 = vmul.f32 %v3375_v1, %v3727_v58  ;;  %v1770_v1 = vld [vmem:[%s4488_s7 + $0xd0] sm:$0xff]  ;;  %v764_v10 = vmul.f32 %v2740_v56, %v628_v17  ;;  %v1768_v17 = vld [vmem:[%s4488_s7 + $0xc0] sm:$0xff]  ;;  %1882 = vmatpush.msra.mxu1 %v1800_v28  ;;  %v1793_v28 = vld [vmem:[%s4488_s7 + $0x188] sm:$0xff] }
  0xfc   : > { %v530_v11 = vpop.xlane.xlu0 %529  ;;  %v1130_v30 = vadd.f32 %v1129_v12, %v1065_v50  ;;  %1816 = vmatpush.msra.mxu0 %v1770_v1  ;;  %v559_v50 = vmul.f32 %v3596_v35, %v3671_v37  ;;  %v1766_v35 = vld [vmem:[%s4488_s7 + $0xb0] sm:$0xff]  ;;  %v581_v37 = vpop.xlane.xlu1 %580  ;;  %v1763_v1 = vld [vmem:[%s4488_s7 + $0x98] sm:$0xff] }
  0xfd   : > { %v699_v32 = vmul.f32 %v2740_v56, %v530_v11  ;;  %588 = vadd.xlane.f32.xlu1 %v558_v29  ;;  %1267 = vadd.xlane.f32.xlu2 %v1243_v9  ;;  %v1168_v34 = vmax.f32 %v1000_v23, 0.0  ;;  %v1769_v9 = vld [vmem:[%s4488_s7 + $0xc8] sm:$0xff]  ;;  %v1798_v11 = vld [vmem:[%s4488_s7 + $0x1b0] sm:$0xff] }
  0xfe   : > { %v1169_v47 = vmax.f32 %v1130_v30, 0.0  ;;  %1947 = vmatpush.msra.mxu2 %v1769_v9  ;;  %1817 = vmatpush.msra.mxu0 %v1768_v17  ;;  %v1799_v30 = vld [vmem:[%s4488_s7 + $0x1b8] sm:$0xff]  ;;  %v1760_v9 = vld [vmem:[%s4488_s7 + $0x80] sm:$0xff] }
  0xff   : > { %1593 = vmatmul.f32.gmra.mxu2 %v1168_v34  ;;  %1463 = vmatmul.f32.gmra.mxu0 %v1168_v34  ;;  %v731_v51 = vadd.f32 %v715_v43, %v699_v32  ;;  %v1796_v43 = vld [vmem:[%s4488_s7 + $0x1a0] sm:$0xff] }
 0x100   : > { %v937_v46 = vpop.f32.mrf.mxu0  ;;  %1658 = vmatmul.f32.gmra.mxu3 %v1169_v47  ;;  %1528 = vmatmul.f32.gmra.mxu1 %v1169_v47 }
 0x101   : > { %v938_v57 = vadd.f32 %v937_v46, %v3518_v18  ;;  %v1067_v59 = vpop.f32.mrf.mxu2  ;;  %v3741_v19 = vadd.f32 %v3367_v62, %v731_v51  ;;  %v1801_v62 = vld [vmem:[%s4488_s7 + $0x1c8] sm:$0xff]  ;;  %1948 = vmatpush.msra.mxu2 %v1767_v16  ;;  %1818 = vmatpush.msra.mxu0 %v1766_v35  ;;  %v1758_v35 = vld [vmem:[%s4488_s7 + $0x70] sm:$0xff] }
 0x102   : > { %v1002_v40 = vpop.f32.mrf.mxu1  ;;  %v1068_v2 = vadd.f32 %v1067_v59, %v3522_v49  ;;  %2012 = vmatpush.msra.mxu3 %v1801_v62  ;;  %1883 = vmatpush.msra.mxu1 %v1798_v11  ;;  %v2742_v59 = vld [vmem:[%s2886_s11 + $0x50] sm:$0xff]  ;;  %v1792_v62 = vld [vmem:[%s4488_s7 + $0x180] sm:$0xff] }
 0x103   : > { %v1003_v63 = vadd.f32 %v1002_v40, %v938_v57  ;;  %v1132_v38 = vpop.f32.mrf.mxu3  ;;  %v1244_v23 = vmul.f32 %v3386_v7, %v3741_v19  ;;  %v1797_v57 = vld [vmem:[%s4488_s7 + $0x1a8] sm:$0xff]  ;;  %v716_v40 = vmul.f32 %v2742_v59, %v581_v37 }
 0x104   : > { %v677_v31 = vpop.xlane.xlu0 %676  ;;  %v1133_v29 = vadd.f32 %v1132_v38, %v1068_v2  ;;  %2013 = vmatpush.msra.mxu3 %v1799_v30  ;;  %1884 = vmatpush.msra.mxu1 %v1796_v43  ;;  %v2743_v2 = vld [vmem:[%s2930_s15 + $0x50] sm:$0xff] }
 0x105   : > { %639 = vadd.xlane.f32.xlu2 %v608_v54  ;;  %1218 = vadd.xlane.f32.xlu1 %v1194_v5  ;;  %v1170_v39 = vmax.f32 %v1003_v63, 0.0  ;;  %v780_v33 = vmul.f32 %v2741_v41, %v677_v31  ;;  %v1764_v41 = vld [vmem:[%s4488_s7 + $0xa0] sm:$0xff]  ;;  %v1765_v5 = vld [vmem:[%s4488_s7 + $0xa8] sm:$0xff]  ;;  %v1762_v31 = vld [vmem:[%s4488_s7 + $0x90] sm:$0xff]  ;;  %v765_v11 = vmul.f32 %v2743_v2, %v3738_v0 }
 0x106   : > { %v1171_v6 = vmax.f32 %v1133_v29, 0.0  ;;  %1819 = vmatpush.msra.mxu0 %v1764_v41  ;;  %v1794_v29 = vld [vmem:[%s4488_s7 + $0x190] sm:$0xff]  ;;  %1949 = vmatpush.msra.mxu2 %v1765_v5  ;;  %v1759_v41 = vld [vmem:[%s4488_s7 + $0x78] sm:$0xff]  ;;  %v3848_v0 = vld [vmem:[%s4485_s4] ss:$0 sm:$0xff] }
 0x107   : > { %1596 = vmatmul.f32.gmra.mxu2 %v1170_v39  ;;  %1466 = vmatmul.f32.gmra.mxu0 %v1170_v39  ;;  %v796_v56 = vadd.f32 %v780_v33, %v764_v10  ;;  %v1788_v5 = vld [vmem:[%s4488_s7 + $0x160] sm:$0xff] }
 0x108   : > { %1661 = vmatmul.f32.gmra.mxu3 %v1171_v6  ;;  %1531 = vmatmul.f32.gmra.mxu1 %v1171_v6  ;;  %v940_v22 = vpop.f32.mrf.mxu0 }
 0x109   : > { %v1070_v12 = vpop.f32.mrf.mxu2  ;;  %v941_v60 = vadd.f32 %v940_v22, %v3518_v18  ;;  %v3796_v38 = vadd.f32 %v3354_v36, %v796_v56  ;;  %v1795_v36 = vld [vmem:[%s4488_s7 + $0x198] sm:$0xff]  ;;  %2014 = vmatpush.msra.mxu3 %v1797_v57  ;;  %1820 = vmatpush.msra.mxu0 %v1762_v31  ;;  %v1761_v22 = vld [vmem:[%s4488_s7 + $0x88] sm:$0xff] }
 0x10a   : > { %v1071_v7 = vadd.f32 %v1070_v12, %v3522_v49  ;;  %v1005_v53 = vpop.f32.mrf.mxu1  ;;  %1885 = vmatpush.msra.mxu1 %v1794_v29  ;;  %1950 = vmatpush.msra.mxu2 %v1763_v1  ;;  %v1757_v57 = vld [vmem:[%s4488_s7 + $0x68] sm:$0xff]  ;;  %v1754_v29 = vld [vmem:[%s4488_s7 + $0x50] sm:$0xff] }
 0x10b   : > { %v1135_v32 = vpop.f32.mrf.mxu3  ;;  %v1006_v34 = vadd.f32 %v1005_v53, %v941_v60  ;;  %2015 = vmatpush.msra.mxu3 %v1795_v36  ;;  %1821 = vmatpush.msra.mxu0 %v1760_v9  ;;  %v1789_v31 = vld [vmem:[%s4488_s7 + $0x168] sm:$0xff]  ;;  %v3884_v36 = vld [vmem:[%s4484_s3 + $0x5] ss:$0 sm:$0xff] }
 0x10c   : > { %v532_v61 = vpop.xlane.xlu0 %531  ;;  %v1136_v47 = vadd.f32 %v1135_v32, %v1071_v7  ;;  %v3834_v37 = vpop.xlane.xlu1 %1202  ;;  %1886 = vmatpush.msra.mxu1 %v1792_v62  ;;  %1951 = vmatpush.msra.mxu2 %v1761_v22 }
 0x10d   : > { %590 = vadd.xlane.f32.xlu1 %v559_v50  ;;  %1269 = vadd.xlane.f32.xlu2 %v1244_v23  ;;  %v3785_v46 = vpop.xlane.xlu2 %1251  ;;  %v1172_v51 = vmax.f32 %v1006_v34, 0.0  ;;  %v700_v63 = vmul.f32 %v2743_v2, %v532_v61  ;;  %v3824_v23 = vld [vmem:[%s4484_s3 + $0x4] ss:$0 sm:$0xff]  ;;  %v1790_v34 = vld [vmem:[%s4488_s7 + $0x170] sm:$0xff] }
 0x10e   : > { %v1173_v54 = vmax.f32 %v1136_v47, 0.0  ;;  %v1195_v12 = vmul.f32 %v3824_v23, %v3796_v38  ;;  %2016 = vmatpush.msra.mxu3 %v1793_v28  ;;  %1822 = vmatpush.msra.mxu0 %v1758_v35  ;;  %v1791_v47 = vld [vmem:[%s4488_s7 + $0x178] sm:$0xff]  ;;  %v1752_v35 = vld [vmem:[%s4488_s7 + $0x40] sm:$0xff] }
 0x10f   : > { %1469 = vmatmul.f32.gmra.mxu0 %v1172_v51  ;;  %1599 = vmatmul.f32.gmra.mxu2 %v1172_v51  ;;  %v732_v50 = vadd.f32 %v716_v40, %v700_v63  ;;  %v1756_v51 = vld [vmem:[%s4488_s7 + $0x60] sm:$0xff]  ;;  %v1787_v28 = vld [vmem:[%s4488_s7 + $0x158] sm:$0xff] }
 0x110   : > { %1534 = vmatmul.f32.gmra.mxu1 %v1173_v54  ;;  %1664 = vmatmul.f32.gmra.mxu3 %v1173_v54  ;;  %v943_v39 = vpop.f32.mrf.mxu0 }
 0x111   : > { %v1073_v42 = vpop.f32.mrf.mxu2  ;;  %v944_v6 = vadd.f32 %v943_v39, %v3518_v18  ;;  %v3851_v61 = vadd.f32 %v3848_v0, %v732_v50  ;;  %1887 = vmatpush.msra.mxu1 %v1790_v34  ;;  %1952 = vmatpush.msra.mxu2 %v1759_v41  ;;  %v1782_v41 = vld [vmem:[%s4488_s7 + $0x130] sm:$0xff] }
 0x112   : > { %v1074_v10 = vadd.f32 %v1073_v42, %v3522_v49  ;;  %v1008_v33 = vpop.f32.mrf.mxu1  ;;  %2017 = vmatpush.msra.mxu3 %v1791_v47  ;;  %1823 = vmatpush.msra.mxu0 %v1756_v51 }
 0x113   : > { %v1138_v60 = vpop.f32.mrf.mxu3  ;;  %v1009_v17 = vadd.f32 %v1008_v33, %v944_v6  ;;  %v1245_v42 = vmul.f32 %v3884_v36, %v3851_v61  ;;  %1888 = vmatpush.msra.mxu1 %v1788_v5  ;;  %1953 = vmatpush.msra.mxu2 %v1757_v57  ;;  %v1755_v33 = vld [vmem:[%s4488_s7 + $0x58] sm:$0xff]  ;;  %v1748_v57 = vld [vmem:[%s4488_s7 + $0x20] sm:$0xff] }
 0x114   : > { %v679_v7 = vpop.xlane.xlu0 %678  ;;  %v1139_v53 = vadd.f32 %v1138_v60, %v1074_v10  ;;  %v1786_v10 = vld [vmem:[%s4488_s7 + $0x150] sm:$0xff]  ;;  %2018 = vmatpush.msra.mxu3 %v1789_v31  ;;  %1824 = vmatpush.msra.mxu0 %v1754_v29  ;;  %v1783_v5 = vld [vmem:[%s4488_s7 + $0x138] sm:$0xff]  ;;  %v1749_v31 = vld [vmem:[%s4488_s7 + $0x28] sm:$0xff] }
 0x115   : > { %v781_v16 = vmul.f32 %v2742_v59, %v679_v7  ;;  %1220 = vadd.xlane.f32.xlu1 %v1195_v12  ;;  %v1174_v30 = vmax.f32 %v1009_v17, 0.0  ;;  %v3837_v56 = vpop.xlane.xlu2 %1253  ;;  %v3868_v59 = vld [vmem:[%s4485_s4 + $0x1] ss:$0 sm:$0xff]  ;;  %1889 = vmatpush.msra.mxu1 %v1786_v10  ;;  %v1778_v10 = vld [vmem:[%s4488_s7 + $0x110] sm:$0xff] }
 0x116   : > { %v1175_v32 = vmax.f32 %v1139_v53, 0.0  ;;  %v3898_v60 = vpop.xlane.xlu1 %1204  ;;  %1954 = vmatpush.msra.mxu2 %v1755_v33  ;;  %v1784_v7 = vld [vmem:[%s4488_s7 + $0x140] sm:$0xff]  ;;  %v1753_v53 = vld [vmem:[%s4488_s7 + $0x48] sm:$0xff]  ;;  %2019 = vmatpush.msra.mxu3 %v1787_v28  ;;  %v1747_v33 = vld [vmem:[%s4488_s7 + $0x18] sm:$0xff] }
 0x117   : > { %v797_v43 = vadd.f32 %v781_v16, %v765_v11  ;;  %1472 = vmatmul.f32.gmra.mxu0 %v1174_v30  ;;  %1602 = vmatmul.f32.gmra.mxu2 %v1174_v30  ;;  %v1785_v16 = vld [vmem:[%s4488_s7 + $0x148] sm:$0xff]  ;;  %v1750_v30 = vld [vmem:[%s4488_s7 + $0x30] sm:$0xff]  ;;  %v1744_v28 = vld [vmem:[%s4488_s7] sm:$0xff] }
 0x118   : > { %1537 = vmatmul.f32.gmra.mxu1 %v1175_v32  ;;  %1667 = vmatmul.f32.gmra.mxu3 %v1175_v32  ;;  %v946_v54 = vpop.f32.mrf.mxu0 }
 0x119   : > { %v3871_v40 = vadd.f32 %v3868_v59, %v797_v43  ;;  %v1076_v2 = vpop.f32.mrf.mxu2  ;;  %v947_v63 = vadd.f32 %v946_v54, %v3518_v18  ;;  %1825 = vmatpush.msra.mxu0 %v1752_v35  ;;  %v1751_v43 = vld [vmem:[%s4488_s7 + $0x38] sm:$0xff]  ;;  %1890 = vmatpush.msra.mxu1 %v1784_v7 }
 0x11a   : > { %v1077_v39 = vadd.f32 %v1076_v2, %v3522_v49  ;;  %v1011_v1 = vpop.f32.mrf.mxu1  ;;  %1955 = vmatpush.msra.mxu2 %v1753_v53  ;;  %2020 = vmatpush.msra.mxu3 %v1785_v16  ;;  %v1776_v53 = vld [vmem:[%s4488_s7 + $0x100] sm:$0xff]  ;;  %v1745_v16 = vld [vmem:[%s4488_s7 + $0x8] sm:$0xff] }
 0x11b   : > { %v1196_v6 = vmul.f32 %v3824_v23, %v3871_v40  ;;  %v1141_v9 = vpop.f32.mrf.mxu3  ;;  %v1012_v62 = vadd.f32 %v1011_v1, %v947_v63  ;;  %1826 = vmatpush.msra.mxu0 %v1750_v30  ;;  %v1780_v63 = vld [vmem:[%s4488_s7 + $0x120] sm:$0xff]  ;;  %1891 = vmatpush.msra.mxu1 %v1782_v41 }
 0x11c   : > { %v1142_v22 = vadd.f32 %v1141_v9, %v1077_v39  ;;  %v3896_v50 = vpop.xlane.xlu0 %533  ;;  %1956 = vmatpush.msra.mxu2 %v1751_v43  ;;  %2021 = vmatpush.msra.mxu3 %v1783_v5 }
 0x11d   : > { %1271 = vadd.xlane.f32.xlu1 %v1245_v42  ;;  %1222 = vadd.xlane.f32.xlu0 %v1196_v6  ;;  %v1176_v12 = vmax.f32 %v1012_v62, 0.0  ;;  %v1781_v42 = vld [vmem:[%s4488_s7 + $0x128] sm:$0xff]  ;;  %v1746_v6 = vld [vmem:[%s4488_s7 + $0x10] sm:$0xff] }
 0x11e   : > { %v1177_v17 = vmax.f32 %v1142_v22, 0.0  ;;  %1827 = vmatpush.msra.mxu0 %v1748_v57  ;;  %1892 = vmatpush.msra.mxu1 %v1780_v63 }
 0x11f   : > { %1475 = vmatmul.f32.gmra.mxu0 %v1176_v12  ;;  %1605 = vmatmul.f32.gmra.mxu2 %v1176_v12 }
 0x120   : > { %v3912_v11 = vpop.xlane.xlu2 %1255  ;;  %1540 = vmatmul.f32.gmra.mxu1 %v1177_v17  ;;  %1670 = vmatmul.f32.gmra.mxu3 %v1177_v17  ;;  %v949_v34 = vpop.f32.mrf.mxu0  ;;  %v1779_v17 = vld [vmem:[%s4488_s7 + $0x118] sm:$0xff] }
 0x121   : > { %v1079_v32 = vpop.f32.mrf.mxu2  ;;  %v950_v51 = vadd.f32 %v949_v34, %v3518_v18  ;;  %1957 = vmatpush.msra.mxu2 %v1749_v31  ;;  %2022 = vmatpush.msra.mxu3 %v1781_v42  ;;  %v3952_v22 = vpop.xlane.xlu1 %1206  ;;  %v1777_v34 = vld [vmem:[%s4488_s7 + $0x108] sm:$0xff]  ;;  %v1283_v42 = vmul.f32 %v3834_v37, %v3404_v21 }
 0x122   : > { %v1080_v47 = vadd.f32 %v1079_v32, %v3522_v49  ;;  %v1014_v54 = vpop.f32.mrf.mxu1  ;;  %1828 = vmatpush.msra.mxu0 %v1746_v6  ;;  %1893 = vmatpush.msra.mxu1 %v1778_v10  ;;  %v1299_v6 = vmul.f32 %v3785_v46, %v3397_v13  ;;  %v4004_v13 = vld [vmem:[%s4485_s4 + $0x2] ss:$0 sm:$0xff] }
 0x123   : > { %v1144_v2 = vpop.f32.mrf.mxu3  ;;  %v1015_v39 = vadd.f32 %v1014_v54, %v950_v51  ;;  %1958 = vmatpush.msra.mxu2 %v1747_v33  ;;  %2023 = vmatpush.msra.mxu3 %v1779_v17 }
 0x124   : > { %v1145_v29 = vadd.f32 %v1144_v2, %v1080_v47  ;;  %v681_v1 = vpop.xlane.xlu0 %680  ;;  %1829 = vmatpush.msra.mxu0 %v1744_v28  ;;  %1894 = vmatpush.msra.mxu1 %v1776_v53  ;;  %v2648_v2 = vld [vmem:[%s4487_s6 + $0x1] ss:$2 sm:$0x3]  ;;  %v1315_v46 = vadd.f32 %v1299_v6, %v1283_v42 }
 0x125   : > { %v1178_v62 = vmax.f32 %v1015_v39, 0.0  ;;  %1959 = vmatpush.msra.mxu2 %v1745_v16  ;;  %2024 = vmatpush.msra.mxu3 %v1777_v34  ;;  %v3982_v63 = vperm.slane %v2648_v2, 0  ;;  %v3990_v10 = vperm.slane %v2648_v2, 1 }
 0x126   : > { %v1179_v9 = vmax.f32 %v1145_v29, 0.0 }
 0x127   : > { %1478 = vmatmul.f32.gmra.mxu0 %v1178_v62  ;;  %1608 = vmatmul.f32.gmra.mxu2 %v1178_v62 }
 0x128   : > { %v3954_v12 = vpop.xlane.xlu2 %1257  ;;  %1543 = vmatmul.f32.gmra.mxu1 %v1179_v9  ;;  %1673 = vmatmul.f32.gmra.mxu3 %v1179_v9  ;;  %v952_v7 = vpop.f32.mrf.mxu0  ;;  %v2748_v9 = vld [vmem:[%s2886_s11 + $0x58] sm:$0xff] }
 0x129   : > { %v1082_v35 = vpop.f32.mrf.mxu2  ;;  %v953_v32 = vadd.f32 %v952_v7, %v3518_v18  ;;  %v782_v62 = vmul.f32 %v2748_v9, %v681_v1  ;;  %v2749_v7 = vld [vmem:[%s2930_s15 + $0x58] sm:$0xff] }
 0x12a   : > { %v1083_v30 = vadd.f32 %v1082_v35, %v3522_v49  ;;  %v701_v6 = vmul.f32 %v2749_v7, %v3896_v50 }
 0x12b   : > { %v1147_v41 = vpop.f32.mrf.mxu3  ;;  %v1017_v43 = vpop.f32.mrf.mxu1 }
 0x12c   : > { %v1148_v47 = vadd.f32 %v1147_v41, %v1083_v30  ;;  %v1018_v51 = vadd.f32 %v1017_v43, %v953_v32  ;;  %v3973_v54 = vpop.xlane.xlu0 %535 }
 0x12e   : > { %v1181_v49 = vmax.f32 %v1148_v47, 0.0  ;;  %v1180_v18 = vmax.f32 %v1018_v51, 0.0  ;;  %v1300_v51 = vmul.f32 %v3837_v56, %v3450_v55 }
 0x130   : > { %v3975_v5 = vpop.xlane.xlu2 %1259  ;;  %v3977_v57 = vpop.xlane.xlu1 %1208  ;;  %1481 = vmatmul.f32.gmra.mxu0 %v1180_v18  ;;  %1546 = vmatmul.f32.gmra.mxu1 %v1181_v49 }
 0x131   : > { %1611 = vmatmul.f32.gmra.mxu2 %v1180_v18  ;;  %1676 = vmatmul.f32.gmra.mxu3 %v1181_v49  ;;  %v1284_v49 = vmul.f32 %v3898_v60, %v3432_v48  ;;  %v1332_v18 = vadd.f32 %v4004_v13, %v1315_v46 }
 0x133   : > { %v1316_v48 = vadd.f32 %v1300_v51, %v1284_v49 }
 0x134   : > { %v1437_v31 = vpop.f32.mrf.mxu0  ;;  %v683_v17 = vpop.xlane.xlu0 %682 }
 0x135   : > { %v1438_v29 = vadd.f32 %v1437_v31, %v3982_v63  ;;  %v1502_v39 = vpop.f32.mrf.mxu1 }
 0x137   : > { %v1503_v33 = vadd.f32 %v1502_v39, %v1438_v29 }
 0x138   : > { %v632_v28 = vpop.xlane.xlu2 %631  ;;  %v3992_v35 = vpop.xlane.xlu1 %1210 }
 0x139   : > { %v766_v21 = vmul.f32 %v2749_v7, %v632_v28  ;;  %v1680_v37 = vmax.f32 %v1503_v33, 0.0 }
 0x13a   : > { %v1567_v53 = vpop.f32.mrf.mxu2 }
 0x13b   : > { %v798_v1 = vadd.f32 %v782_v62, %v766_v21  ;;  %v1568_v16 = vadd.f32 %v1567_v53, %v3990_v10  ;;  %v1632_v30 = vpop.f32.mrf.mxu3  ;;  %2406 = vst [vmem:[%s3998_s25] sm:$0xff] %v1680_v37 }
 0x13c   : > { %v1440_v32 = vpop.f32.mrf.mxu0  ;;  %v4022_v55 = vpop.xlane.xlu0 %537 }
 0x13d   : > { %v1633_v34 = vadd.f32 %v1632_v30, %v1568_v16  ;;  %v4009_v41 = vadd.f32 %v3868_v59, %v798_v1  ;;  %v1441_v43 = vadd.f32 %v1440_v32, %v3982_v63  ;;  %v1505_v47 = vpop.f32.mrf.mxu1  ;;  %v1333_v16 = vadd.f32 %v4004_v13, %v1316_v48 }
 0x13e   : > { %v1285_v30 = vmul.f32 %v3952_v22, %v3498_v25  ;;  %v1301_v32 = vmul.f32 %v3912_v11, %v3495_v24 }
 0x13f   : > { %v1681_v2 = vmax.f32 %v1633_v34, 0.0  ;;  %v1197_v31 = vmul.f32 %v3824_v23, %v4009_v41  ;;  %v1506_v29 = vadd.f32 %v1505_v47, %v1441_v43  ;;  %v2750_v43 = vld [vmem:[%s2886_s11 + $0x60] sm:$0xff] }
 0x140   : > { %v583_v39 = vpop.xlane.xlu1 %582  ;;  %v4019_v42 = vpop.xlane.xlu2 %1261  ;;  %v783_v47 = vmul.f32 %v2750_v43, %v683_v17 }
 0x141   : > { %v1712_v62 = vadd.f32 %v1681_v2, %v1332_v18  ;;  %v1728_v33 = vmul.f32 %v1681_v2, %v1332_v18  ;;  %v717_v28 = vmul.f32 %v2748_v9, %v583_v39  ;;  %1224 = vadd.xlane.f32.xlu2 %v1197_v31  ;;  %v1682_v60 = vmax.f32 %v1506_v29, 0.0  ;;  %v2751_v31 = vld [vmem:[%s2930_s15 + $0x60] sm:$0xff] }
 0x142   : > { %v1570_v56 = vpop.f32.mrf.mxu2 }
 0x143   : > { %v733_v21 = vadd.f32 %v717_v28, %v701_v6  ;;  %v1571_v37 = vadd.f32 %v1570_v56, %v3990_v10  ;;  %1830 = vmatmul.f32.vlgmr.msra.gmra.mxu0 %v1712_v62  ;;  %1895 = vmatmul.f32.vlgmr.msra.gmra.mxu1 %v1728_v33  ;;  %v1635_v53 = vpop.f32.mrf.mxu3  ;;  %2407 = vst [vmem:[%s3998_s25 + $0x8] sm:$0xff] %v1682_v60 }
 0x144   : > { %1960 = vmatmul.f32.vlgmr.msra.gmra.mxu2 %v1712_v62  ;;  %2025 = vmatmul.f32.vlgmr.msra.gmra.mxu3 %v1728_v33  ;;  %v1443_v50 = vpop.f32.mrf.mxu0  ;;  %v1317_v62 = vadd.f32 %v1301_v32, %v1285_v30  ;;  %v685_v33 = vpop.xlane.xlu0 %684  ;;  %v702_v32 = vmul.f32 %v2751_v31, %v3973_v54 }
 0x145   : > { %v1636_v7 = vadd.f32 %v1635_v53, %v1571_v37  ;;  %v4027_v9 = vadd.f32 %v3848_v0, %v733_v21  ;;  %v1444_v46 = vadd.f32 %v1443_v50, %v3982_v63  ;;  %v1508_v1 = vpop.f32.mrf.mxu1  ;;  %v1286_v37 = vmul.f32 %v3977_v57, %v3526_v15 }
 0x146   : > { %v1334_v53 = vadd.f32 %v4004_v13, %v1317_v62 }
 0x147   : > { %v1683_v34 = vmax.f32 %v1636_v7, 0.0  ;;  %v1246_v51 = vmul.f32 %v3884_v36, %v4027_v9  ;;  %v1509_v49 = vadd.f32 %v1508_v1, %v1444_v46  ;;  %v1302_v1 = vmul.f32 %v3954_v12, %v3550_v27 }
 0x148   : > { %v4038_v18 = vpop.xlane.xlu1 %1212  ;;  %v634_v2 = vpop.xlane.xlu2 %633 }
 0x149   : > { %v767_v29 = vmul.f32 %v2751_v31, %v634_v2  ;;  %1273 = vadd.xlane.f32.xlu0 %v1246_v51  ;;  %v1713_v39 = vadd.f32 %v1683_v34, %v1333_v16  ;;  %v1729_v6 = vmul.f32 %v1683_v34, %v1333_v16  ;;  %v1684_v22 = vmax.f32 %v1509_v49, 0.0 }
 0x14a   : > { %v1573_v25 = vpop.f32.mrf.mxu2  ;;  %v1318_v57 = vadd.f32 %v1302_v1, %v1286_v37  ;;  %v2753_v37 = vld [vmem:[%s2930_s15 + $0x68] sm:$0xff] }
 0x14b   : > { %v799_v24 = vadd.f32 %v783_v47, %v767_v29  ;;  %v1574_v11 = vadd.f32 %v1573_v25, %v3990_v10  ;;  %1833 = vmatmul.f32.gmra.mxu0 %v1713_v39  ;;  %1898 = vmatmul.f32.gmra.mxu1 %v1729_v6  ;;  %v1638_v17 = vpop.f32.mrf.mxu3  ;;  %2408 = vst [vmem:[%s3998_s25 + $0x10] sm:$0xff] %v1684_v22 }
 0x14c   : > { %1963 = vmatmul.f32.gmra.mxu2 %v1713_v39  ;;  %2028 = vmatmul.f32.gmra.mxu3 %v1729_v6  ;;  %v1446_v28 = vpop.f32.mrf.mxu0  ;;  %v4063_v6 = vpop.xlane.xlu0 %539  ;;  %v1335_v25 = vadd.f32 %v4004_v13, %v1318_v57  ;;  %v1287_v22 = vmul.f32 %v3992_v35, %v3547_v14 }
 0x14d   : > { %v1639_v48 = vadd.f32 %v1638_v17, %v1574_v11  ;;  %v4044_v56 = vadd.f32 %v3868_v59, %v799_v24  ;;  %v1447_v60 = vadd.f32 %v1446_v28, %v3982_v63  ;;  %v1511_v21 = vpop.f32.mrf.mxu1  ;;  %v2752_v24 = vld [vmem:[%s2886_s11 + $0x68] sm:$0xff] }
 0x14e   : > { %v784_v11 = vmul.f32 %v2752_v24, %v685_v33 }
 0x14f   : > { %v1685_v50 = vmax.f32 %v1639_v48, 0.0  ;;  %v1198_v7 = vmul.f32 %v3824_v23, %v4044_v56  ;;  %v1512_v46 = vadd.f32 %v1511_v21, %v1447_v60  ;;  %v1303_v21 = vmul.f32 %v3975_v5, %v3578_v3 }
 0x150   : > { %v585_v16 = vpop.xlane.xlu1 %584  ;;  %v4054_v30 = vpop.xlane.xlu2 %1263 }
 0x151   : > { %v718_v34 = vmul.f32 %v2750_v43, %v585_v16  ;;  %1226 = vadd.xlane.f32.xlu1 %v1198_v7  ;;  %v1714_v47 = vadd.f32 %v1685_v50, %v1334_v53  ;;  %v1730_v15 = vmul.f32 %v1685_v50, %v1334_v53  ;;  %v1686_v49 = vmax.f32 %v1512_v46, 0.0 }
 0x152   : > { %v1576_v51 = vpop.f32.mrf.mxu2  ;;  %v1319_v35 = vadd.f32 %v1303_v21, %v1287_v22 }
 0x153   : > { %v734_v2 = vadd.f32 %v718_v34, %v702_v32  ;;  %v1577_v29 = vadd.f32 %v1576_v51, %v3990_v10  ;;  %1836 = vmatmul.f32.gmra.mxu0 %v1714_v47  ;;  %1901 = vmatmul.f32.gmra.mxu1 %v1730_v15  ;;  %v1641_v27 = vpop.f32.mrf.mxu3  ;;  %2409 = vst [vmem:[%s3998_s25 + $0x18] sm:$0xff] %v1686_v49 }
 0x154   : > { %1966 = vmatmul.f32.gmra.mxu2 %v1714_v47  ;;  %2031 = vmatmul.f32.gmra.mxu3 %v1730_v15  ;;  %v1449_v12 = vpop.f32.mrf.mxu0  ;;  %v1288_v15 = vmul.f32 %v4038_v18, %v3601_v52  ;;  %v1336_v57 = vadd.f32 %v4004_v13, %v1319_v35  ;;  %v1305_v35 = vmul.f32 %v4054_v30, %v3646_v20 }
 0x155   : > { %v1642_v54 = vadd.f32 %v1641_v27, %v1577_v29  ;;  %v4060_v43 = vadd.f32 %v3848_v0, %v734_v2  ;;  %v1450_v31 = vadd.f32 %v1449_v12, %v3982_v63  ;;  %v1514_v39 = vpop.f32.mrf.mxu1  ;;  %v687_v29 = vpop.xlane.xlu0 %686  ;;  %v1304_v27 = vmul.f32 %v4019_v42, %v3614_v8 }
 0x157   : > { %v1687_v62 = vmax.f32 %v1642_v54, 0.0  ;;  %v1247_v17 = vmul.f32 %v3884_v36, %v4060_v43  ;;  %v1515_v28 = vadd.f32 %v1514_v39, %v1450_v31  ;;  %v703_v31 = vmul.f32 %v2753_v37, %v4022_v55 }
 0x158   : > { %v636_v48 = vpop.xlane.xlu2 %635  ;;  %v1215_v60 = vpop.xlane.xlu1 %1214  ;;  %v1320_v18 = vadd.f32 %v1304_v27, %v1288_v15 }
 0x159   : > { %v768_v53 = vmul.f32 %v2753_v37, %v636_v48  ;;  %1275 = vadd.xlane.f32.xlu2 %v1247_v17  ;;  %v1715_v50 = vadd.f32 %v1687_v62, %v1335_v25  ;;  %v1731_v7 = vmul.f32 %v1687_v62, %v1335_v25  ;;  %v1688_v14 = vmax.f32 %v1515_v28, 0.0 }
 0x15a   : > { %v1579_v46 = vpop.f32.mrf.mxu2  ;;  %v1337_v21 = vadd.f32 %v4004_v13, %v1320_v18  ;;  %v1289_v37 = vmul.f32 %v1215_v60, %v3630_v26 }
 0x15b   : > { %v800_v1 = vadd.f32 %v784_v11, %v768_v53  ;;  %v1580_v33 = vadd.f32 %v1579_v46, %v3990_v10  ;;  %1839 = vmatmul.f32.gmra.mxu0 %v1715_v50  ;;  %1904 = vmatmul.f32.gmra.mxu1 %v1731_v7  ;;  %v1644_v16 = vpop.f32.mrf.mxu3  ;;  %2410 = vst [vmem:[%s3998_s25 + $0x20] sm:$0xff] %v1688_v14 }
 0x15c   : > { %1969 = vmatmul.f32.gmra.mxu2 %v1715_v50  ;;  %2034 = vmatmul.f32.gmra.mxu3 %v1731_v7  ;;  %v1452_v32 = vpop.f32.mrf.mxu0  ;;  %v2754_v50 = vld [vmem:[%s2886_s11 + $0x70] sm:$0xff]  ;;  %v1321_v26 = vadd.f32 %v1305_v35, %v1289_v37  ;;  %v2756_v35 = vld [vmem:[%s2886_s11 + $0x78] sm:$0xff] }
 0x15d   : > { %v1645_v3 = vadd.f32 %v1644_v16, %v1580_v33  ;;  %v4077_v5 = vadd.f32 %v3868_v59, %v800_v1  ;;  %v1453_v34 = vadd.f32 %v1452_v32, %v3982_v63  ;;  %v1517_v47 = vpop.f32.mrf.mxu1  ;;  %v785_v7 = vmul.f32 %v2754_v50, %v687_v29  ;;  %v2755_v16 = vld [vmem:[%s2930_s15 + $0x70] sm:$0xff] }
 0x15e   : > { %v704_v18 = vmul.f32 %v2755_v16, %v4063_v6 }
 0x15f   : > { %v1689_v51 = vmax.f32 %v1645_v3, 0.0  ;;  %v1199_v49 = vmul.f32 %v3824_v23, %v4077_v5  ;;  %v1518_v2 = vadd.f32 %v1517_v47, %v1453_v34  ;;  %v4102_v47 = vpop.xlane.xlu0 %541 }
 0x160   : > { %v587_v12 = vpop.xlane.xlu1 %586  ;;  %v1266_v54 = vpop.xlane.xlu2 %1265 }
 0x161   : > { %v719_v39 = vmul.f32 %v2752_v24, %v587_v12  ;;  %1228 = vadd.xlane.f32.xlu0 %v1199_v49  ;;  %v1716_v25 = vadd.f32 %v1689_v51, %v1336_v57  ;;  %v1732_v52 = vmul.f32 %v1689_v51, %v1336_v57  ;;  %v1690_v62 = vmax.f32 %v1518_v2, 0.0 }
 0x162   : > { %v1582_v22 = vpop.f32.mrf.mxu2  ;;  %v1338_v12 = vadd.f32 %v4004_v13, %v1321_v26 }
 0x163   : > { %v735_v11 = vadd.f32 %v719_v39, %v703_v31  ;;  %v1583_v17 = vadd.f32 %v1582_v22, %v3990_v10  ;;  %1842 = vmatmul.f32.gmra.mxu0 %v1716_v25  ;;  %1907 = vmatmul.f32.gmra.mxu1 %v1732_v52  ;;  %v1647_v28 = vpop.f32.mrf.mxu3  ;;  %2411 = vst [vmem:[%s3998_s25 + $0x28] sm:$0xff] %v1690_v62 }
 0x164   : > { %1972 = vmatmul.f32.gmra.mxu2 %v1716_v25  ;;  %2037 = vmatmul.f32.gmra.mxu3 %v1732_v52  ;;  %v1455_v8 = vpop.f32.mrf.mxu0 }
 0x165   : > { %v1648_v42 = vadd.f32 %v1647_v28, %v1583_v17  ;;  %v4091_v55 = vadd.f32 %v3848_v0, %v735_v11  ;;  %v1456_v24 = vadd.f32 %v1455_v8, %v3982_v63  ;;  %v1520_v48 = vpop.f32.mrf.mxu1  ;;  %v1306_v11 = vmul.f32 %v1266_v54, %v3676_v44 }
 0x167   : > { %v1691_v53 = vmax.f32 %v1648_v42, 0.0  ;;  %v1248_v46 = vmul.f32 %v3884_v36, %v4091_v55  ;;  %v1521_v14 = vadd.f32 %v1520_v48, %v1456_v24  ;;  %v689_v6 = vpop.xlane.xlu0 %688 }
 0x168   : > { %v638_v1 = vpop.xlane.xlu2 %637  ;;  %v1217_v33 = vpop.xlane.xlu1 %1216 }
 0x169   : > { %v769_v32 = vmul.f32 %v2755_v16, %v638_v1  ;;  %1277 = vadd.xlane.f32.xlu1 %v1248_v46  ;;  %v1717_v3 = vadd.f32 %v1691_v53, %v1337_v21  ;;  %v1733_v34 = vmul.f32 %v1691_v53, %v1337_v21  ;;  %v1692_v15 = vmax.f32 %v1521_v14, 0.0  ;;  %v2680_v46 = vld [vmem:[%s4488_s7 + $0x2f8] sm:$0xff] }
 0x16a   : > { %v1585_v60 = vpop.f32.mrf.mxu2  ;;  %v1290_v31 = vmul.f32 %v1217_v33, %v3660_v45  ;;  %v2712_v14 = vld [vmem:[%s4488_s7 + $0x3f8] sm:$0xff]  ;;  %v786_v1 = vmul.f32 %v2756_v35, %v689_v6  ;;  %2276 = vmatpush.msrb.mxu2 %v2680_v46 }
 0x16b   : > { %v801_v57 = vadd.f32 %v785_v7, %v769_v32  ;;  %v1586_v51 = vadd.f32 %v1585_v60, %v3990_v10  ;;  %1845 = vmatmul.f32.gmra.mxu0 %v1717_v3  ;;  %1910 = vmatmul.f32.gmra.mxu1 %v1733_v34  ;;  %v1650_v49 = vpop.f32.mrf.mxu3  ;;  %2412 = vst [vmem:[%s3998_s25 + $0x30] sm:$0xff] %v1692_v15  ;;  %v2757_v15 = vld [vmem:[%s2930_s15 + $0x78] sm:$0xff] }
 0x16c   : > { %1975 = vmatmul.f32.gmra.mxu2 %v1717_v3  ;;  %2040 = vmatmul.f32.gmra.mxu3 %v1733_v34  ;;  %v1458_v20 = vpop.f32.mrf.mxu0  ;;  %v1322_v48 = vadd.f32 %v1306_v11, %v1290_v31  ;;  %v705_v6 = vmul.f32 %v2757_v15, %v4102_v47  ;;  %v2707_v47 = vld [vmem:[%s4488_s7 + $0x3d0] sm:$0xff] }
 0x16d   : > { %v1651_v30 = vadd.f32 %v1650_v49, %v1586_v51  ;;  %v4107_v2 = vadd.f32 %v3868_v59, %v801_v57  ;;  %v1459_v29 = vadd.f32 %v1458_v20, %v3982_v63  ;;  %v1523_v27 = vpop.f32.mrf.mxu1  ;;  %2341 = vmatpush.msrb.mxu3 %v2712_v14 }
 0x16e   : > { %v1339_v33 = vadd.f32 %v4004_v13, %v1322_v48 }
 0x16f   : > { %v1693_v39 = vmax.f32 %v1651_v30, 0.0  ;;  %v1200_v25 = vmul.f32 %v3824_v23, %v4107_v2  ;;  %v1524_v52 = vadd.f32 %v1523_v27, %v1459_v29  ;;  %v2679_v27 = vld [vmem:[%s4488_s7 + $0x2f0] sm:$0xff] }
 0x170   : > { %v589_v22 = vpop.xlane.xlu1 %588  ;;  %v1268_v62 = vpop.xlane.xlu2 %1267  ;;  %2146 = vmatpush.msrb.mxu0 %v2679_v27 }
 0x171   : > { %v720_v17 = vmul.f32 %v2754_v50, %v589_v22  ;;  %1230 = vadd.xlane.f32.xlu2 %v1200_v25  ;;  %v1718_v28 = vadd.f32 %v1693_v39, %v1338_v12  ;;  %v1734_v8 = vmul.f32 %v1693_v39, %v1338_v12  ;;  %v1694_v24 = vmax.f32 %v1524_v52, 0.0  ;;  %v2678_v25 = vld [vmem:[%s4488_s7 + $0x2e8] sm:$0xff]  ;;  %v2677_v22 = vld [vmem:[%s4488_s7 + $0x2e0] sm:$0xff] }
 0x172   : > { %v1588_v42 = vpop.f32.mrf.mxu2  ;;  %v1307_v34 = vmul.f32 %v1268_v62, %v3727_v58  ;;  %2277 = vmatpush.msrb.mxu2 %v2678_v25  ;;  %2147 = vmatpush.msrb.mxu0 %v2677_v22 }
 0x173   : > { %v736_v45 = vadd.f32 %v720_v17, %v704_v18  ;;  %v1589_v21 = vadd.f32 %v1588_v42, %v3990_v10  ;;  %1848 = vmatmul.f32.gmra.mxu0 %v1718_v28  ;;  %1913 = vmatmul.f32.gmra.mxu1 %v1734_v8  ;;  %v1653_v37 = vpop.f32.mrf.mxu3  ;;  %2413 = vst [vmem:[%s3998_s25 + $0x38] sm:$0xff] %v1694_v24  ;;  %v2710_v18 = vld [vmem:[%s4488_s7 + $0x3e8] sm:$0xff]  ;;  %v2676_v42 = vld [vmem:[%s4488_s7 + $0x2d8] sm:$0xff] }
 0x174   : > { %1978 = vmatmul.f32.gmra.mxu2 %v1718_v28  ;;  %2043 = vmatmul.f32.gmra.mxu3 %v1734_v8  ;;  %v1461_v44 = vpop.f32.mrf.mxu0  ;;  %v2709_v8 = vld [vmem:[%s4488_s7 + $0x3e0] sm:$0xff] }
 0x175   : > { %v1654_v54 = vadd.f32 %v1653_v37, %v1589_v21  ;;  %v4119_v53 = vadd.f32 %v3848_v0, %v736_v45  ;;  %v1462_v50 = vadd.f32 %v1461_v44, %v3982_v63  ;;  %v1526_v7 = vpop.f32.mrf.mxu1  ;;  %2342 = vmatpush.msrb.mxu3 %v2710_v18  ;;  %v2708_v21 = vld [vmem:[%s4488_s7 + $0x3d8] sm:$0xff]  ;;  %2278 = vmatpush.msrb.mxu2 %v2676_v42 }
 0x177   : > { %v1695_v16 = vmax.f32 %v1654_v54, 0.0  ;;  %v1249_v32 = vmul.f32 %v3884_v36, %v4119_v53  ;;  %v1527_v3 = vadd.f32 %v1526_v7, %v1462_v50  ;;  %2343 = vmatpush.msrb.mxu3 %v2708_v21 }
 0x178   : > { %v640_v26 = vpop.xlane.xlu2 %639  ;;  %v1219_v60 = vpop.xlane.xlu1 %1218 }
 0x179   : > { %v770_v57 = vmul.f32 %v2757_v15, %v640_v26  ;;  %v1291_v51 = vmul.f32 %v1219_v60, %v3701_v4  ;;  %1279 = vadd.xlane.f32.xlu0 %v1249_v32  ;;  %v1719_v49 = vadd.f32 %v1695_v16, %v1339_v33  ;;  %v1735_v20 = vmul.f32 %v1695_v16, %v1339_v33  ;;  %v2711_v4 = vld [vmem:[%s4488_s7 + $0x3f0] sm:$0xff]  ;;  %v2706_v32 = vld [vmem:[%s4488_s7 + $0x3c8] sm:$0xff] }
 0x17a   : > { %v1591_v30 = vpop.f32.mrf.mxu2  ;;  %v1696_v29 = vmax.f32 %v1527_v3, 0.0  ;;  %2211 = vmatpush.msrb.mxu1 %v2711_v4  ;;  %v2675_v33 = vld [vmem:[%s4488_s7 + $0x2d0] sm:$0xff]  ;;  %2344 = vmatpush.msrb.mxu3 %v2706_v32  ;;  %v2702_v32 = vld [vmem:[%s4488_s7 + $0x3a8] sm:$0xff] }
 0x17b   : > { %v1323_v12 = vadd.f32 %v1307_v34, %v1291_v51  ;;  %v802_v31 = vadd.f32 %v786_v1, %v770_v57  ;;  %v1592_v58 = vadd.f32 %v1591_v30, %v3990_v10  ;;  %1851 = vmatmul.f32.gmra.mxu0 %v1719_v49  ;;  %1916 = vmatmul.f32.gmra.mxu1 %v1735_v20  ;;  %v1656_v39 = vpop.f32.mrf.mxu3 }
 0x17c   : > { %1981 = vmatmul.f32.gmra.mxu2 %v1719_v49  ;;  %2046 = vmatmul.f32.gmra.mxu3 %v1735_v20  ;;  %2414 = vst [vmem:[%s3998_s25 + $0x40] sm:$0xff] %v1696_v29  ;;  %v1464_v52 = vpop.f32.mrf.mxu0 }
 0x17d   : > { %v1657_v62 = vadd.f32 %v1656_v39, %v1592_v58  ;;  %v4153_v11 = vadd.f32 %v3868_v59, %v802_v31  ;;  %v1465_v17 = vadd.f32 %v1464_v52, %v3982_v63  ;;  %v1529_v28 = vpop.f32.mrf.mxu1  ;;  %v1340_v24 = vadd.f32 %v4004_v13, %v1323_v12  ;;  %2212 = vmatpush.msrb.mxu1 %v2709_v8 }
 0x17e   : > { %2148 = vmatpush.msrb.mxu0 %v2675_v33 }
 0x17f   : > { %v1697_v48 = vmax.f32 %v1657_v62, 0.0  ;;  %v1201_v59 = vmul.f32 %v3824_v23, %v4153_v11  ;;  %v1530_v45 = vadd.f32 %v1529_v28, %v1465_v17  ;;  %2213 = vmatpush.msrb.mxu1 %v2707_v47 }
 0x180   : > { %v591_v37 = vpop.xlane.xlu1 %590  ;;  %v1270_v60 = vpop.xlane.xlu2 %1269 }
 0x181   : > { %v721_v44 = vmul.f32 %v2756_v35, %v591_v37  ;;  %1232 = vadd.xlane.f32.xlu1 %v1201_v59  ;;  %v1720_v54 = vadd.f32 %v1697_v48, %v1340_v24  ;;  %v1736_v50 = vmul.f32 %v1697_v48, %v1340_v24  ;;  %v1698_v7 = vmax.f32 %v1530_v45, 0.0  ;;  %v2674_v35 = vld [vmem:[%s4488_s7 + $0x2c8] sm:$0xff] }
 0x182   : > { %v1594_v46 = vpop.f32.mrf.mxu2  ;;  %2279 = vmatpush.msrb.mxu2 %v2674_v35  ;;  %v1308_v20 = vmul.f32 %v1270_v60, %v3796_v38  ;;  %v2705_v38 = vld [vmem:[%s4488_s7 + $0x3c0] sm:$0xff]  ;;  %v2668_v60 = vld [vmem:[%s4488_s7 + $0x298] sm:$0xff] }
 0x183   : > { %v737_v23 = vadd.f32 %v721_v44, %v705_v6  ;;  %1854 = vmatmul.f32.gmra.mxu0 %v1720_v54  ;;  %1919 = vmatmul.f32.gmra.mxu1 %v1736_v50  ;;  %v1595_v14 = vadd.f32 %v1594_v46, %v3990_v10  ;;  %v1659_v1 = vpop.f32.mrf.mxu3  ;;  %2415 = vst [vmem:[%s3998_s25 + $0x48] sm:$0xff] %v1698_v7 }
 0x184   : > { %1984 = vmatmul.f32.gmra.mxu2 %v1720_v54  ;;  %2049 = vmatmul.f32.gmra.mxu3 %v1736_v50  ;;  %v1467_v16 = vpop.f32.mrf.mxu0  ;;  %v2703_v54 = vld [vmem:[%s4488_s7 + $0x3b0] sm:$0xff]  ;;  %v2670_v50 = vld [vmem:[%s4488_s7 + $0x2a8] sm:$0xff] }
 0x185   : > { %v4184_v3 = vadd.f32 %v3848_v0, %v737_v23  ;;  %v1468_v34 = vadd.f32 %v1467_v16, %v3982_v63  ;;  %v1532_v26 = vpop.f32.mrf.mxu1  ;;  %v1660_v57 = vadd.f32 %v1659_v1, %v1595_v14  ;;  %2214 = vmatpush.msrb.mxu1 %v2705_v38 }
 0x187   : > { %v1250_v15 = vmul.f32 %v3884_v36, %v4184_v3  ;;  %v1533_v51 = vadd.f32 %v1532_v26, %v1468_v34  ;;  %v1699_v12 = vmax.f32 %v1660_v57, 0.0  ;;  %v2673_v36 = vld [vmem:[%s4488_s7 + $0x2c0] sm:$0xff]  ;;  %2215 = vmatpush.msrb.mxu1 %v2703_v54 }
 0x188   : > { %v1221_v49 = vpop.xlane.xlu1 %1220  ;;  %2149 = vmatpush.msrb.mxu0 %v2673_v36  ;;  %v2669_v34 = vld [vmem:[%s4488_s7 + $0x2a0] sm:$0xff]  ;;  %v2698_v36 = vld [vmem:[%s4488_s7 + $0x388] sm:$0xff] }
 0x189   : > { %v1292_v0 = vmul.f32 %v1221_v49, %v3741_v19  ;;  %1281 = vadd.xlane.f32.xlu2 %v1250_v15  ;;  %v1700_v30 = vmax.f32 %v1533_v51, 0.0  ;;  %v2672_v19 = vld [vmem:[%s4488_s7 + $0x2b8] sm:$0xff]  ;;  %v2701_v26 = vld [vmem:[%s4488_s7 + $0x3a0] sm:$0xff] }
 0x18a   : > { %v1597_v29 = vpop.f32.mrf.mxu2  ;;  %2280 = vmatpush.msrb.mxu2 %v2672_v19  ;;  %2216 = vmatpush.msrb.mxu1 %v2701_v26  ;;  %v2700_v49 = vld [vmem:[%s4488_s7 + $0x398] sm:$0xff]  ;;  %v2665_v19 = vld [vmem:[%s4488_s7 + $0x280] sm:$0xff] }
 0x18b   : > { %v1324_v27 = vadd.f32 %v1308_v20, %v1292_v0  ;;  %2416 = vst [vmem:[%s3998_s25 + $0x50] sm:$0xff] %v1700_v30  ;;  %v1598_v31 = vadd.f32 %v1597_v29, %v3990_v10  ;;  %v1662_v58 = vpop.f32.mrf.mxu3  ;;  %v2667_v30 = vld [vmem:[%s4488_s7 + $0x290] sm:$0xff] }
 0x18c   : > { %v1470_v39 = vpop.f32.mrf.mxu0  ;;  %2281 = vmatpush.msrb.mxu2 %v2670_v50  ;;  %v2699_v29 = vld [vmem:[%s4488_s7 + $0x390] sm:$0xff]  ;;  %v2692_v50 = vld [vmem:[%s4488_s7 + $0x358] sm:$0xff] }
 0x18d   : > { %v1341_v4 = vadd.f32 %v4004_v13, %v1324_v27  ;;  %v1471_v25 = vadd.f32 %v1470_v39, %v3982_v63  ;;  %v1535_v52 = vpop.f32.mrf.mxu1  ;;  %v1663_v62 = vadd.f32 %v1662_v58, %v1598_v31  ;;  %v2666_v27 = vld [vmem:[%s4488_s7 + $0x288] sm:$0xff]  ;;  %2217 = vmatpush.msrb.mxu1 %v2699_v29 }
 0x18e   : > { %2282 = vmatpush.msrb.mxu2 %v2668_v60 }
 0x18f   : > { %v1721_v18 = vadd.f32 %v1699_v12, %v1341_v4  ;;  %v1737_v22 = vmul.f32 %v1699_v12, %v1341_v4  ;;  %v1536_v17 = vadd.f32 %v1535_v52, %v1471_v25  ;;  %v1701_v45 = vmax.f32 %v1663_v62, 0.0  ;;  %v2697_v4 = vld [vmem:[%s4488_s7 + $0x380] sm:$0xff]  ;;  %v2696_v52 = vld [vmem:[%s4488_s7 + $0x378] sm:$0xff] }
 0x190   : > { %v1272_v28 = vpop.xlane.xlu1 %1271  ;;  %v1223_v8 = vpop.xlane.xlu0 %1222  ;;  %2283 = vmatpush.msrb.mxu2 %v2666_v27  ;;  %2218 = vmatpush.msrb.mxu1 %v2697_v4 }
 0x191   : > { %v1309_v42 = vmul.f32 %v1272_v28, %v3871_v40  ;;  %v1293_v24 = vmul.f32 %v1223_v8, %v3851_v61  ;;  %1857 = vmatmul.f32.gmra.mxu0 %v1721_v18  ;;  %1922 = vmatmul.f32.gmra.mxu1 %v1737_v22  ;;  %v1702_v48 = vmax.f32 %v1536_v17, 0.0  ;;  %v2704_v40 = vld [vmem:[%s4488_s7 + $0x3b8] sm:$0xff]  ;;  %v2671_v61 = vld [vmem:[%s4488_s7 + $0x2b0] sm:$0xff] }
 0x192   : > { %1987 = vmatmul.f32.gmra.mxu2 %v1721_v18  ;;  %2052 = vmatmul.f32.gmra.mxu3 %v1737_v22  ;;  %v1600_v25 = vpop.f32.mrf.mxu2  ;;  %v2663_v28 = vld [vmem:[%s4488_s7 + $0x270] sm:$0xff] }
 0x193   : > { %v1325_v59 = vadd.f32 %v1309_v42, %v1293_v24  ;;  %2417 = vst [vmem:[%s3998_s25 + $0x58] sm:$0xff] %v1702_v48  ;;  %2345 = vmatpush.msrb.mxu3 %v2704_v40  ;;  %2150 = vmatpush.msrb.mxu0 %v2671_v61  ;;  %v1601_v18 = vadd.f32 %v1600_v25, %v3990_v10  ;;  %v1665_v22 = vpop.f32.mrf.mxu3  ;;  %v2695_v8 = vld [vmem:[%s4488_s7 + $0x370] sm:$0xff]  ;;  %v2662_v42 = vld [vmem:[%s4488_s7 + $0x268] sm:$0xff]  ;;  %v2661_v61 = vld [vmem:[%s4488_s7 + $0x260] sm:$0xff] }
 0x194   : > { %v1473_v21 = vpop.f32.mrf.mxu0  ;;  %2219 = vmatpush.msrb.mxu1 %v2695_v8 }
 0x195   : > { %v1342_v37 = vadd.f32 %v4004_v13, %v1325_v59  ;;  %v1474_v6 = vadd.f32 %v1473_v21, %v3982_v63  ;;  %v1538_v44 = vpop.f32.mrf.mxu1  ;;  %2346 = vmatpush.msrb.mxu3 %v2702_v32  ;;  %2151 = vmatpush.msrb.mxu0 %v2669_v34  ;;  %v1666_v17 = vadd.f32 %v1665_v22, %v1601_v18  ;;  %v2686_v18 = vld [vmem:[%s4488_s7 + $0x328] sm:$0xff] }
 0x197   : > { %v1722_v7 = vadd.f32 %v1701_v45, %v1342_v37  ;;  %v1738_v46 = vmul.f32 %v1701_v45, %v1342_v37  ;;  %v1539_v23 = vadd.f32 %v1538_v44, %v1474_v6  ;;  %2347 = vmatpush.msrb.mxu3 %v2700_v49  ;;  %2152 = vmatpush.msrb.mxu0 %v2667_v30  ;;  %v1703_v45 = vmax.f32 %v1666_v17, 0.0  ;;  %v2694_v6 = vld [vmem:[%s4488_s7 + $0x368] sm:$0xff]  ;;  %v2657_v49 = vld [vmem:[%s4488_s7 + $0x240] sm:$0xff] }
 0x198   : > { %v2653_v17 = vld [vmem:[%s4488_s7 + $0x220] sm:$0xff] }
 0x199   : > { %1860 = vmatmul.f32.gmra.mxu0 %v1722_v7  ;;  %1925 = vmatmul.f32.gmra.mxu1 %v1738_v46  ;;  %v1704_v14 = vmax.f32 %v1539_v23, 0.0 }
 0x19a   : > { %1990 = vmatmul.f32.gmra.mxu2 %v1722_v7  ;;  %2055 = vmatmul.f32.gmra.mxu3 %v1738_v46  ;;  %v1603_v54 = vpop.f32.mrf.mxu2 }
 0x19b   : > { %2418 = vst [vmem:[%s3998_s25 + $0x60] sm:$0xff] %v1704_v14  ;;  %2348 = vmatpush.msrb.mxu3 %v2698_v36  ;;  %2153 = vmatpush.msrb.mxu0 %v2665_v19  ;;  %v1604_v7 = vadd.f32 %v1603_v54, %v3990_v10  ;;  %v1668_v46 = vpop.f32.mrf.mxu3 }
 0x19c   : > { %v1476_v1 = vpop.f32.mrf.mxu0 }
 0x19d   : > { %v1477_v33 = vadd.f32 %v1476_v1, %v3982_v63  ;;  %v1541_v47 = vpop.f32.mrf.mxu1  ;;  %2349 = vmatpush.msrb.mxu3 %v2696_v52  ;;  %2154 = vmatpush.msrb.mxu0 %v2663_v28  ;;  %v1669_v14 = vadd.f32 %v1668_v46, %v1604_v7  ;;  %v2659_v1 = vld [vmem:[%s4488_s7 + $0x250] sm:$0xff]  ;;  %v2684_v28 = vld [vmem:[%s4488_s7 + $0x318] sm:$0xff]  ;;  %v2758_v46 = vld [vmem:[%s4485_s4 + $0x2] ss:$0 sm:$0xff] }
 0x19f   : > { %v1542_v35 = vadd.f32 %v1541_v47, %v1477_v33  ;;  %2350 = vmatpush.msrb.mxu3 %v2694_v6  ;;  %2155 = vmatpush.msrb.mxu0 %v2661_v61  ;;  %v2691_v33 = vld [vmem:[%s4488_s7 + $0x350] sm:$0xff]  ;;  %v2658_v47 = vld [vmem:[%s4488_s7 + $0x248] sm:$0xff]  ;;  %v1705_v34 = vmax.f32 %v1669_v14, 0.0  ;;  %v2681_v6 = vld [vmem:[%s4488_s7 + $0x300] sm:$0xff] }
 0x1a1   : > { %v1706_v16 = vmax.f32 %v1542_v35, 0.0  ;;  %2351 = vmatpush.msrb.mxu3 %v2692_v50  ;;  %2156 = vmatpush.msrb.mxu0 %v2659_v1 }
 0x1a3   : > { %2419 = vst [vmem:[%s3998_s25 + $0x68] sm:$0xff] %v1706_v16  ;;  %2157 = vmatpush.msrb.mxu0 %v2657_v49  ;;  %v1671_v29 = vpop.f32.mrf.mxu3  ;;  %v1808_v49 = vld [vmem:[%s4489_s8] ss:$2 sm:$0x3] }
 0x1a4   : > { %v1479_v15 = vpop.f32.mrf.mxu0 }
 0x1a5   : > { %v1544_v57 = vpop.f32.mrf.mxu1  ;;  %v1480_v51 = vadd.f32 %v1479_v15, %v3982_v63  ;;  %v2690_v15 = vld [vmem:[%s4488_s7 + $0x348] sm:$0xff] }
 0x1a6   : > { %2352 = vmatpush.msrb.mxu3 %v2690_v15 }
 0x1a7   : > { %v1545_v20 = vadd.f32 %v1544_v57, %v1480_v51 }
 0x1a9   : > { %v1708_v0 = vmax.f32 %v1545_v20, 0.0  ;;  %v2656_v20 = vld [vmem:[%s4488_s7 + $0x238] sm:$0xff] }
 0x1ab   : > { %2420 = vst [vmem:[%s3998_s25 + $0x70] sm:$0xff] %v1708_v0  ;;  %v2688_v0 = vld [vmem:[%s4488_s7 + $0x338] sm:$0xff] }
 0x1ac   : > { %2353 = vmatpush.msrb.mxu3 %v2688_v0  ;;  %v4383_v0 = vperm.slane %v1808_v49, 1 }
 0x1ad   : > { %v1482_v12 = vpop.f32.mrf.mxu0  ;;  %v1547_v58 = vpop.f32.mrf.mxu1 }
 0x1ae   : > { %v1483_v31 = vadd.f32 %v1482_v12, %v3982_v63  ;;  %v2664_v63 = vld [vmem:[%s4488_s7 + $0x278] sm:$0xff]  ;;  %2354 = vmatpush.msrb.mxu3 %v2686_v18 }
 0x1af   : > { %2284 = vmatpush.msrb.mxu2 %v2664_v63 }
 0x1b0   : > { %v1548_v39 = vadd.f32 %v1547_v58, %v1483_v31  ;;  %v2655_v31 = vld [vmem:[%s4488_s7 + $0x230] sm:$0xff]  ;;  %2355 = vmatpush.msrb.mxu3 %v2684_v28 }
 0x1b1   : > { %2285 = vmatpush.msrb.mxu2 %v2662_v42  ;;  %v2687_v58 = vld [vmem:[%s4488_s7 + $0x330] sm:$0xff]  ;;  %2158 = vmatpush.msrb.mxu0 %v2655_v31 }
 0x1b2   : > { %v1710_v38 = vmax.f32 %v1548_v39, 0.0  ;;  %v2654_v39 = vld [vmem:[%s4488_s7 + $0x228] sm:$0xff] }
 0x1b3   : > { %2159 = vmatpush.msrb.mxu0 %v2653_v17 }
 0x1b4   : > { %2421 = vst [vmem:[%s3998_s25 + $0x78] sm:$0xff] %v1710_v38  ;;  %v1225_v62 = vpop.xlane.xlu2 %1224 }
 0x1b5   : > { %v1294_v48 = vmul.f32 %v1225_v62, %v4027_v9  ;;  %v2660_v9 = vld [vmem:[%s4488_s7 + $0x258] sm:$0xff] }
 0x1b6   : > { %2286 = vmatpush.msrb.mxu2 %v2660_v9 }
 0x1b8   : > { %2287 = vmatpush.msrb.mxu2 %v2658_v47 }
 0x1ba   : > { %2288 = vmatpush.msrb.mxu2 %v2656_v20  ;;  %v4381_v20 = vperm.slane %v1808_v49, 0 }
 0x1bc   : > { %v1274_v24 = vpop.xlane.xlu0 %1273  ;;  %2289 = vmatpush.msrb.mxu2 %v2654_v39 }
 0x1bd   : > { %v1310_v59 = vmul.f32 %v1274_v24, %v4009_v41  ;;  %v2693_v41 = vld [vmem:[%s4488_s7 + $0x360] sm:$0xff] }
 0x1be   : > { %2220 = vmatpush.msrb.mxu1 %v2693_v41 }
 0x1bf   : > { %v1326_v21 = vadd.f32 %v1310_v59, %v1294_v48  ;;  %v2651_v48 = vld [vmem:[%s4488_s7 + $0x210] sm:$0xff] }
 0x1c0   : > { %2221 = vmatpush.msrb.mxu1 %v2691_v33  ;;  %v2683_v59 = vld [vmem:[%s4488_s7 + $0x310] sm:$0xff]  ;;  %2160 = vmatpush.msrb.mxu0 %v2651_v48  ;;  %v1831_v7 = vpop.f32.mrf.mxu0 }
 0x1c1   : > { %v1343_v37 = vadd.f32 %v4004_v13, %v1326_v21 }
 0x1c3   : > { %v1723_v44 = vadd.f32 %v1703_v45, %v1343_v37  ;;  %v1739_v40 = vmul.f32 %v1703_v45, %v1343_v37  ;;  %v2650_v45 = vld [vmem:[%s4488_s7 + $0x208] sm:$0xff]  ;;  %v2649_v37 = vld [vmem:[%s4488_s7 + $0x200] sm:$0xff] }
 0x1c4   : > { %v1227_v23 = vpop.xlane.xlu1 %1226  ;;  %2161 = vmatpush.msrb.mxu0 %v2649_v37 }
 0x1c5   : > { %1863 = vmatmul.f32.gmra.mxu0 %v1723_v44  ;;  %1928 = vmatmul.f32.gmra.mxu1 %v1739_v40  ;;  %v1295_v16 = vmul.f32 %v1227_v23, %v4060_v43  ;;  %v1606_v43 = vpop.f32.mrf.mxu2 }
 0x1c6   : > { %1993 = vmatmul.f32.gmra.mxu2 %v1723_v44  ;;  %2058 = vmatmul.f32.gmra.mxu3 %v1739_v40  ;;  %v1607_v30 = vadd.f32 %v1606_v43, %v3990_v10  ;;  %v2682_v44 = vld [vmem:[%s4488_s7 + $0x308] sm:$0xff] }
 0x1c7   : > { %2356 = vmatpush.msrb.mxu3 %v2682_v44 }
 0x1c8   : > { %v1672_v12 = vadd.f32 %v1671_v29, %v1607_v30 }
 0x1ca   : > { %v1707_v63 = vmax.f32 %v1672_v12, 0.0 }
 0x1cc   : > { %v1276_v35 = vpop.xlane.xlu2 %1275 }
 0x1cd   : > { %v1311_v32 = vmul.f32 %v1276_v35, %v4044_v56  ;;  %v2689_v56 = vld [vmem:[%s4488_s7 + $0x340] sm:$0xff]  ;;  %v1609_v4 = vpop.f32.mrf.mxu2 }
 0x1ce   : > { %2222 = vmatpush.msrb.mxu1 %v2689_v56  ;;  %v1610_v8 = vadd.f32 %v1609_v4, %v3990_v10 }
 0x1cf   : > { %v1327_v26 = vadd.f32 %v1311_v32, %v1295_v16  ;;  %v1834_v32 = vpop.f32.mrf.mxu0 }
 0x1d0   : > { %2223 = vmatpush.msrb.mxu1 %v2687_v58 }
 0x1d1   : > { %v1344_v60 = vadd.f32 %v4004_v13, %v1327_v26 }
 0x1d3   : > { %v1724_v57 = vadd.f32 %v1705_v34, %v1344_v60  ;;  %v1740_v51 = vmul.f32 %v1705_v34, %v1344_v60 }
 0x1d4   : > { %v1229_v27 = vpop.xlane.xlu0 %1228 }
 0x1d5   : > { %1866 = vmatmul.f32.gmra.mxu0 %v1724_v57  ;;  %1931 = vmatmul.f32.gmra.mxu1 %v1740_v51  ;;  %v1296_v38 = vmul.f32 %v1229_v27, %v4091_v55  ;;  %v1674_v55 = vpop.f32.mrf.mxu3  ;;  %v1612_v42 = vpop.f32.mrf.mxu2 }
 0x1d6   : > { %1996 = vmatmul.f32.gmra.mxu2 %v1724_v57  ;;  %2061 = vmatmul.f32.gmra.mxu3 %v1740_v51  ;;  %v1675_v21 = vadd.f32 %v1674_v55, %v1610_v8 }
 0x1d8   : > { %v1709_v54 = vmax.f32 %v1675_v21, 0.0 }
 0x1dc   : > { %v1278_v36 = vpop.xlane.xlu1 %1277 }
 0x1dd   : > { %v1312_v19 = vmul.f32 %v1278_v36, %v4077_v5  ;;  %v2685_v5 = vld [vmem:[%s4488_s7 + $0x320] sm:$0xff]  ;;  %v1677_v9 = vpop.f32.mrf.mxu3  ;;  %v1961_v14 = vpop.f32.mrf.mxu2 }
 0x1de   : > { %2224 = vmatpush.msrb.mxu1 %v2685_v5  ;;  %v1962_v12 = vadd.f32 %v1961_v14, %v4383_v0 }
 0x1df   : > { %v1328_v25 = vadd.f32 %v1312_v19, %v1296_v38  ;;  %v1835_v38 = vadd.f32 %v1834_v32, %v4381_v20 }
 0x1e0   : > { %2225 = vmatpush.msrb.mxu1 %v2683_v59 }
 0x1e1   : > { %v1345_v52 = vadd.f32 %v4004_v13, %v1328_v25  ;;  %v2652_v13 = vld [vmem:[%s4488_s7 + $0x218] sm:$0xff] }
 0x1e2   : > { %2290 = vmatpush.msrb.mxu2 %v2652_v13  ;;  %2226 = vmatpush.msrb.mxu1 %v2681_v6 }
 0x1e3   : > { %v1725_v22 = vadd.f32 %v1707_v63, %v1345_v52  ;;  %v1741_v62 = vmul.f32 %v1707_v63, %v1345_v52 }
 0x1e4   : > { %v1231_v24 = vpop.xlane.xlu2 %1230  ;;  %2291 = vmatpush.msrb.mxu2 %v2650_v45 }
 0x1e5   : > { %1869 = vmatmul.f32.gmra.mxu0 %v1725_v22  ;;  %1934 = vmatmul.f32.gmra.mxu1 %v1741_v62  ;;  %v1297_v61 = vmul.f32 %v1231_v24, %v4119_v53  ;;  %v1896_v53 = vpop.f32.mrf.mxu1  ;;  %v2026_v47 = vpop.f32.mrf.mxu3 }
 0x1e6   : > { %1999 = vmatmul.f32.gmra.mxu2 %v1725_v22  ;;  %2064 = vmatmul.f32.gmra.mxu3 %v1741_v62  ;;  %v1964_v34 = vpop.f32.mrf.mxu2  ;;  %v2027_v58 = vadd.f32 %v2026_v47, %v1962_v12 }
 0x1e7   : > { %v1965_v19 = vadd.f32 %v1964_v34, %v4383_v0 }
 0x1ec   : > { %v1280_v40 = vpop.xlane.xlu0 %1279 }
 0x1ed   : > { %v1313_v41 = vmul.f32 %v1280_v40, %v4107_v2  ;;  %v1613_v2 = vadd.f32 %v1612_v42, %v3990_v10  ;;  %v1899_v43 = vpop.f32.mrf.mxu1  ;;  %v2029_v10 = vpop.f32.mrf.mxu3 }
 0x1ee   : > { %v1967_v27 = vpop.f32.mrf.mxu2  ;;  %v1900_v25 = vadd.f32 %v1899_v43, %v1835_v38  ;;  %v2030_v52 = vadd.f32 %v2029_v10, %v1965_v19 }
 0x1ef   : > { %v1329_v50 = vadd.f32 %v1313_v41, %v1297_v61  ;;  %v1678_v16 = vadd.f32 %v1677_v9, %v1613_v2  ;;  %v1968_v17 = vadd.f32 %v1967_v27, %v4383_v0 }
 0x1f1   : > { %v1346_v23 = vadd.f32 %v2758_v46, %v1329_v50  ;;  %v1711_v57 = vmax.f32 %v1678_v16, 0.0 }
 0x1f3   : > { %v1726_v1 = vadd.f32 %v1709_v54, %v1346_v23  ;;  %v1742_v33 = vmul.f32 %v1709_v54, %v1346_v23 }
 0x1f4   : > { %v1233_v35 = vpop.xlane.xlu1 %1232 }
 0x1f5   : > { %1872 = vmatmul.f32.gmra.mxu0 %v1726_v1  ;;  %1937 = vmatmul.f32.gmra.mxu1 %v1742_v33  ;;  %v1298_v60 = vmul.f32 %v1233_v35, %v4184_v3  ;;  %v1837_v3 = vpop.f32.mrf.mxu0  ;;  %v1902_v39 = vpop.f32.mrf.mxu1 }
 0x1f6   : > { %2002 = vmatmul.f32.gmra.mxu2 %v1726_v1  ;;  %2067 = vmatmul.f32.gmra.mxu3 %v1742_v33  ;;  %v2032_v36 = vpop.f32.mrf.mxu3  ;;  %v1970_v63 = vpop.f32.mrf.mxu2  ;;  %v1838_v62 = vadd.f32 %v1837_v3, %v4381_v20 }
 0x1f7   : > { %v2033_v28 = vadd.f32 %v2032_v36, %v1968_v17  ;;  %v1971_v42 = vadd.f32 %v1970_v63, %v4383_v0 }
 0x1f8   : > { %v1903_v13 = vadd.f32 %v1902_v39, %v1838_v62 }
 0x1fc   : > { %v1282_v26 = vpop.xlane.xlu2 %1281 }
 0x1fd   : > { %v1314_v15 = vmul.f32 %v1282_v26, %v4153_v11  ;;  %v1832_v11 = vadd.f32 %v1831_v7, %v4381_v20  ;;  %v1840_v4 = vpop.f32.mrf.mxu0  ;;  %v1905_v18 = vpop.f32.mrf.mxu1 }
 0x1fe   : > { %v2035_v22 = vpop.f32.mrf.mxu3  ;;  %v1973_v55 = vpop.f32.mrf.mxu2  ;;  %v1841_v8 = vadd.f32 %v1840_v4, %v4381_v20 }
 0x1ff   : > { %v1330_v51 = vadd.f32 %v1314_v15, %v1298_v60  ;;  %v1897_v31 = vadd.f32 %v1896_v53, %v1832_v11  ;;  %v2036_v45 = vadd.f32 %v2035_v22, %v1971_v42  ;;  %v1974_v44 = vadd.f32 %v1973_v55, %v4383_v0 }
 0x200   : > { %v1906_v59 = vadd.f32 %v1905_v18, %v1841_v8 }
 0x201   : > { %v1347_v56 = vadd.f32 %v2758_v46, %v1330_v51 }
 0x203   : > { %v1727_v30 = vadd.f32 %v1711_v57, %v1347_v56  ;;  %v1743_v29 = vmul.f32 %v1711_v57, %v1347_v56 }
 0x205   : > { %1875 = vmatmul.f32.gmra.mxu0 %v1727_v30  ;;  %1940 = vmatmul.f32.gmra.mxu1 %v1743_v29  ;;  %v1843_v5 = vpop.f32.mrf.mxu0  ;;  %v1908_v24 = vpop.f32.mrf.mxu1 }
 0x206   : > { %2005 = vmatmul.f32.gmra.mxu2 %v1727_v30  ;;  %2070 = vmatmul.f32.gmra.mxu3 %v1743_v29  ;;  %v2038_v48 = vpop.f32.mrf.mxu3  ;;  %v1976_v37 = vpop.f32.mrf.mxu2  ;;  %v1844_v6 = vadd.f32 %v1843_v5, %v4381_v20 }
 0x207   : > { %v2039_v9 = vadd.f32 %v2038_v48, %v1974_v44  ;;  %v1977_v46 = vadd.f32 %v1976_v37, %v4383_v0 }
 0x208   : > { %v1909_v41 = vadd.f32 %v1908_v24, %v1844_v6 }
 0x20d   : > { %2162 = vmatmul.f32.vlgmr.msrb.gmra.mxu0 %v1897_v31  ;;  %2227 = vmatmul.f32.vlgmr.msrb.gmra.mxu1 %v2027_v58  ;;  %v1846_v21 = vpop.f32.mrf.mxu0  ;;  %v1911_v40 = vpop.f32.mrf.mxu1 }
 0x20e   : > { %2292 = vmatmul.f32.vlgmr.msrb.gmra.mxu2 %v1897_v31  ;;  %2357 = vmatmul.f32.vlgmr.msrb.gmra.mxu3 %v2027_v58  ;;  %v2041_v61 = vpop.f32.mrf.mxu3  ;;  %v1979_v50 = vpop.f32.mrf.mxu2  ;;  %v1847_v7 = vadd.f32 %v1846_v21, %v4381_v20 }
 0x20f   : > { %v2042_v14 = vadd.f32 %v2041_v61, %v1977_v46  ;;  %v1980_v53 = vadd.f32 %v1979_v50, %v4383_v0 }
 0x210   : > { %v1912_v23 = vadd.f32 %v1911_v40, %v1847_v7 }
 0x215   : > { %2165 = vmatmul.f32.gmra.mxu0 %v1900_v25  ;;  %2230 = vmatmul.f32.gmra.mxu1 %v2030_v52  ;;  %v1849_v54 = vpop.f32.mrf.mxu0  ;;  %v1914_v1 = vpop.f32.mrf.mxu1 }
 0x216   : > { %2295 = vmatmul.f32.gmra.mxu2 %v1900_v25  ;;  %2360 = vmatmul.f32.gmra.mxu3 %v2030_v52  ;;  %v2044_v33 = vpop.f32.mrf.mxu3  ;;  %v1850_v2 = vadd.f32 %v1849_v54, %v4381_v20  ;;  %v1982_v35 = vpop.f32.mrf.mxu2 }
 0x217   : > { %v2045_v32 = vadd.f32 %v2044_v33, %v1980_v53  ;;  %v1983_v15 = vadd.f32 %v1982_v35, %v4383_v0 }
 0x218   : > { %v1915_v16 = vadd.f32 %v1914_v1, %v1850_v2 }
 0x21d   : > { %2168 = vmatmul.f32.gmra.mxu0 %v1903_v13  ;;  %2233 = vmatmul.f32.gmra.mxu1 %v2033_v28  ;;  %v1852_v47 = vpop.f32.mrf.mxu0  ;;  %v1917_v34 = vpop.f32.mrf.mxu1 }
 0x21e   : > { %2298 = vmatmul.f32.gmra.mxu2 %v1903_v13  ;;  %2363 = vmatmul.f32.gmra.mxu3 %v2033_v28  ;;  %v2047_v26 = vpop.f32.mrf.mxu3  ;;  %v1853_v60 = vadd.f32 %v1852_v47, %v4381_v20  ;;  %v1985_v51 = vpop.f32.mrf.mxu2 }
 0x21f   : > { %v2048_v56 = vadd.f32 %v2047_v26, %v1983_v15  ;;  %v1986_v10 = vadd.f32 %v1985_v51, %v4383_v0 }
 0x220   : > { %v1918_v49 = vadd.f32 %v1917_v34, %v1853_v60 }
 0x225   : > { %2171 = vmatmul.f32.gmra.mxu0 %v1906_v59  ;;  %2236 = vmatmul.f32.gmra.mxu1 %v2036_v45  ;;  %v1855_v57 = vpop.f32.mrf.mxu0  ;;  %v1920_v30 = vpop.f32.mrf.mxu1 }
 0x226   : > { %2301 = vmatmul.f32.gmra.mxu2 %v1906_v59  ;;  %2366 = vmatmul.f32.gmra.mxu3 %v2036_v45  ;;  %v1856_v43 = vadd.f32 %v1855_v57, %v4381_v20  ;;  %v2050_v29 = vpop.f32.mrf.mxu3  ;;  %v1988_v27 = vpop.f32.mrf.mxu2 }
 0x227   : > { %v2051_v12 = vadd.f32 %v2050_v29, %v1986_v10  ;;  %v1989_v58 = vadd.f32 %v1988_v27, %v4383_v0 }
 0x228   : > { %v1921_v11 = vadd.f32 %v1920_v30, %v1856_v43 }
 0x22d   : > { %2174 = vmatmul.f32.gmra.mxu0 %v1909_v41  ;;  %2239 = vmatmul.f32.gmra.mxu1 %v2039_v9  ;;  %v1858_v3 = vpop.f32.mrf.mxu0  ;;  %v1923_v39 = vpop.f32.mrf.mxu1 }
 0x22e   : > { %2304 = vmatmul.f32.gmra.mxu2 %v1909_v41  ;;  %2369 = vmatmul.f32.gmra.mxu3 %v2039_v9  ;;  %v1859_v31 = vadd.f32 %v1858_v3, %v4381_v20  ;;  %v2053_v36 = vpop.f32.mrf.mxu3  ;;  %v1991_v63 = vpop.f32.mrf.mxu2 }
 0x22f   : > { %v2054_v19 = vadd.f32 %v2053_v36, %v1989_v58  ;;  %v1992_v52 = vadd.f32 %v1991_v63, %v4383_v0 }
 0x230   : > { %v1924_v38 = vadd.f32 %v1923_v39, %v1859_v31 }
 0x235   : > { %2177 = vmatmul.f32.gmra.mxu0 %v1912_v23  ;;  %2242 = vmatmul.f32.gmra.mxu1 %v2042_v14  ;;  %v1861_v4 = vpop.f32.mrf.mxu0  ;;  %v1926_v18 = vpop.f32.mrf.mxu1 }
 0x236   : > { %2307 = vmatmul.f32.gmra.mxu2 %v1912_v23  ;;  %2372 = vmatmul.f32.gmra.mxu3 %v2042_v14  ;;  %v1862_v25 = vadd.f32 %v1861_v4, %v4381_v20  ;;  %v2056_v22 = vpop.f32.mrf.mxu3 }
 0x237   : > { %v2057_v17 = vadd.f32 %v2056_v22, %v1992_v52 }
 0x238   : > { %v1927_v62 = vadd.f32 %v1926_v18, %v1862_v25 }
 0x23d   : > { %2180 = vmatmul.f32.gmra.mxu0 %v1915_v16  ;;  %2245 = vmatmul.f32.gmra.mxu1 %v2045_v32 }
 0x23e   : > { %2310 = vmatmul.f32.gmra.mxu2 %v1915_v16  ;;  %2375 = vmatmul.f32.gmra.mxu3 %v2045_v32 }
 0x242   : > { %v1864_v5 = vpop.f32.mrf.mxu0  ;;  %v1929_v8 = vpop.f32.mrf.mxu1 }
 0x243   : > { %v1865_v13 = vadd.f32 %v1864_v5, %v4381_v20 }
 0x245   : > { %2183 = vmatmul.f32.gmra.mxu0 %v1918_v49  ;;  %2248 = vmatmul.f32.gmra.mxu1 %v2048_v56  ;;  %v1930_v24 = vadd.f32 %v1929_v8, %v1865_v13 }
 0x246   : > { %2313 = vmatmul.f32.gmra.mxu2 %v1918_v49  ;;  %2378 = vmatmul.f32.gmra.mxu3 %v2048_v56  ;;  %v2713_v49 = vld [vmem:[%s4489_s8 + $0x1] ss:$2 sm:$0x3] }
 0x247   : > { %v4420_v29 = vperm.slane %v2713_v49, 0 }
 0x249   : > { %v1994_v55 = vpop.f32.mrf.mxu2  ;;  %v2059_v42 = vpop.f32.mrf.mxu3 }
 0x24a   : > { %v1995_v28 = vadd.f32 %v1994_v55, %v4383_v0 }
 0x24c   : > { %v2060_v48 = vadd.f32 %v2059_v42, %v1995_v28 }
 0x24d   : > { %2186 = vmatmul.f32.gmra.mxu0 %v1921_v11  ;;  %2251 = vmatmul.f32.gmra.mxu1 %v2051_v12 }
 0x24e   : > { %2316 = vmatmul.f32.gmra.mxu2 %v1921_v11  ;;  %2381 = vmatmul.f32.gmra.mxu3 %v2051_v12 }
 0x252   : > { %v1867_v59 = vpop.f32.mrf.mxu0  ;;  %v1932_v6 = vpop.f32.mrf.mxu1 }
 0x253   : > { %v1868_v21 = vadd.f32 %v1867_v59, %v4381_v20 }
 0x255   : > { %2189 = vmatmul.f32.gmra.mxu0 %v1924_v38  ;;  %2254 = vmatmul.f32.gmra.mxu1 %v2054_v19  ;;  %v1933_v40 = vadd.f32 %v1932_v6, %v1868_v21 }
 0x256   : > { %2319 = vmatmul.f32.gmra.mxu2 %v1924_v38  ;;  %2384 = vmatmul.f32.gmra.mxu3 %v2054_v19 }
 0x259   : > { %v1997_v45 = vpop.f32.mrf.mxu2  ;;  %v2062_v44 = vpop.f32.mrf.mxu3 }
 0x25a   : > { %v1998_v37 = vadd.f32 %v1997_v45, %v4383_v0 }
 0x25c   : > { %v2063_v61 = vadd.f32 %v2062_v44, %v1998_v37 }
 0x25d   : > { %2192 = vmatmul.f32.gmra.mxu0 %v1927_v62  ;;  %2257 = vmatmul.f32.gmra.mxu1 %v2057_v17 }
 0x25e   : > { %2322 = vmatmul.f32.gmra.mxu2 %v1927_v62  ;;  %2387 = vmatmul.f32.gmra.mxu3 %v2057_v17 }
 0x262   : > { %v1870_v41 = vpop.f32.mrf.mxu0  ;;  %v1935_v7 = vpop.f32.mrf.mxu1 }
 0x263   : > { %v1871_v54 = vadd.f32 %v1870_v41, %v4381_v20 }
 0x265   : > { %2195 = vmatmul.f32.gmra.mxu0 %v1930_v24  ;;  %2260 = vmatmul.f32.gmra.mxu1 %v2060_v48  ;;  %v1936_v23 = vadd.f32 %v1935_v7, %v1871_v54 }
 0x266   : > { %2325 = vmatmul.f32.gmra.mxu2 %v1930_v24  ;;  %2390 = vmatmul.f32.gmra.mxu3 %v2060_v48 }
 0x269   : > { %v2000_v9 = vpop.f32.mrf.mxu2  ;;  %v2065_v46 = vpop.f32.mrf.mxu3 }
 0x26a   : > { %v2001_v50 = vadd.f32 %v2000_v9, %v4383_v0 }
 0x26c   : > { %v2066_v14 = vadd.f32 %v2065_v46, %v2001_v50 }
 0x26d   : > { %2198 = vmatmul.f32.gmra.mxu0 %v1933_v40  ;;  %2263 = vmatmul.f32.gmra.mxu1 %v2063_v61 }
 0x26e   : > { %2328 = vmatmul.f32.gmra.mxu2 %v1933_v40  ;;  %2393 = vmatmul.f32.gmra.mxu3 %v2063_v61 }
 0x272   : > { %v1873_v1 = vpop.f32.mrf.mxu0  ;;  %v1938_v53 = vpop.f32.mrf.mxu1 }
 0x273   : > { %v1874_v33 = vadd.f32 %v1873_v1, %v4381_v20 }
 0x275   : > { %2201 = vmatmul.f32.gmra.mxu0 %v1936_v23  ;;  %2266 = vmatmul.f32.gmra.mxu1 %v2066_v14  ;;  %v1939_v35 = vadd.f32 %v1938_v53, %v1874_v33 }
 0x276   : > { %2331 = vmatmul.f32.gmra.mxu2 %v1936_v23  ;;  %2396 = vmatmul.f32.gmra.mxu3 %v2066_v14 }
 0x279   : > { %v2003_v2 = vpop.f32.mrf.mxu2  ;;  %v2068_v16 = vpop.f32.mrf.mxu3 }
 0x27a   : > { %v2004_v47 = vadd.f32 %v2003_v2, %v4383_v0 }
 0x27c   : > { %v2069_v32 = vadd.f32 %v2068_v16, %v2004_v47 }
 0x27d   : > { %2204 = vmatmul.f32.gmra.mxu0 %v1939_v35 }
 0x27e   : > { %2269 = vmatmul.f32.gmra.mxu1 %v2069_v32  ;;  %2334 = vmatmul.f32.gmra.mxu2 %v1939_v35 }
 0x27f   : > { %2399 = vmatmul.f32.gmra.mxu3 %v2069_v32 }
 0x282   : > { %v1876_v34 = vpop.f32.mrf.mxu0  ;;  %v1941_v26 = vpop.f32.mrf.mxu1 }
 0x283   : > { %v1877_v60 = vadd.f32 %v1876_v34, %v4381_v20  ;;  %v4422_v20 = vperm.slane %v2713_v49, 1 }
 0x285   : > { %v1942_v15 = vadd.f32 %v1941_v26, %v1877_v60 }
 0x287   : > { %2207 = vmatmul.f32.gmra.mxu0 %v1942_v15  ;;  %2337 = vmatmul.f32.gmra.mxu2 %v1942_v15 }
 0x289   : > { %v2006_v57 = vpop.f32.mrf.mxu2  ;;  %v2071_v51 = vpop.f32.mrf.mxu3 }
 0x28a   : > { %v2007_v56 = vadd.f32 %v2006_v57, %v4383_v0  ;;  %v2163_v43 = vpop.f32.mrf.mxu0  ;;  %v2228_v10 = vpop.f32.mrf.mxu1 }
 0x28b   : > { %v2164_v3 = vadd.f32 %v2163_v43, %v4420_v29 }
 0x28c   : > { %v2072_v30 = vadd.f32 %v2071_v51, %v2007_v56 }
 0x28d   : > { %v2229_v39 = vadd.f32 %v2228_v10, %v2164_v3 }
 0x28e   : > { %2272 = vmatmul.f32.gmra.mxu1 %v2072_v30  ;;  %2402 = vmatmul.f32.gmra.mxu3 %v2072_v30 }
 0x291   : > { %v2293_v27 = vpop.f32.mrf.mxu2  ;;  %v2358_v11 = vpop.f32.mrf.mxu3 }
 0x292   : > { %v2294_v12 = vadd.f32 %v2293_v27, %v4422_v20  ;;  %v2166_v31 = vpop.f32.mrf.mxu0  ;;  %v2231_v58 = vpop.f32.mrf.mxu1 }
 0x293   : > { %v2167_v38 = vadd.f32 %v2166_v31, %v4420_v29 }
 0x294   : > { %v2359_v0 = vadd.f32 %v2358_v11, %v2294_v12 }
 0x295   : > { %v2232_v18 = vadd.f32 %v2231_v58, %v2167_v38 }
 0x296   : > { %v2422_v36 = vadd.f32 %v2359_v0, %v2229_v39 }
 0x298   : > { %2438 = vst [vmem:[%s4430_s23] sm:$0xff] %v2422_v36 }
 0x299   : > { %v2296_v19 = vpop.f32.mrf.mxu2  ;;  %v2361_v4 = vpop.f32.mrf.mxu3 }
 0x29a   : > { %v2297_v63 = vadd.f32 %v2296_v19, %v4422_v20  ;;  %v2169_v25 = vpop.f32.mrf.mxu0  ;;  %v2234_v52 = vpop.f32.mrf.mxu1 }
 0x29b   : > { %v2170_v17 = vadd.f32 %v2169_v25, %v4420_v29 }
 0x29c   : > { %v2362_v22 = vadd.f32 %v2361_v4, %v2297_v63 }
 0x29d   : > { %v2235_v42 = vadd.f32 %v2234_v52, %v2170_v17 }
 0x29e   : > { %v2423_v62 = vadd.f32 %v2362_v22, %v2232_v18 }
 0x2a0   : > { %2439 = vst [vmem:[%s4430_s23 + $0x8] sm:$0xff] %v2423_v62 }
 0x2a1   : > { %v2299_v5 = vpop.f32.mrf.mxu2  ;;  %v2364_v55 = vpop.f32.mrf.mxu3 }
 0x2a2   : > { %v2300_v13 = vadd.f32 %v2299_v5, %v4422_v20  ;;  %v2172_v28 = vpop.f32.mrf.mxu0  ;;  %v2237_v8 = vpop.f32.mrf.mxu1 }
 0x2a3   : > { %v2173_v59 = vadd.f32 %v2172_v28, %v4420_v29 }
 0x2a4   : > { %v2365_v24 = vadd.f32 %v2364_v55, %v2300_v13 }
 0x2a5   : > { %v2238_v40 = vadd.f32 %v2237_v8, %v2173_v59 }
 0x2a6   : > { %v2424_v48 = vadd.f32 %v2365_v24, %v2235_v42 }
 0x2a8   : > { %2440 = vst [vmem:[%s4430_s23 + $0x10] sm:$0xff] %v2424_v48 }
 0x2a9   : > { %v2302_v45 = vpop.f32.mrf.mxu2  ;;  %v2367_v21 = vpop.f32.mrf.mxu3 }
 0x2aa   : > { %v2303_v37 = vadd.f32 %v2302_v45, %v4422_v20  ;;  %v2175_v6 = vpop.f32.mrf.mxu0  ;;  %v2240_v44 = vpop.f32.mrf.mxu1 }
 0x2ab   : > { %v2176_v9 = vadd.f32 %v2175_v6, %v4420_v29 }
 0x2ac   : > { %v2368_v61 = vadd.f32 %v2367_v21, %v2303_v37 }
 0x2ad   : > { %v2241_v14 = vadd.f32 %v2240_v44, %v2176_v9 }
 0x2ae   : > { %v2425_v41 = vadd.f32 %v2368_v61, %v2238_v40 }
 0x2b0   : > { %2441 = vst [vmem:[%s4430_s23 + $0x18] sm:$0xff] %v2425_v41 }
 0x2b1   : > { %v2305_v54 = vpop.f32.mrf.mxu2  ;;  %v2370_v50 = vpop.f32.mrf.mxu3 }
 0x2b2   : > { %v2306_v7 = vadd.f32 %v2305_v54, %v4422_v20  ;;  %v2178_v46 = vpop.f32.mrf.mxu0  ;;  %v2243_v23 = vpop.f32.mrf.mxu1 }
 0x2b3   : > { %v2179_v2 = vadd.f32 %v2178_v46, %v4420_v29 }
 0x2b4   : > { %v2371_v1 = vadd.f32 %v2370_v50, %v2306_v7 }
 0x2b5   : > { %v2244_v34 = vadd.f32 %v2243_v23, %v2179_v2 }
 0x2b6   : > { %v2426_v33 = vadd.f32 %v2371_v1, %v2241_v14 }
 0x2b8   : > { %2442 = vst [vmem:[%s4430_s23 + $0x20] sm:$0xff] %v2426_v33 }
 0x2b9   : > { %v2308_v53 = vpop.f32.mrf.mxu2  ;;  %v2373_v47 = vpop.f32.mrf.mxu3 }
 0x2ba   : > { %v2309_v35 = vadd.f32 %v2308_v53, %v4422_v20  ;;  %v2181_v16 = vpop.f32.mrf.mxu0  ;;  %v2246_v32 = vpop.f32.mrf.mxu1 }
 0x2bb   : > { %v2182_v15 = vadd.f32 %v2181_v16, %v4420_v29 }
 0x2bc   : > { %v2374_v26 = vadd.f32 %v2373_v47, %v2309_v35 }
 0x2bd   : > { %v2247_v10 = vadd.f32 %v2246_v32, %v2182_v15 }
 0x2be   : > { %v2427_v60 = vadd.f32 %v2374_v26, %v2244_v34 }
 0x2c0   : > { %2443 = vst [vmem:[%s4430_s23 + $0x28] sm:$0xff] %v2427_v60 }
 0x2c1   : > { %v2311_v57 = vpop.f32.mrf.mxu2  ;;  %v2376_v51 = vpop.f32.mrf.mxu3 }
 0x2c2   : > { %v2312_v49 = vadd.f32 %v2311_v57, %v4422_v20  ;;  %v2184_v56 = vpop.f32.mrf.mxu0  ;;  %v2249_v43 = vpop.f32.mrf.mxu1 }
 0x2c3   : > { %v2185_v27 = vadd.f32 %v2184_v56, %v4420_v29 }
 0x2c4   : > { %v2377_v30 = vadd.f32 %v2376_v51, %v2312_v49 }
 0x2c5   : > { %v2250_v0 = vadd.f32 %v2249_v43, %v2185_v27 }
 0x2c6   : > { %v2428_v3 = vadd.f32 %v2377_v30, %v2247_v10 }
 0x2c8   : > { %2444 = vst [vmem:[%s4430_s23 + $0x30] sm:$0xff] %v2428_v3 }
 0x2c9   : > { %v2314_v11 = vpop.f32.mrf.mxu2  ;;  %v2379_v12 = vpop.f32.mrf.mxu3 }
 0x2ca   : > { %v2315_v31 = vadd.f32 %v2314_v11, %v4422_v20  ;;  %v2187_v58 = vpop.f32.mrf.mxu0  ;;  %v2252_v39 = vpop.f32.mrf.mxu1 }
 0x2cb   : > { %v2188_v19 = vadd.f32 %v2187_v58, %v4420_v29 }
 0x2cc   : > { %v2380_v36 = vadd.f32 %v2379_v12, %v2315_v31 }
 0x2cd   : > { %v2253_v22 = vadd.f32 %v2252_v39, %v2188_v19 }
 0x2ce   : > { %v2429_v38 = vadd.f32 %v2380_v36, %v2250_v0 }
 0x2d0   : > { %2445 = vst [vmem:[%s4430_s23 + $0x38] sm:$0xff] %v2429_v38 }
 0x2d1   : > { %v2317_v4 = vpop.f32.mrf.mxu2  ;;  %v2382_v63 = vpop.f32.mrf.mxu3 }
 0x2d2   : > { %v2318_v25 = vadd.f32 %v2317_v4, %v4422_v20  ;;  %v2190_v52 = vpop.f32.mrf.mxu0  ;;  %v2255_v18 = vpop.f32.mrf.mxu1 }
 0x2d3   : > { %v2191_v5 = vadd.f32 %v2190_v52, %v4420_v29 }
 0x2d4   : > { %v2383_v62 = vadd.f32 %v2382_v63, %v2318_v25 }
 0x2d5   : > { %v2256_v24 = vadd.f32 %v2255_v18, %v2191_v5 }
 0x2d6   : > { %v2430_v17 = vadd.f32 %v2383_v62, %v2253_v22 }
 0x2d8   : > { %2446 = vst [vmem:[%s4430_s23 + $0x40] sm:$0xff] %v2430_v17 }
 0x2d9   : > { %v2320_v55 = vpop.f32.mrf.mxu2  ;;  %v2385_v13 = vpop.f32.mrf.mxu3 }
 0x2da   : > { %v2321_v28 = vadd.f32 %v2320_v55, %v4422_v20  ;;  %v2193_v8 = vpop.f32.mrf.mxu0  ;;  %v2258_v42 = vpop.f32.mrf.mxu1 }
 0x2db   : > { %v2194_v45 = vadd.f32 %v2193_v8, %v4420_v29 }
 0x2dc   : > { %v2386_v48 = vadd.f32 %v2385_v13, %v2321_v28 }
 0x2dd   : > { %v2259_v40 = vadd.f32 %v2258_v42, %v2194_v45 }
 0x2de   : > { %v2431_v59 = vadd.f32 %v2386_v48, %v2256_v24 }
 0x2e0   : > { %2447 = vst [vmem:[%s4430_s23 + $0x48] sm:$0xff] %v2431_v59 }
 0x2e1   : > { %v2323_v21 = vpop.f32.mrf.mxu2  ;;  %v2388_v37 = vpop.f32.mrf.mxu3 }
 0x2e2   : > { %v2324_v6 = vadd.f32 %v2323_v21, %v4422_v20  ;;  %v2196_v44 = vpop.f32.mrf.mxu0  ;;  %v2261_v41 = vpop.f32.mrf.mxu1 }
 0x2e3   : > { %v2197_v54 = vadd.f32 %v2196_v44, %v4420_v29 }
 0x2e4   : > { %v2389_v61 = vadd.f32 %v2388_v37, %v2324_v6 }
 0x2e5   : > { %v2262_v14 = vadd.f32 %v2261_v41, %v2197_v54 }
 0x2e6   : > { %v2432_v9 = vadd.f32 %v2389_v61, %v2259_v40 }
 0x2e8   : > { %2448 = vst [vmem:[%s4430_s23 + $0x50] sm:$0xff] %v2432_v9 }
 0x2e9   : > { %v2326_v50 = vpop.f32.mrf.mxu2  ;;  %v2391_v7 = vpop.f32.mrf.mxu3 }
 0x2ea   : > { %v2327_v46 = vadd.f32 %v2326_v50, %v4422_v20  ;;  %v2199_v23 = vpop.f32.mrf.mxu0  ;;  %v2264_v2 = vpop.f32.mrf.mxu1 }
 0x2eb   : > { %v2200_v53 = vadd.f32 %v2199_v23, %v4420_v29 }
 0x2ec   : > { %v2392_v1 = vadd.f32 %v2391_v7, %v2327_v46 }
 0x2ed   : > { %v2265_v34 = vadd.f32 %v2264_v2, %v2200_v53 }
 0x2ee   : > { %v2433_v33 = vadd.f32 %v2392_v1, %v2262_v14 }
 0x2f0   : > { %2449 = vst [vmem:[%s4430_s23 + $0x58] sm:$0xff] %v2433_v33 }
 0x2f1   : > { %v2329_v47 = vpop.f32.mrf.mxu2  ;;  %v2394_v35 = vpop.f32.mrf.mxu3 }
 0x2f2   : > { %v2330_v16 = vadd.f32 %v2329_v47, %v4422_v20  ;;  %v2202_v32 = vpop.f32.mrf.mxu0  ;;  %v2267_v57 = vpop.f32.mrf.mxu1 }
 0x2f3   : > { %v2203_v15 = vadd.f32 %v2202_v32, %v4420_v29 }
 0x2f4   : > { %v2395_v26 = vadd.f32 %v2394_v35, %v2330_v16 }
 0x2f5   : > { %v2268_v43 = vadd.f32 %v2267_v57, %v2203_v15 }
 0x2f6   : > { %v2434_v60 = vadd.f32 %v2395_v26, %v2265_v34 }
 0x2f8   : > { %2450 = vst [vmem:[%s4430_s23 + $0x60] sm:$0xff] %v2434_v60 }
 0x2f9   : > { %v2332_v51 = vpop.f32.mrf.mxu2  ;;  %v2397_v49 = vpop.f32.mrf.mxu3 }
 0x2fa   : > { %v2333_v56 = vadd.f32 %v2332_v51, %v4422_v20  ;;  %v2205_v30 = vpop.f32.mrf.mxu0 }
 0x2fb   : > { %v2206_v27 = vadd.f32 %v2205_v30, %v4420_v29  ;;  %v2270_v31 = vpop.f32.mrf.mxu1 }
 0x2fc   : > { %v2398_v10 = vadd.f32 %v2397_v49, %v2333_v56 }
 0x2fd   : > { %v2271_v39 = vadd.f32 %v2270_v31, %v2206_v27 }
 0x2fe   : > { %v2435_v3 = vadd.f32 %v2398_v10, %v2268_v43 }
 0x300   : > { %2451 = vst [vmem:[%s4430_s23 + $0x68] sm:$0xff] %v2435_v3 }
 0x301   : > { %v2335_v11 = vpop.f32.mrf.mxu2 }
 0x302   : > { %v2336_v12 = vadd.f32 %v2335_v11, %v4422_v20  ;;  %v2400_v58 = vpop.f32.mrf.mxu3 }
 0x304   : > { %v2401_v0 = vadd.f32 %v2400_v58, %v2336_v12  ;;  %v2208_v38 = vpop.f32.mrf.mxu0 }
 0x305   : > { %v2209_v63 = vadd.f32 %v2208_v38, %v4420_v29 }
 0x306   : > { %v2436_v36 = vadd.f32 %v2401_v0, %v2271_v39 }
 0x308   : > { %2452 = vst [vmem:[%s4430_s23 + $0x70] sm:$0xff] %v2436_v36 }
 0x30a   : > { %v2338_v19 = vpop.f32.mrf.mxu2 }
 0x30b   : > { %v2273_v4 = vpop.f32.mrf.mxu1  ;;  %v2339_v25 = vadd.f32 %v2338_v19, %v4422_v20 }
 0x30c   : > { %v2274_v18 = vadd.f32 %v2273_v4, %v2209_v63 }
 0x311   : > { %v2403_v52 = vpop.f32.mrf.mxu3 }
 0x312   : > { %v2404_v22 = vadd.f32 %v2403_v52, %v2339_v25 }
 0x314   : > { %v2437_v62 = vadd.f32 %v2404_v22, %v2274_v18 }
 0x316   : > { %2453 = vst [vmem:[%s4430_s23 + $0x78] sm:$0xff] %v2437_v62 }
 0x317 PF: > { %s21_s13 = sadd.s32 1, %s2765_s13  }
 0x318   : > { %p18_p4 = scmp.ge.s32.totalorder %s21_s13, 4  }
 0x31a   :  { %20 = sbr.rel (!%p18_p4) target bundleno = 1 (0x1), region = 108 }

</bundles_post_ra>
